<compile_context>
chip_gen: v7x
topology: tpu7x:2x2x1
jax: 0.10.0
libtpu: 0.0.40
codegen_flags: <defaults>
</compile_context>

<pallas_src>
import jax
import jax.numpy as jnp
from jax import lax
from jax.experimental import pallas as pl
from jax.experimental.pallas import tpu as pltpu


def bilstm_kernel(
    x_ref,      # [B, T, D_i]        batch-first input (as in PyTorch batch_first=True)
    wih_ref,    # [D_i, 8*D_h]       [Wih_fwd | Wih_bwd], input -> gates, both directions
    b_ref,      # [1, 8*D_h]         [b_fwd | b_bwd], (b_ih + b_hh) folded, both directions
    whh_ref,    # [2*D_h, 8*D_h]     block-diag [[Whh_f, 0], [0, Whh_b]]
    w1_ref,     # [2*D_h, D_o]       linear1 weight (transposed)
    b1_ref,     # [1, D_o]
    w2_ref,     # [D_o, n_classes]   linear2 weight (transposed)
    b2_ref,     # [1, n_classes]
    y_ref,      # [B, n_classes]
):
    B, T, D_i = x_ref.shape
    Dh2, G8 = whh_ref.shape          # 2*D_h, 8*D_h
    Dh = Dh2 // 2
    G4 = 4 * Dh

    # ---- input projection for all timesteps & both directions: one big MXU matmul ----
    x2d = x_ref[...].reshape(B * T, D_i)                 # free flatten (b-major rows)
    gx = jnp.dot(x2d, wih_ref[...], preferred_element_type=jnp.float32) + b_ref[...]
    gx = gx.reshape(B, T, G8)                            # [B, T, 8*D_h]

    whh = whh_ref[...]

    c_f = jnp.zeros((B, Dh), jnp.float32)
    c_b = jnp.zeros((B, Dh), jnp.float32)
    h_f = jnp.zeros((B, Dh), jnp.float32)
    h_b = jnp.zeros((B, Dh), jnp.float32)
    H = jnp.zeros((B, Dh2), jnp.float32)                 # [h_f | h_b]

    # ---- fused forward/backward recurrence, fully unrolled (T static & small) ----
    for t in range(T):
        if t == 0:
            # h == 0 on the first step -> skip the recurrent matmul entirely
            g_f = gx[:, 0, 0:G4]
            g_b = gx[:, T - 1, G4:G8]
        else:
            rec = jnp.dot(H, whh, preferred_element_type=jnp.float32)   # [B, 8*D_h]
            g_f = gx[:, t, 0:G4] + rec[:, 0:G4]
            g_b = gx[:, T - 1 - t, G4:G8] + rec[:, G4:G8]

        # PyTorch gate order within each 4*D_h block: i, f, g, o
        sg_f = jax.nn.sigmoid(g_f)   # full-vector sigmoid: i, f, o slices are valid
        tg_f = jnp.tanh(g_f)         # full-vector tanh:    g slice is valid
        sg_b = jax.nn.sigmoid(g_b)
        tg_b = jnp.tanh(g_b)

        c_f = sg_f[:, Dh:2 * Dh] * c_f + sg_f[:, 0:Dh] * tg_f[:, 2 * Dh:3 * Dh]
        c_b = sg_b[:, Dh:2 * Dh] * c_b + sg_b[:, 0:Dh] * tg_b[:, 2 * Dh:3 * Dh]
        h_f = sg_f[:, 3 * Dh:G4] * jnp.tanh(c_f)
        h_b = sg_b[:, 3 * Dh:G4] * jnp.tanh(c_b)
        H = jnp.concatenate([h_f, h_b], axis=1)          # [B, 2*D_h]

    # ---- head: Linear -> ReLU -> (Dropout = identity in eval) -> Linear ----
    # H at loop exit is exactly cat([h_n_fwd, h_n_bwd], dim=1)
    h1 = jnp.dot(H, w1_ref[...], preferred_element_type=jnp.float32) + b1_ref[...]
    h1 = jnp.maximum(h1, 0.0)
    y_ref[...] = (
        jnp.dot(h1, w2_ref[...], preferred_element_type=jnp.float32) + b2_ref[...]
    )


def bilstm_forward(x, params):
    """x: [B, T, D_i] float32 (batch_first, matching nn.LSTM(batch_first=True))."""
    B, T, D_i = x.shape
    Dh = params["whh_f"].shape[0]
    n_classes = params["b2"].shape[-1]

    # --- wrapper-side weight packing (done once, outside the kernel) ---
    wih_both = jnp.concatenate([params["wih_f"], params["wih_b"]], axis=1)   # [D_i, 8*D_h]
    b_both = jnp.concatenate([params["b_f"], params["b_b"]], axis=1)         # [1, 8*D_h]
    z = jnp.zeros((Dh, 4 * Dh), jnp.float32)
    whh_blk = jnp.block([[params["whh_f"], z], [z, params["whh_b"]]])        # [2*D_h, 8*D_h]

    vmem = pl.BlockSpec(memory_space=pltpu.MemorySpace.VMEM)
    return pl.pallas_call(
        bilstm_kernel,
        out_shape=jax.ShapeDtypeStruct((B, n_classes), jnp.float32),
        in_specs=[vmem] * 8,
        out_specs=vmem,
    )(
        x, wih_both, b_both, whh_blk,
        params["w1"], params["b1"], params["w2"], params["b2"],
    )


def reference_forward(x, params):
    """Pure-JAX reference of the same math (for a sanity check)."""
    B, T, D_i = x.shape
    Dh = params["whh_f"].shape[0]

    def run(wih, whh, b, xs):
        def step(carry, xt):
            h, c = carry
            gates = xt @ wih + h @ whh + b
            i_g = jax.nn.sigmoid(gates[:, 0 * Dh:1 * Dh])
            f_g = jax.nn.sigmoid(gates[:, 1 * Dh:2 * Dh])
            g_g = jnp.tanh(gates[:, 2 * Dh:3 * Dh])
            o_g = jax.nn.sigmoid(gates[:, 3 * Dh:4 * Dh])
            c_new = f_g * c + i_g * g_g
            h_new = o_g * jnp.tanh(c_new)
            return (h_new, c_new), None

        h0 = jnp.zeros((B, Dh), jnp.float32)
        (h_fin, _), _ = lax.scan(step, (h0, h0), xs)
        return h_fin

    xs = jnp.transpose(x, (1, 0, 2))
    h_fwd = run(params["wih_f"], params["whh_f"], params["b_f"], xs)
    h_bwd = run(params["wih_b"], params["whh_b"], params["b_b"], xs[::-1])
    out = jnp.concatenate([h_fwd, h_bwd], axis=1)
    h1 = jnp.maximum(out @ params["w1"] + params["b1"], 0.0)
    return h1 @ params["w2"] + params["b2"]


def init_params(key, D_i, D_h, D_o, n_classes):
    ks = jax.random.split(key, 11)
    u = lambda k, shape, s=0.1: jax.random.uniform(k, shape, jnp.float32, -s, s)
    return {
        # LSTM (forward dir): PyTorch weight_ih_l0 is [4*D_h, D_i]; stored transposed.
        "wih_f": u(ks[0], (D_i, 4 * D_h)),
        "whh_f": u(ks[1], (D_h, 4 * D_h)),
        "b_f":   u(ks[2], (1, 4 * D_h)),   # b_ih + b_hh folded together
        # LSTM (reverse dir)
        "wih_b": u(ks[3], (D_i, 4 * D_h)),
        "whh_b": u(ks[4], (D_h, 4 * D_h)),
        "b_b":   u(ks[5], (1, 4 * D_h)),
        # linear1: [D_o, 2*D_h] in PyTorch; stored transposed [2*D_h, D_o]
        "w1": u(ks[6], (2 * D_h, D_o)),
        "b1": u(ks[7], (1, D_o)),
        # linear2: [n_classes, D_o] in PyTorch; stored transposed [D_o, n_classes]
        "w2": u(ks[8], (D_o, n_classes)),
        "b2": u(ks[9], (1, n_classes)),
    }


if __name__ == "__main__":
    # Small, module-consistent shapes: batch=4, seq=8, D_i=16, D_h=32, D_o=32, n_classes=5
    B, T, D_i, D_h, D_o, n_classes = 4, 8, 16, 32, 32, 5

    key = jax.random.PRNGKey(0)
    kx, kp = jax.random.split(key)
    x = jax.random.normal(kx, (B, T, D_i), jnp.float32)
    params = init_params(kp, D_i, D_h, D_o, n_classes)

    y = bilstm_forward(x, params)
    y = jax.block_until_ready(y)

    y_ref = reference_forward(x, params)
    assert y.shape == (B, n_classes)
    assert jnp.allclose(y, y_ref, atol=1e-4, rtol=1e-4), "mismatch vs pure-JAX reference"

    print("KERNEL_OK")
</pallas_src>

<mosaic_0001>
module attributes {stable_mosaic.version = 11 : i64} {
  func.func @bilstm_kernel(%arg0: memref<4x8x16xf32, #tpu.memory_space<vmem>>, %arg1: memref<16x256xf32, #tpu.memory_space<vmem>>, %arg2: memref<1x256xf32, #tpu.memory_space<vmem>>, %arg3: memref<64x256xf32, #tpu.memory_space<vmem>>, %arg4: memref<64x32xf32, #tpu.memory_space<vmem>>, %arg5: memref<1x32xf32, #tpu.memory_space<vmem>>, %arg6: memref<32x5xf32, #tpu.memory_space<vmem>>, %arg7: memref<1x5xf32, #tpu.memory_space<vmem>>, %arg8: memref<4x5xf32, #tpu.memory_space<vmem>>) attributes {dimension_semantics = [], scalar_prefetch = 0 : i64, scratch_operands = 0 : i64, tpu.core_type = #tpu.core_type<tc>} {
    %c0 = arith.constant 0 : index
    %c0_0 = arith.constant 0 : index
    %c0_1 = arith.constant 0 : index
    %0 = vector.load %arg0[%c0, %c0_0, %c0_1] : memref<4x8x16xf32, #tpu.memory_space<vmem>>, vector<4x8x16xf32>
    %1 = vector.shape_cast %0 : vector<4x8x16xf32> to vector<32x16xf32>
    %c0_2 = arith.constant 0 : index
    %c0_3 = arith.constant 0 : index
    %2 = vector.load %arg1[%c0_2, %c0_3] : memref<16x256xf32, #tpu.memory_space<vmem>>, vector<16x256xf32>
    %cst = arith.constant dense<0.000000e+00> : vector<32x256xf32>
    %3 = tpu.matmul %1, %2, %cst {dimension_numbers = #tpu.dot_dimension_numbers<[1], [0], [0], [1], [0, 0, 1, 1], [], []>} : vector<32x16xf32>, vector<16x256xf32>, vector<32x256xf32> -> vector<32x256xf32>
    %c0_4 = arith.constant 0 : index
    %c0_5 = arith.constant 0 : index
    %4 = vector.load %arg2[%c0_4, %c0_5] : memref<1x256xf32, #tpu.memory_space<vmem>>, vector<1x256xf32>
    %5 = vector.broadcast %4 : vector<1x256xf32> to vector<32x256xf32>
    %6 = arith.addf %3, %5 : vector<32x256xf32>
    %7 = vector.shape_cast %6 : vector<32x256xf32> to vector<4x8x256xf32>
    %c0_6 = arith.constant 0 : index
    %c0_7 = arith.constant 0 : index
    %8 = vector.load %arg3[%c0_6, %c0_7] : memref<64x256xf32, #tpu.memory_space<vmem>>, vector<64x256xf32>
    %cst_8 = arith.constant 0.000000e+00 : f32
    %9 = vector.broadcast %cst_8 : f32 to vector<4x32xf32>
    %cst_9 = arith.constant 0.000000e+00 : f32
    %10 = vector.broadcast %cst_9 : f32 to vector<4x32xf32>
    %11 = vector.extract_strided_slice %7 {offsets = [0, 0, 0], sizes = [4, 1, 128], strides = [1, 1, 1]} : vector<4x8x256xf32> to vector<4x1x128xf32>
    %12 = vector.shape_cast %11 : vector<4x1x128xf32> to vector<4x128xf32>
    %13 = vector.extract_strided_slice %7 {offsets = [0, 7, 128], sizes = [4, 1, 128], strides = [1, 1, 1]} : vector<4x8x256xf32> to vector<4x1x128xf32>
    %14 = vector.shape_cast %13 : vector<4x1x128xf32> to vector<4x128xf32>
    %15 = arith.negf %12 : vector<4x128xf32>
    %16 = math.exp %15 : vector<4x128xf32>
    %cst_10 = arith.constant 1.000000e+00 : f32
    %17 = vector.broadcast %cst_10 : f32 to vector<4x128xf32>
    %18 = arith.addf %17, %16 : vector<4x128xf32>
    %19 = arith.divf %17, %18 : vector<4x128xf32>
    %20 = math.tanh %12 : vector<4x128xf32>
    %21 = arith.negf %14 : vector<4x128xf32>
    %22 = math.exp %21 : vector<4x128xf32>
    %cst_11 = arith.constant 1.000000e+00 : f32
    %23 = vector.broadcast %cst_11 : f32 to vector<4x128xf32>
    %24 = arith.addf %23, %22 : vector<4x128xf32>
    %25 = arith.divf %23, %24 : vector<4x128xf32>
    %26 = math.tanh %14 : vector<4x128xf32>
    %27 = vector.extract_strided_slice %19 {offsets = [0, 32], sizes = [4, 32], strides = [1, 1]} : vector<4x128xf32> to vector<4x32xf32>
    %28 = arith.mulf %27, %9 : vector<4x32xf32>
    %29 = vector.extract_strided_slice %19 {offsets = [0, 0], sizes = [4, 32], strides = [1, 1]} : vector<4x128xf32> to vector<4x32xf32>
    %30 = vector.extract_strided_slice %20 {offsets = [0, 64], sizes = [4, 32], strides = [1, 1]} : vector<4x128xf32> to vector<4x32xf32>
    %31 = arith.mulf %29, %30 : vector<4x32xf32>
    %32 = arith.addf %28, %31 : vector<4x32xf32>
    %33 = vector.extract_strided_slice %25 {offsets = [0, 32], sizes = [4, 32], strides = [1, 1]} : vector<4x128xf32> to vector<4x32xf32>
    %34 = arith.mulf %33, %10 : vector<4x32xf32>
    %35 = vector.extract_strided_slice %25 {offsets = [0, 0], sizes = [4, 32], strides = [1, 1]} : vector<4x128xf32> to vector<4x32xf32>
    %36 = vector.extract_strided_slice %26 {offsets = [0, 64], sizes = [4, 32], strides = [1, 1]} : vector<4x128xf32> to vector<4x32xf32>
    %37 = arith.mulf %35, %36 : vector<4x32xf32>
    %38 = arith.addf %34, %37 : vector<4x32xf32>
    %39 = vector.extract_strided_slice %19 {offsets = [0, 96], sizes = [4, 32], strides = [1, 1]} : vector<4x128xf32> to vector<4x32xf32>
    %40 = math.tanh %32 : vector<4x32xf32>
    %41 = arith.mulf %39, %40 : vector<4x32xf32>
    %42 = vector.extract_strided_slice %25 {offsets = [0, 96], sizes = [4, 32], strides = [1, 1]} : vector<4x128xf32> to vector<4x32xf32>
    %43 = math.tanh %38 : vector<4x32xf32>
    %44 = arith.mulf %42, %43 : vector<4x32xf32>
    %45 = tpu.concatenate %41, %44 in 1 : vector<4x32xf32>, vector<4x32xf32> -> vector<4x64xf32>
    %cst_12 = arith.constant dense<0.000000e+00> : vector<4x256xf32>
    %46 = tpu.matmul %45, %8, %cst_12 {dimension_numbers = #tpu.dot_dimension_numbers<[1], [0], [0], [1], [0, 0, 1, 1], [], []>} : vector<4x64xf32>, vector<64x256xf32>, vector<4x256xf32> -> vector<4x256xf32>
    %47 = vector.extract_strided_slice %7 {offsets = [0, 1, 0], sizes = [4, 1, 128], strides = [1, 1, 1]} : vector<4x8x256xf32> to vector<4x1x128xf32>
    %48 = vector.shape_cast %47 : vector<4x1x128xf32> to vector<4x128xf32>
    %49 = vector.extract_strided_slice %46 {offsets = [0, 0], sizes = [4, 128], strides = [1, 1]} : vector<4x256xf32> to vector<4x128xf32>
    %50 = arith.addf %48, %49 : vector<4x128xf32>
    %51 = vector.extract_strided_slice %7 {offsets = [0, 6, 128], sizes = [4, 1, 128], strides = [1, 1, 1]} : vector<4x8x256xf32> to vector<4x1x128xf32>
    %52 = vector.shape_cast %51 : vector<4x1x128xf32> to vector<4x128xf32>
    %53 = vector.extract_strided_slice %46 {offsets = [0, 128], sizes = [4, 128], strides = [1, 1]} : vector<4x256xf32> to vector<4x128xf32>
    %54 = arith.addf %52, %53 : vector<4x128xf32>
    %55 = arith.negf %50 : vector<4x128xf32>
    %56 = math.exp %55 : vector<4x128xf32>
    %cst_13 = arith.constant 1.000000e+00 : f32
    %57 = vector.broadcast %cst_13 : f32 to vector<4x128xf32>
    %58 = arith.addf %57, %56 : vector<4x128xf32>
    %59 = arith.divf %57, %58 : vector<4x128xf32>
    %60 = math.tanh %50 : vector<4x128xf32>
    %61 = arith.negf %54 : vector<4x128xf32>
    %62 = math.exp %61 : vector<4x128xf32>
    %cst_14 = arith.constant 1.000000e+00 : f32
    %63 = vector.broadcast %cst_14 : f32 to vector<4x128xf32>
    %64 = arith.addf %63, %62 : vector<4x128xf32>
    %65 = arith.divf %63, %64 : vector<4x128xf32>
    %66 = math.tanh %54 : vector<4x128xf32>
    %67 = vector.extract_strided_slice %59 {offsets = [0, 32], sizes = [4, 32], strides = [1, 1]} : vector<4x128xf32> to vector<4x32xf32>
    %68 = arith.mulf %67, %32 : vector<4x32xf32>
    %69 = vector.extract_strided_slice %59 {offsets = [0, 0], sizes = [4, 32], strides = [1, 1]} : vector<4x128xf32> to vector<4x32xf32>
    %70 = vector.extract_strided_slice %60 {offsets = [0, 64], sizes = [4, 32], strides = [1, 1]} : vector<4x128xf32> to vector<4x32xf32>
    %71 = arith.mulf %69, %70 : vector<4x32xf32>
    %72 = arith.addf %68, %71 : vector<4x32xf32>
    %73 = vector.extract_strided_slice %65 {offsets = [0, 32], sizes = [4, 32], strides = [1, 1]} : vector<4x128xf32> to vector<4x32xf32>
    %74 = arith.mulf %73, %38 : vector<4x32xf32>
    %75 = vector.extract_strided_slice %65 {offsets = [0, 0], sizes = [4, 32], strides = [1, 1]} : vector<4x128xf32> to vector<4x32xf32>
    %76 = vector.extract_strided_slice %66 {offsets = [0, 64], sizes = [4, 32], strides = [1, 1]} : vector<4x128xf32> to vector<4x32xf32>
    %77 = arith.mulf %75, %76 : vector<4x32xf32>
    %78 = arith.addf %74, %77 : vector<4x32xf32>
    %79 = vector.extract_strided_slice %59 {offsets = [0, 96], sizes = [4, 32], strides = [1, 1]} : vector<4x128xf32> to vector<4x32xf32>
    %80 = math.tanh %72 : vector<4x32xf32>
    %81 = arith.mulf %79, %80 : vector<4x32xf32>
    %82 = vector.extract_strided_slice %65 {offsets = [0, 96], sizes = [4, 32], strides = [1, 1]} : vector<4x128xf32> to vector<4x32xf32>
    %83 = math.tanh %78 : vector<4x32xf32>
    %84 = arith.mulf %82, %83 : vector<4x32xf32>
    %85 = tpu.concatenate %81, %84 in 1 : vector<4x32xf32>, vector<4x32xf32> -> vector<4x64xf32>
    %cst_15 = arith.constant dense<0.000000e+00> : vector<4x256xf32>
    %86 = tpu.matmul %85, %8, %cst_15 {dimension_numbers = #tpu.dot_dimension_numbers<[1], [0], [0], [1], [0, 0, 1, 1], [], []>} : vector<4x64xf32>, vector<64x256xf32>, vector<4x256xf32> -> vector<4x256xf32>
    %87 = vector.extract_strided_slice %7 {offsets = [0, 2, 0], sizes = [4, 1, 128], strides = [1, 1, 1]} : vector<4x8x256xf32> to vector<4x1x128xf32>
    %88 = vector.shape_cast %87 : vector<4x1x128xf32> to vector<4x128xf32>
    %89 = vector.extract_strided_slice %86 {offsets = [0, 0], sizes = [4, 128], strides = [1, 1]} : vector<4x256xf32> to vector<4x128xf32>
    %90 = arith.addf %88, %89 : vector<4x128xf32>
    %91 = vector.extract_strided_slice %7 {offsets = [0, 5, 128], sizes = [4, 1, 128], strides = [1, 1, 1]} : vector<4x8x256xf32> to vector<4x1x128xf32>
    %92 = vector.shape_cast %91 : vector<4x1x128xf32> to vector<4x128xf32>
    %93 = vector.extract_strided_slice %86 {offsets = [0, 128], sizes = [4, 128], strides = [1, 1]} : vector<4x256xf32> to vector<4x128xf32>
    %94 = arith.addf %92, %93 : vector<4x128xf32>
    %95 = arith.negf %90 : vector<4x128xf32>
    %96 = math.exp %95 : vector<4x128xf32>
    %cst_16 = arith.constant 1.000000e+00 : f32
    %97 = vector.broadcast %cst_16 : f32 to vector<4x128xf32>
    %98 = arith.addf %97, %96 : vector<4x128xf32>
    %99 = arith.divf %97, %98 : vector<4x128xf32>
    %100 = math.tanh %90 : vector<4x128xf32>
    %101 = arith.negf %94 : vector<4x128xf32>
    %102 = math.exp %101 : vector<4x128xf32>
    %cst_17 = arith.constant 1.000000e+00 : f32
    %103 = vector.broadcast %cst_17 : f32 to vector<4x128xf32>
    %104 = arith.addf %103, %102 : vector<4x128xf32>
    %105 = arith.divf %103, %104 : vector<4x128xf32>
    %106 = math.tanh %94 : vector<4x128xf32>
    %107 = vector.extract_strided_slice %99 {offsets = [0, 32], sizes = [4, 32], strides = [1, 1]} : vector<4x128xf32> to vector<4x32xf32>
    %108 = arith.mulf %107, %72 : vector<4x32xf32>
    %109 = vector.extract_strided_slice %99 {offsets = [0, 0], sizes = [4, 32], strides = [1, 1]} : vector<4x128xf32> to vector<4x32xf32>
    %110 = vector.extract_strided_slice %100 {offsets = [0, 64], sizes = [4, 32], strides = [1, 1]} : vector<4x128xf32> to vector<4x32xf32>
    %111 = arith.mulf %109, %110 : vector<4x32xf32>
    %112 = arith.addf %108, %111 : vector<4x32xf32>
    %113 = vector.extract_strided_slice %105 {offsets = [0, 32], sizes = [4, 32], strides = [1, 1]} : vector<4x128xf32> to vector<4x32xf32>
    %114 = arith.mulf %113, %78 : vector<4x32xf32>
    %115 = vector.extract_strided_slice %105 {offsets = [0, 0], sizes = [4, 32], strides = [1, 1]} : vector<4x128xf32> to vector<4x32xf32>
    %116 = vector.extract_strided_slice %106 {offsets = [0, 64], sizes = [4, 32], strides = [1, 1]} : vector<4x128xf32> to vector<4x32xf32>
    %117 = arith.mulf %115, %116 : vector<4x32xf32>
    %118 = arith.addf %114, %117 : vector<4x32xf32>
    %119 = vector.extract_strided_slice %99 {offsets = [0, 96], sizes = [4, 32], strides = [1, 1]} : vector<4x128xf32> to vector<4x32xf32>
    %120 = math.tanh %112 : vector<4x32xf32>
    %121 = arith.mulf %119, %120 : vector<4x32xf32>
    %122 = vector.extract_strided_slice %105 {offsets = [0, 96], sizes = [4, 32], strides = [1, 1]} : vector<4x128xf32> to vector<4x32xf32>
    %123 = math.tanh %118 : vector<4x32xf32>
    %124 = arith.mulf %122, %123 : vector<4x32xf32>
    %125 = tpu.concatenate %121, %124 in 1 : vector<4x32xf32>, vector<4x32xf32> -> vector<4x64xf32>
    %cst_18 = arith.constant dense<0.000000e+00> : vector<4x256xf32>
    %126 = tpu.matmul %125, %8, %cst_18 {dimension_numbers = #tpu.dot_dimension_numbers<[1], [0], [0], [1], [0, 0, 1, 1], [], []>} : vector<4x64xf32>, vector<64x256xf32>, vector<4x256xf32> -> vector<4x256xf32>
    %127 = vector.extract_strided_slice %7 {offsets = [0, 3, 0], sizes = [4, 1, 128], strides = [1, 1, 1]} : vector<4x8x256xf32> to vector<4x1x128xf32>
    %128 = vector.shape_cast %127 : vector<4x1x128xf32> to vector<4x128xf32>
    %129 = vector.extract_strided_slice %126 {offsets = [0, 0], sizes = [4, 128], strides = [1, 1]} : vector<4x256xf32> to vector<4x128xf32>
    %130 = arith.addf %128, %129 : vector<4x128xf32>
    %131 = vector.extract_strided_slice %7 {offsets = [0, 4, 128], sizes = [4, 1, 128], strides = [1, 1, 1]} : vector<4x8x256xf32> to vector<4x1x128xf32>
    %132 = vector.shape_cast %131 : vector<4x1x128xf32> to vector<4x128xf32>
    %133 = vector.extract_strided_slice %126 {offsets = [0, 128], sizes = [4, 128], strides = [1, 1]} : vector<4x256xf32> to vector<4x128xf32>
    %134 = arith.addf %132, %133 : vector<4x128xf32>
    %135 = arith.negf %130 : vector<4x128xf32>
    %136 = math.exp %135 : vector<4x128xf32>
    %cst_19 = arith.constant 1.000000e+00 : f32
    %137 = vector.broadcast %cst_19 : f32 to vector<4x128xf32>
    %138 = arith.addf %137, %136 : vector<4x128xf32>
    %139 = arith.divf %137, %138 : vector<4x128xf32>
    %140 = math.tanh %130 : vector<4x128xf32>
    %141 = arith.negf %134 : vector<4x128xf32>
    %142 = math.exp %141 : vector<4x128xf32>
    %cst_20 = arith.constant 1.000000e+00 : f32
    %143 = vector.broadcast %cst_20 : f32 to vector<4x128xf32>
    %144 = arith.addf %143, %142 : vector<4x128xf32>
    %145 = arith.divf %143, %144 : vector<4x128xf32>
    %146 = math.tanh %134 : vector<4x128xf32>
    %147 = vector.extract_strided_slice %139 {offsets = [0, 32], sizes = [4, 32], strides = [1, 1]} : vector<4x128xf32> to vector<4x32xf32>
    %148 = arith.mulf %147, %112 : vector<4x32xf32>
    %149 = vector.extract_strided_slice %139 {offsets = [0, 0], sizes = [4, 32], strides = [1, 1]} : vector<4x128xf32> to vector<4x32xf32>
    %150 = vector.extract_strided_slice %140 {offsets = [0, 64], sizes = [4, 32], strides = [1, 1]} : vector<4x128xf32> to vector<4x32xf32>
    %151 = arith.mulf %149, %150 : vector<4x32xf32>
    %152 = arith.addf %148, %151 : vector<4x32xf32>
    %153 = vector.extract_strided_slice %145 {offsets = [0, 32], sizes = [4, 32], strides = [1, 1]} : vector<4x128xf32> to vector<4x32xf32>
    %154 = arith.mulf %153, %118 : vector<4x32xf32>
    %155 = vector.extract_strided_slice %145 {offsets = [0, 0], sizes = [4, 32], strides = [1, 1]} : vector<4x128xf32> to vector<4x32xf32>
    %156 = vector.extract_strided_slice %146 {offsets = [0, 64], sizes = [4, 32], strides = [1, 1]} : vector<4x128xf32> to vector<4x32xf32>
    %157 = arith.mulf %155, %156 : vector<4x32xf32>
    %158 = arith.addf %154, %157 : vector<4x32xf32>
    %159 = vector.extract_strided_slice %139 {offsets = [0, 96], sizes = [4, 32], strides = [1, 1]} : vector<4x128xf32> to vector<4x32xf32>
    %160 = math.tanh %152 : vector<4x32xf32>
    %161 = arith.mulf %159, %160 : vector<4x32xf32>
    %162 = vector.extract_strided_slice %145 {offsets = [0, 96], sizes = [4, 32], strides = [1, 1]} : vector<4x128xf32> to vector<4x32xf32>
    %163 = math.tanh %158 : vector<4x32xf32>
    %164 = arith.mulf %162, %163 : vector<4x32xf32>
    %165 = tpu.concatenate %161, %164 in 1 : vector<4x32xf32>, vector<4x32xf32> -> vector<4x64xf32>
    %cst_21 = arith.constant dense<0.000000e+00> : vector<4x256xf32>
    %166 = tpu.matmul %165, %8, %cst_21 {dimension_numbers = #tpu.dot_dimension_numbers<[1], [0], [0], [1], [0, 0, 1, 1], [], []>} : vector<4x64xf32>, vector<64x256xf32>, vector<4x256xf32> -> vector<4x256xf32>
    %167 = vector.extract_strided_slice %7 {offsets = [0, 4, 0], sizes = [4, 1, 128], strides = [1, 1, 1]} : vector<4x8x256xf32> to vector<4x1x128xf32>
    %168 = vector.shape_cast %167 : vector<4x1x128xf32> to vector<4x128xf32>
    %169 = vector.extract_strided_slice %166 {offsets = [0, 0], sizes = [4, 128], strides = [1, 1]} : vector<4x256xf32> to vector<4x128xf32>
    %170 = arith.addf %168, %169 : vector<4x128xf32>
    %171 = vector.extract_strided_slice %7 {offsets = [0, 3, 128], sizes = [4, 1, 128], strides = [1, 1, 1]} : vector<4x8x256xf32> to vector<4x1x128xf32>
    %172 = vector.shape_cast %171 : vector<4x1x128xf32> to vector<4x128xf32>
    %173 = vector.extract_strided_slice %166 {offsets = [0, 128], sizes = [4, 128], strides = [1, 1]} : vector<4x256xf32> to vector<4x128xf32>
    %174 = arith.addf %172, %173 : vector<4x128xf32>
    %175 = arith.negf %170 : vector<4x128xf32>
    %176 = math.exp %175 : vector<4x128xf32>
    %cst_22 = arith.constant 1.000000e+00 : f32
    %177 = vector.broadcast %cst_22 : f32 to vector<4x128xf32>
    %178 = arith.addf %177, %176 : vector<4x128xf32>
    %179 = arith.divf %177, %178 : vector<4x128xf32>
    %180 = math.tanh %170 : vector<4x128xf32>
    %181 = arith.negf %174 : vector<4x128xf32>
    %182 = math.exp %181 : vector<4x128xf32>
    %cst_23 = arith.constant 1.000000e+00 : f32
    %183 = vector.broadcast %cst_23 : f32 to vector<4x128xf32>
    %184 = arith.addf %183, %182 : vector<4x128xf32>
    %185 = arith.divf %183, %184 : vector<4x128xf32>
    %186 = math.tanh %174 : vector<4x128xf32>
    %187 = vector.extract_strided_slice %179 {offsets = [0, 32], sizes = [4, 32], strides = [1, 1]} : vector<4x128xf32> to vector<4x32xf32>
    %188 = arith.mulf %187, %152 : vector<4x32xf32>
    %189 = vector.extract_strided_slice %179 {offsets = [0, 0], sizes = [4, 32], strides = [1, 1]} : vector<4x128xf32> to vector<4x32xf32>
    %190 = vector.extract_strided_slice %180 {offsets = [0, 64], sizes = [4, 32], strides = [1, 1]} : vector<4x128xf32> to vector<4x32xf32>
    %191 = arith.mulf %189, %190 : vector<4x32xf32>
    %192 = arith.addf %188, %191 : vector<4x32xf32>
    %193 = vector.extract_strided_slice %185 {offsets = [0, 32], sizes = [4, 32], strides = [1, 1]} : vector<4x128xf32> to vector<4x32xf32>
    %194 = arith.mulf %193, %158 : vector<4x32xf32>
    %195 = vector.extract_strided_slice %185 {offsets = [0, 0], sizes = [4, 32], strides = [1, 1]} : vector<4x128xf32> to vector<4x32xf32>
    %196 = vector.extract_strided_slice %186 {offsets = [0, 64], sizes = [4, 32], strides = [1, 1]} : vector<4x128xf32> to vector<4x32xf32>
    %197 = arith.mulf %195, %196 : vector<4x32xf32>
    %198 = arith.addf %194, %197 : vector<4x32xf32>
    %199 = vector.extract_strided_slice %179 {offsets = [0, 96], sizes = [4, 32], strides = [1, 1]} : vector<4x128xf32> to vector<4x32xf32>
    %200 = math.tanh %192 : vector<4x32xf32>
    %201 = arith.mulf %199, %200 : vector<4x32xf32>
    %202 = vector.extract_strided_slice %185 {offsets = [0, 96], sizes = [4, 32], strides = [1, 1]} : vector<4x128xf32> to vector<4x32xf32>
    %203 = math.tanh %198 : vector<4x32xf32>
    %204 = arith.mulf %202, %203 : vector<4x32xf32>
    %205 = tpu.concatenate %201, %204 in 1 : vector<4x32xf32>, vector<4x32xf32> -> vector<4x64xf32>
    %cst_24 = arith.constant dense<0.000000e+00> : vector<4x256xf32>
    %206 = tpu.matmul %205, %8, %cst_24 {dimension_numbers = #tpu.dot_dimension_numbers<[1], [0], [0], [1], [0, 0, 1, 1], [], []>} : vector<4x64xf32>, vector<64x256xf32>, vector<4x256xf32> -> vector<4x256xf32>
    %207 = vector.extract_strided_slice %7 {offsets = [0, 5, 0], sizes = [4, 1, 128], strides = [1, 1, 1]} : vector<4x8x256xf32> to vector<4x1x128xf32>
    %208 = vector.shape_cast %207 : vector<4x1x128xf32> to vector<4x128xf32>
    %209 = vector.extract_strided_slice %206 {offsets = [0, 0], sizes = [4, 128], strides = [1, 1]} : vector<4x256xf32> to vector<4x128xf32>
    %210 = arith.addf %208, %209 : vector<4x128xf32>
    %211 = vector.extract_strided_slice %7 {offsets = [0, 2, 128], sizes = [4, 1, 128], strides = [1, 1, 1]} : vector<4x8x256xf32> to vector<4x1x128xf32>
    %212 = vector.shape_cast %211 : vector<4x1x128xf32> to vector<4x128xf32>
    %213 = vector.extract_strided_slice %206 {offsets = [0, 128], sizes = [4, 128], strides = [1, 1]} : vector<4x256xf32> to vector<4x128xf32>
    %214 = arith.addf %212, %213 : vector<4x128xf32>
    %215 = arith.negf %210 : vector<4x128xf32>
    %216 = math.exp %215 : vector<4x128xf32>
    %cst_25 = arith.constant 1.000000e+00 : f32
    %217 = vector.broadcast %cst_25 : f32 to vector<4x128xf32>
    %218 = arith.addf %217, %216 : vector<4x128xf32>
    %219 = arith.divf %217, %218 : vector<4x128xf32>
    %220 = math.tanh %210 : vector<4x128xf32>
    %221 = arith.negf %214 : vector<4x128xf32>
    %222 = math.exp %221 : vector<4x128xf32>
    %cst_26 = arith.constant 1.000000e+00 : f32
    %223 = vector.broadcast %cst_26 : f32 to vector<4x128xf32>
    %224 = arith.addf %223, %222 : vector<4x128xf32>
    %225 = arith.divf %223, %224 : vector<4x128xf32>
    %226 = math.tanh %214 : vector<4x128xf32>
    %227 = vector.extract_strided_slice %219 {offsets = [0, 32], sizes = [4, 32], strides = [1, 1]} : vector<4x128xf32> to vector<4x32xf32>
    %228 = arith.mulf %227, %192 : vector<4x32xf32>
    %229 = vector.extract_strided_slice %219 {offsets = [0, 0], sizes = [4, 32], strides = [1, 1]} : vector<4x128xf32> to vector<4x32xf32>
    %230 = vector.extract_strided_slice %220 {offsets = [0, 64], sizes = [4, 32], strides = [1, 1]} : vector<4x128xf32> to vector<4x32xf32>
    %231 = arith.mulf %229, %230 : vector<4x32xf32>
    %232 = arith.addf %228, %231 : vector<4x32xf32>
    %233 = vector.extract_strided_slice %225 {offsets = [0, 32], sizes = [4, 32], strides = [1, 1]} : vector<4x128xf32> to vector<4x32xf32>
    %234 = arith.mulf %233, %198 : vector<4x32xf32>
    %235 = vector.extract_strided_slice %225 {offsets = [0, 0], sizes = [4, 32], strides = [1, 1]} : vector<4x128xf32> to vector<4x32xf32>
    %236 = vector.extract_strided_slice %226 {offsets = [0, 64], sizes = [4, 32], strides = [1, 1]} : vector<4x128xf32> to vector<4x32xf32>
    %237 = arith.mulf %235, %236 : vector<4x32xf32>
    %238 = arith.addf %234, %237 : vector<4x32xf32>
    %239 = vector.extract_strided_slice %219 {offsets = [0, 96], sizes = [4, 32], strides = [1, 1]} : vector<4x128xf32> to vector<4x32xf32>
    %240 = math.tanh %232 : vector<4x32xf32>
    %241 = arith.mulf %239, %240 : vector<4x32xf32>
    %242 = vector.extract_strided_slice %225 {offsets = [0, 96], sizes = [4, 32], strides = [1, 1]} : vector<4x128xf32> to vector<4x32xf32>
    %243 = math.tanh %238 : vector<4x32xf32>
    %244 = arith.mulf %242, %243 : vector<4x32xf32>
    %245 = tpu.concatenate %241, %244 in 1 : vector<4x32xf32>, vector<4x32xf32> -> vector<4x64xf32>
    %cst_27 = arith.constant dense<0.000000e+00> : vector<4x256xf32>
    %246 = tpu.matmul %245, %8, %cst_27 {dimension_numbers = #tpu.dot_dimension_numbers<[1], [0], [0], [1], [0, 0, 1, 1], [], []>} : vector<4x64xf32>, vector<64x256xf32>, vector<4x256xf32> -> vector<4x256xf32>
    %247 = vector.extract_strided_slice %7 {offsets = [0, 6, 0], sizes = [4, 1, 128], strides = [1, 1, 1]} : vector<4x8x256xf32> to vector<4x1x128xf32>
    %248 = vector.shape_cast %247 : vector<4x1x128xf32> to vector<4x128xf32>
    %249 = vector.extract_strided_slice %246 {offsets = [0, 0], sizes = [4, 128], strides = [1, 1]} : vector<4x256xf32> to vector<4x128xf32>
    %250 = arith.addf %248, %249 : vector<4x128xf32>
    %251 = vector.extract_strided_slice %7 {offsets = [0, 1, 128], sizes = [4, 1, 128], strides = [1, 1, 1]} : vector<4x8x256xf32> to vector<4x1x128xf32>
    %252 = vector.shape_cast %251 : vector<4x1x128xf32> to vector<4x128xf32>
    %253 = vector.extract_strided_slice %246 {offsets = [0, 128], sizes = [4, 128], strides = [1, 1]} : vector<4x256xf32> to vector<4x128xf32>
    %254 = arith.addf %252, %253 : vector<4x128xf32>
    %255 = arith.negf %250 : vector<4x128xf32>
    %256 = math.exp %255 : vector<4x128xf32>
    %cst_28 = arith.constant 1.000000e+00 : f32
    %257 = vector.broadcast %cst_28 : f32 to vector<4x128xf32>
    %258 = arith.addf %257, %256 : vector<4x128xf32>
    %259 = arith.divf %257, %258 : vector<4x128xf32>
    %260 = math.tanh %250 : vector<4x128xf32>
    %261 = arith.negf %254 : vector<4x128xf32>
    %262 = math.exp %261 : vector<4x128xf32>
    %cst_29 = arith.constant 1.000000e+00 : f32
    %263 = vector.broadcast %cst_29 : f32 to vector<4x128xf32>
    %264 = arith.addf %263, %262 : vector<4x128xf32>
    %265 = arith.divf %263, %264 : vector<4x128xf32>
    %266 = math.tanh %254 : vector<4x128xf32>
    %267 = vector.extract_strided_slice %259 {offsets = [0, 32], sizes = [4, 32], strides = [1, 1]} : vector<4x128xf32> to vector<4x32xf32>
    %268 = arith.mulf %267, %232 : vector<4x32xf32>
    %269 = vector.extract_strided_slice %259 {offsets = [0, 0], sizes = [4, 32], strides = [1, 1]} : vector<4x128xf32> to vector<4x32xf32>
    %270 = vector.extract_strided_slice %260 {offsets = [0, 64], sizes = [4, 32], strides = [1, 1]} : vector<4x128xf32> to vector<4x32xf32>
    %271 = arith.mulf %269, %270 : vector<4x32xf32>
    %272 = arith.addf %268, %271 : vector<4x32xf32>
    %273 = vector.extract_strided_slice %265 {offsets = [0, 32], sizes = [4, 32], strides = [1, 1]} : vector<4x128xf32> to vector<4x32xf32>
    %274 = arith.mulf %273, %238 : vector<4x32xf32>
    %275 = vector.extract_strided_slice %265 {offsets = [0, 0], sizes = [4, 32], strides = [1, 1]} : vector<4x128xf32> to vector<4x32xf32>
    %276 = vector.extract_strided_slice %266 {offsets = [0, 64], sizes = [4, 32], strides = [1, 1]} : vector<4x128xf32> to vector<4x32xf32>
    %277 = arith.mulf %275, %276 : vector<4x32xf32>
    %278 = arith.addf %274, %277 : vector<4x32xf32>
    %279 = vector.extract_strided_slice %259 {offsets = [0, 96], sizes = [4, 32], strides = [1, 1]} : vector<4x128xf32> to vector<4x32xf32>
    %280 = math.tanh %272 : vector<4x32xf32>
    %281 = arith.mulf %279, %280 : vector<4x32xf32>
    %282 = vector.extract_strided_slice %265 {offsets = [0, 96], sizes = [4, 32], strides = [1, 1]} : vector<4x128xf32> to vector<4x32xf32>
    %283 = math.tanh %278 : vector<4x32xf32>
    %284 = arith.mulf %282, %283 : vector<4x32xf32>
    %285 = tpu.concatenate %281, %284 in 1 : vector<4x32xf32>, vector<4x32xf32> -> vector<4x64xf32>
    %cst_30 = arith.constant dense<0.000000e+00> : vector<4x256xf32>
    %286 = tpu.matmul %285, %8, %cst_30 {dimension_numbers = #tpu.dot_dimension_numbers<[1], [0], [0], [1], [0, 0, 1, 1], [], []>} : vector<4x64xf32>, vector<64x256xf32>, vector<4x256xf32> -> vector<4x256xf32>
    %287 = vector.extract_strided_slice %7 {offsets = [0, 7, 0], sizes = [4, 1, 128], strides = [1, 1, 1]} : vector<4x8x256xf32> to vector<4x1x128xf32>
    %288 = vector.shape_cast %287 : vector<4x1x128xf32> to vector<4x128xf32>
    %289 = vector.extract_strided_slice %286 {offsets = [0, 0], sizes = [4, 128], strides = [1, 1]} : vector<4x256xf32> to vector<4x128xf32>
    %290 = arith.addf %288, %289 : vector<4x128xf32>
    %291 = vector.extract_strided_slice %7 {offsets = [0, 0, 128], sizes = [4, 1, 128], strides = [1, 1, 1]} : vector<4x8x256xf32> to vector<4x1x128xf32>
    %292 = vector.shape_cast %291 : vector<4x1x128xf32> to vector<4x128xf32>
    %293 = vector.extract_strided_slice %286 {offsets = [0, 128], sizes = [4, 128], strides = [1, 1]} : vector<4x256xf32> to vector<4x128xf32>
    %294 = arith.addf %292, %293 : vector<4x128xf32>
    %295 = arith.negf %290 : vector<4x128xf32>
    %296 = math.exp %295 : vector<4x128xf32>
    %cst_31 = arith.constant 1.000000e+00 : f32
    %297 = vector.broadcast %cst_31 : f32 to vector<4x128xf32>
    %298 = arith.addf %297, %296 : vector<4x128xf32>
    %299 = arith.divf %297, %298 : vector<4x128xf32>
    %300 = math.tanh %290 : vector<4x128xf32>
    %301 = arith.negf %294 : vector<4x128xf32>
    %302 = math.exp %301 : vector<4x128xf32>
    %cst_32 = arith.constant 1.000000e+00 : f32
    %303 = vector.broadcast %cst_32 : f32 to vector<4x128xf32>
    %304 = arith.addf %303, %302 : vector<4x128xf32>
    %305 = arith.divf %303, %304 : vector<4x128xf32>
    %306 = math.tanh %294 : vector<4x128xf32>
    %307 = vector.extract_strided_slice %299 {offsets = [0, 32], sizes = [4, 32], strides = [1, 1]} : vector<4x128xf32> to vector<4x32xf32>
    %308 = arith.mulf %307, %272 : vector<4x32xf32>
    %309 = vector.extract_strided_slice %299 {offsets = [0, 0], sizes = [4, 32], strides = [1, 1]} : vector<4x128xf32> to vector<4x32xf32>
    %310 = vector.extract_strided_slice %300 {offsets = [0, 64], sizes = [4, 32], strides = [1, 1]} : vector<4x128xf32> to vector<4x32xf32>
    %311 = arith.mulf %309, %310 : vector<4x32xf32>
    %312 = arith.addf %308, %311 : vector<4x32xf32>
    %313 = vector.extract_strided_slice %305 {offsets = [0, 32], sizes = [4, 32], strides = [1, 1]} : vector<4x128xf32> to vector<4x32xf32>
    %314 = arith.mulf %313, %278 : vector<4x32xf32>
    %315 = vector.extract_strided_slice %305 {offsets = [0, 0], sizes = [4, 32], strides = [1, 1]} : vector<4x128xf32> to vector<4x32xf32>
    %316 = vector.extract_strided_slice %306 {offsets = [0, 64], sizes = [4, 32], strides = [1, 1]} : vector<4x128xf32> to vector<4x32xf32>
    %317 = arith.mulf %315, %316 : vector<4x32xf32>
    %318 = arith.addf %314, %317 : vector<4x32xf32>
    %319 = vector.extract_strided_slice %299 {offsets = [0, 96], sizes = [4, 32], strides = [1, 1]} : vector<4x128xf32> to vector<4x32xf32>
    %320 = math.tanh %312 : vector<4x32xf32>
    %321 = arith.mulf %319, %320 : vector<4x32xf32>
    %322 = vector.extract_strided_slice %305 {offsets = [0, 96], sizes = [4, 32], strides = [1, 1]} : vector<4x128xf32> to vector<4x32xf32>
    %323 = math.tanh %318 : vector<4x32xf32>
    %324 = arith.mulf %322, %323 : vector<4x32xf32>
    %325 = tpu.concatenate %321, %324 in 1 : vector<4x32xf32>, vector<4x32xf32> -> vector<4x64xf32>
    %c0_33 = arith.constant 0 : index
    %c0_34 = arith.constant 0 : index
    %326 = vector.load %arg4[%c0_33, %c0_34] : memref<64x32xf32, #tpu.memory_space<vmem>>, vector<64x32xf32>
    %cst_35 = arith.constant dense<0.000000e+00> : vector<4x32xf32>
    %327 = tpu.matmul %325, %326, %cst_35 {dimension_numbers = #tpu.dot_dimension_numbers<[1], [0], [0], [1], [0, 0, 1, 1], [], []>} : vector<4x64xf32>, vector<64x32xf32>, vector<4x32xf32> -> vector<4x32xf32>
    %c0_36 = arith.constant 0 : index
    %c0_37 = arith.constant 0 : index
    %328 = vector.load %arg5[%c0_36, %c0_37] : memref<1x32xf32, #tpu.memory_space<vmem>>, vector<1x32xf32>
    %329 = vector.broadcast %328 : vector<1x32xf32> to vector<4x32xf32>
    %330 = arith.addf %327, %329 : vector<4x32xf32>
    %cst_38 = arith.constant 0.000000e+00 : f32
    %331 = vector.broadcast %cst_38 : f32 to vector<4x32xf32>
    %332 = arith.maximumf %330, %331 : vector<4x32xf32>
    %c0_39 = arith.constant 0 : index
    %c0_40 = arith.constant 0 : index
    %333 = vector.load %arg6[%c0_39, %c0_40] : memref<32x5xf32, #tpu.memory_space<vmem>>, vector<32x5xf32>
    %cst_41 = arith.constant dense<0.000000e+00> : vector<4x5xf32>
    %334 = tpu.matmul %332, %333, %cst_41 {dimension_numbers = #tpu.dot_dimension_numbers<[1], [0], [0], [1], [0, 0, 1, 1], [], []>} : vector<4x32xf32>, vector<32x5xf32>, vector<4x5xf32> -> vector<4x5xf32>
    %c0_42 = arith.constant 0 : index
    %c0_43 = arith.constant 0 : index
    %335 = vector.load %arg7[%c0_42, %c0_43] : memref<1x5xf32, #tpu.memory_space<vmem>>, vector<1x5xf32>
    %336 = vector.broadcast %335 : vector<1x5xf32> to vector<4x5xf32>
    %337 = arith.addf %334, %336 : vector<4x5xf32>
    %c0_44 = arith.constant 0 : index
    %c0_45 = arith.constant 0 : index
    %338 = vector.load %arg8[%c0_44, %c0_45] : memref<4x5xf32, #tpu.memory_space<vmem>>, vector<4x5xf32>
    tpu.vector_store %arg8[%c0_44, %c0_45], %337 {strides = array<i32>} : memref<4x5xf32, #tpu.memory_space<vmem>>, vector<4x5xf32>,
    return
  }
}

</mosaic_0001>

<bundles_post_ra>
// kernel: tpu_custom_call.1
= control target key start
LH: loop header
LB: loop body
LE: loop exit
PB: predicated region body
PF: predicated region fallthrough
CT: control target
= control target key end

     0   :  { %13 = vsyncpa [#allocation3], 0  ;;  %s5079_s0 = inlined_call_operand.hbm [shape: f32[4,8,16], index: 0, kind: input, shape index: {}]   ;;  %s5080_s1 = inlined_call_operand.hbm [shape: f32[16,256], index: 1, kind: input, shape index: {}]   ;;  %s5081_s2 = inlined_call_operand.vmem [shape: f32[1,256], index: 2, kind: input, shape index: {}]   ;;  %s5082_s3 = inlined_call_operand.vmem [shape: f32[64,256], index: 3, kind: input, shape index: {}]   ;;  %s5083_s4 = inlined_call_operand.vmem [shape: f32[64,32], index: 4, kind: input, shape index: {}]   ;;  %s5084_s5 = inlined_call_operand.vmem [shape: f32[1,32], index: 5, kind: input, shape index: {}]   ;;  %s5085_s6 = inlined_call_operand.vmem [shape: f32[32,5], index: 6, kind: input, shape index: {}]   ;;  %s5086_s7 = inlined_call_operand.vmem [shape: f32[1,5], index: 7, kind: input, shape index: {}]   ;;  %s5087_s8 = inlined_call_operand.hbm [shape: f32[4,5], index: 8, kind: output, shape index: {}]  }
   0x1   :  { %14 = vsyncpa [#allocation6], 0 }
   0x2   :  { %15 = vsyncpa [#allocation4], 0  ;;  %s3900_s27 = smov [#allocation2]   ;;  %s3828_s9 = scalar_lea.hbm %s5079_s0, 512 }
   0x3   :  { %s21_s28 = sshll.u32 %s3900_s27, 4  ;;  %p3829_p0 = scmp.ne.s32.totalorder %s5079_s0, %s3828_s9  ;;  %s22_s28 = int_to_ptr.vmem [resolvable:$true] %s21_s28 }
   0x4   :  { %p3832_p1 = scmp.lt.u32.totalorder %s3828_s9, %s5079_s0 }
   0x6   :  { %p3834_p2 = pnand %p3832_p1, %p3829_p0 }
   0x8   :  { %3837 = shalt.err (!%p3834_p2)
}
   0x9   :  { %s3838_s14 = scalar_lea.vmem %s22_s28, 512  ;;  %p3843_p4 = scmp.lt.s32.totalorder %s22_s28, %s22_s28 }
   0xa   :  { %p3839_p3 = scmp.ne.s32.totalorder %s22_s28, %s3838_s14  ;;  %p3844_p5 = scmp.lt.s32.totalorder %s3838_s14, %s3838_s14 }
   0xc   :  { %p3845_p6 = por %p3844_p5, %p3843_p4 }
   0xe   :  { %p3846_p7 = pnand %p3845_p6, %p3839_p3 }
  0x10   :  { %3849 = shalt.err (!%p3846_p7)
}
  0x11   :  { %s3901_s15 = smov 128   ;;  %s3902_s16 = smov 8  }
  0x12   :  { %27 = dma.hbm_to_vmem [thread:$0]  %s5079_s0, 512, %s22_s28, [#allocation3], %s3901_s15, %s3901_s15, %s3902_s16  }
  0x13   :  { %s3903_s19 = smov [#allocation5]   ;;  %s3850_s23 = scalar_lea.hbm %s5080_s1, 512 }
  0x14   :  { %s33_s20 = sshll.u32 %s3903_s19, 4  ;;  %p3851_p8 = scmp.ne.s32.totalorder %s5080_s1, %s3850_s23  ;;  %s34_s20 = int_to_ptr.vmem [resolvable:$true] %s33_s20 }
  0x15   :  { %p3854_p9 = scmp.lt.u32.totalorder %s3850_s23, %s5080_s1 }
  0x17   :  { %p3856_p10 = pnand %p3854_p9, %p3851_p8 }
  0x19   :  { %3859 = shalt.err (!%p3856_p10)
}
  0x1a   :  { %s3860_s29 = scalar_lea.vmem %s34_s20, 512  ;;  %p3865_p12 = scmp.lt.s32.totalorder %s34_s20, %s34_s20 }
  0x1b   :  { %p3861_p11 = scmp.ne.s32.totalorder %s34_s20, %s3860_s29  ;;  %p3866_p13 = scmp.lt.s32.totalorder %s3860_s29, %s3860_s29 }
  0x1d   :  { %p3867_p0 = por %p3866_p13, %p3865_p12 }
  0x1f   :  { %p3868_p1 = pnand %p3867_p0, %p3861_p11 }
  0x21   :  { %3871 = shalt.err (!%p3868_p1)
}
  0x22   :  { %s3904_s0 = smov 256   ;;  %s3905_s28 = smov 16  }
  0x23   :  { %39 = dma.hbm_to_vmem [thread:$0]  %s5080_s1, 512, %s34_s20, [#allocation6], %s3904_s0, %s3904_s0, %s3905_s28  }
  0x24   :  { %3894 = dma.done.wait [#allocation3], 512  }
  0x25   :  { %3895 = vsyncadd [#allocation3], 4294966784 }
  0x26   :  { %3896 = dma.done.wait [#allocation6], 512  }
  0x27   :  { %3897 = vsyncadd [#allocation6], 4294966784  ;;  %v3906_v0 = vmov 0.0   ;;  %v63_v1 = vld [vmem:[#allocation5 + $0x8] sm:$0xff]  ;;  %v65_v2 = vld [vmem:[#allocation5 + $0x18] sm:$0xff]  ;;  %vm78_vm0 = vcmask 130048   ;;  %v68_v11 = vlaneseq }
  0x28   :  { %155 = vmatprep.mubr.f32.mxu0 %v3906_v0  ;;  %488 = vmatprep.mubr.f32.mxu1 %v3906_v0  ;;  %v62_v3 = vld [vmem:[#allocation5] sm:$0xff]  ;;  %v3170_v4 = vpack.c.bf16 %v65_v2, %v63_v1  ;;  %v64_v5 = vld [vmem:[#allocation5 + $0x10] sm:$0xff]  ;;  %v59_v8 = vld [vmem:[#allocation2 + $0x8] sm:$0xff]  ;;  %s3908_s11 = smov 32   ;;  %vm393_vm1 = vcmask 1041409   ;;  %vm399_vm2 = vcmask 1043459  }
  0x29   :  { %v3172_v6 = vpack.c.bf16 %v64_v5, %v62_v3  ;;  %v58_v7 = vld [vmem:[#allocation2] sm:$0xff]  ;;  %v60_v9 = vld [vmem:[#allocation2 + $0x10] sm:$0xff]  ;;  %v61_v10 = vld [vmem:[#allocation2 + $0x18] sm:$0xff]  ;;  %v69_v12 = vshrl.u32 %v68_v11, 7  ;;  %vm396_vm3 = vcmask 1042434   ;;  %vm418_vm4 = vcmask 261120  }
  0x2a   :  { %3171 = vmatprep.subr.bf16.mxu0 %v3170_v4  ;;  %v66_v14 = vld [vmem:[%s5081_s2] sm:$0x3]  ;;  %s3907_s2 = smov 64   ;;  %vm420_vm5 = vcmask 523264   ;;  %vm745_vm6 = vcmask 1044484   ;;  %vm1090_vm7 = vcmask 1045509  }
  0x2b   :  { %3173 = vmatpush1.bf16.msra.mxu0 %v3172_v6  ;;  %v70_v13 = vsub.s32 0, %v69_v12  ;;  %v74_v15 = vsub.s32 1, %v69_v12  ;;  %vm1434_vm8 = vcmask 1046534   ;;  %vm1778_vm9 = vcmask 1047559   ;;  %s3911_s21 = smov [#allocation7]  }
  0x2c   :  { %vm2149_vm10 = vcmask 1042432   ;;  %vm2501_vm11 = vcmask 1041408   ;;  %vm3910_vm12 = vmmov 0   ;;  %vm2868_vm13 = vcmask 1040384   ;;  %s3037_s22 = sshll.u32 %s3911_s21, 4  ;;  %s3038_s22 = int_to_ptr.vmem [resolvable:$true] %s3037_s22 }
  0x2d   :  { %v71_v16 = vrot.slane %v66_v14, %v70_v13  ;;  %v75_v17 = vrot.slane %v66_v14, %v74_v15  ;;  %vm3029_vm14 = vcmask 35840   ;;  %p3877_p3 = scmp.lt.s32.totalorder %s3038_s22, %s3038_s22 }
  0x2e   :  { %3047 = vmatmul.mubr.msk.f32.vlgmr.msra.gmra.mrb[0].mxu0 %vm78_vm0, %v58_v7 }
  0x2f   :  { %161 = vmatprep.mubr.f32.mxu0 %v3906_v0 }
  0x32   :  { %3048 = vmatmul.mubr.msk.f32.gmra.mrb[2].mxu0 %vm78_vm0, %v59_v8 }
  0x33   :  { %167 = vmatprep.mubr.f32.mxu0 %v3906_v0 }
  0x36   :  { %3049 = vmatmul.mubr.msk.f32.gmra.mrb[4].mxu0 %vm78_vm0, %v60_v9 }
  0x37   :  { %173 = vmatprep.mubr.f32.mxu0 %v3906_v0 }
  0x3a   :  { %3050 = vmatmul.mubr.msk.f32.gmra.mrb[6].mxu0 %vm78_vm0, %v61_v10 }
  0x3b   :  { %833 = vmatprep.mubr.f32.mxu0 %v3906_v0 }
 0x101   :  { %v157_v18 = vpop.f32.mrb[0].mxu0 }
 0x102   :  { %v3990_v19 = vadd.f32 %v157_v18, %v71_v16  ;;  %v159_v20 = vpop.f32.mrb[1].mxu0 }
 0x103   :  { %v3992_v21 = vadd.f32 %v159_v20, %v75_v17 }
 0x104   :  { %3316 = vtanh.f32 %v3990_v19  ;;  %v3051_v42 = vmul.f32 -1.442695, %v3990_v19 }
 0x105   :  { %v163_v22 = vpop.f32.mrb[2].mxu0  ;;  %3318 = vtanh.f32 %v3992_v21  ;;  %v3055_v43 = vmul.f32 -1.442695, %v3992_v21 }
 0x106   :  { %v3996_v23 = vadd.f32 %v163_v22, %v71_v16  ;;  %v165_v24 = vpop.f32.mrb[3].mxu0 }
 0x107   :  { %v3998_v25 = vadd.f32 %v165_v24, %v75_v17 }
 0x108   :  { %3320 = vtanh.f32 %v3996_v23  ;;  %v3052_v44 = vmul.f32 -1.442695, %v3996_v23 }
 0x109   :  { %v169_v26 = vpop.f32.mrb[4].mxu0  ;;  %3322 = vtanh.f32 %v3998_v25  ;;  %v3056_v45 = vmul.f32 -1.442695, %v3998_v25 }
 0x10a   :  { %v4002_v27 = vadd.f32 %v169_v26, %v71_v16  ;;  %v171_v28 = vpop.f32.mrb[5].mxu0 }
 0x10b   :  { %v4004_v29 = vadd.f32 %v171_v28, %v75_v17 }
 0x10c   :  { %3324 = vtanh.f32 %v4002_v27  ;;  %v3053_v46 = vmul.f32 -1.442695, %v4002_v27 }
 0x10d   :  { %v175_v30 = vpop.f32.mrb[6].mxu0  ;;  %3326 = vtanh.f32 %v4004_v29  ;;  %v3057_v47 = vmul.f32 -1.442695, %v4004_v29 }
 0x10e   :  { %v3317_v31 = vpop.eup %3316  ;;  %v4008_v32 = vadd.f32 %v175_v30, %v71_v16  ;;  %v177_v33 = vpop.f32.mrb[7].mxu0 }
 0x10f   :  { %v3319_v34 = vpop.eup %3318  ;;  %v4010_v35 = vadd.f32 %v177_v33, %v75_v17  ;;  %260 = vrot.lane.b32.xlu1 %v3317_v31, %s3907_s2 }
 0x110   :  { %304 = vrot.lane.b32.xlu0 %v3319_v34, %s3907_s2  ;;  %3328 = vtanh.f32 %v4008_v32  ;;  %v3054_v50 = vmul.f32 -1.442695, %v4008_v32 }
 0x111   :  { %3330 = vtanh.f32 %v4010_v35  ;;  %v3058_v48 = vmul.f32 -1.442695, %v4010_v35 }
 0x112   :  { %v3321_v36 = vpop.eup %3320  ;;  %3332 = vpow2.f32 %v3051_v42 }
 0x113   :  { %v3323_v37 = vpop.eup %3322  ;;  %3334 = vpow2.f32 %v3055_v43 }
 0x114   :  { %262 = vrot.lane.b32.xlu0 %v3321_v36, %s3907_s2  ;;  %306 = vrot.lane.b32.xlu1 %v3323_v37, %s3907_s2  ;;  %3336 = vpow2.f32 %v3052_v44 }
 0x115   :  { %3338 = vpow2.f32 %v3056_v45 }
 0x116   :  { %v3325_v38 = vpop.eup %3324  ;;  %3340 = vpow2.f32 %v3053_v46 }
 0x117   :  { %v3327_v39 = vpop.eup %3326  ;;  %3342 = vpow2.f32 %v3057_v47 }
 0x118   :  { %308 = vrot.lane.b32.xlu0 %v3327_v39, %s3907_s2  ;;  %264 = vrot.lane.b32.xlu1 %v3325_v38, %s3907_s2  ;;  %3344 = vpow2.f32 %v3058_v48 }
 0x119   :  { %3346 = vpow2.f32 %v3054_v50 }
 0x11a   :  { %v3329_v40 = vpop.eup %3328 }
 0x11b   :  { %v3331_v41 = vpop.eup %3330 }
 0x11c   :  { %266 = vrot.lane.b32.xlu0 %v3329_v40, %s3907_s2  ;;  %310 = vrot.lane.b32.xlu1 %v3331_v41, %s3907_s2  ;;  %v3333_v49 = vpop.eup %3332 }
 0x11d   :  { %v208_v51 = vadd.f32 1.0, %v3333_v49  ;;  %v3335_v52 = vpop.eup %3334 }
 0x11e   :  { %v3337_v53 = vpop.eup %3336  ;;  %v236_v54 = vadd.f32 1.0, %v3335_v52 }
 0x11f   :  { %3348 = vrcp.f32 %v208_v51  ;;  %v3339_v55 = vpop.eup %3338  ;;  %v209_v56 = vadd.f32 1.0, %v3337_v53 }
 0x120   :  { %v3341_v57 = vpop.eup %3340  ;;  %3350 = vrcp.f32 %v236_v54  ;;  %v237_v58 = vadd.f32 1.0, %v3339_v55 }
 0x121   :  { %v3343_v59 = vpop.eup %3342  ;;  %3352 = vrcp.f32 %v209_v56  ;;  %v210_v60 = vadd.f32 1.0, %v3341_v57 }
 0x122   :  { %v3345_v61 = vpop.eup %3344  ;;  %3354 = vrcp.f32 %v237_v58  ;;  %v238_v62 = vadd.f32 1.0, %v3343_v59 }
 0x123   :  { %v3347_v63 = vpop.eup %3346  ;;  %3356 = vrcp.f32 %v210_v60  ;;  %v239_v1 = vadd.f32 1.0, %v3345_v61 }
 0x124   :  { %3358 = vrcp.f32 %v238_v62  ;;  %v211_v6 = vadd.f32 1.0, %v3347_v63 }
 0x125   :  { %3360 = vrcp.f32 %v239_v1  ;;  %v181_v1 = vld [vmem:[%s5082_s3 + $0x8] sm:$0xff] }
 0x126   :  { %3362 = vrcp.f32 %v211_v6  ;;  %v182_v6 = vld [vmem:[%s5082_s3 + $0x10] sm:$0xff] }
 0x129   :  { %v4030_v2 = vpop.eup %3348 }
 0x12a   :  { %v4034_v7 = vpop.eup %3350  ;;  %v252_v34 = vmul.f32 0.0, %v4030_v2 }
 0x12b   :  { %v4036_v8 = vpop.eup %3352  ;;  %v296_v38 = vmul.f32 0.0, %v4034_v7 }
 0x12c   :  { %v4041_v13 = vpop.eup %3354  ;;  %v253_v40 = vmul.f32 0.0, %v4036_v8 }
 0x12d   :  { %v4044_v14 = vpop.eup %3356  ;;  %v297_v44 = vmul.f32 0.0, %v4041_v13 }
 0x12e   :  { %v4048_v20 = vpop.eup %3358  ;;  %v254_v45 = vmul.f32 0.0, %v4044_v14 }
 0x12f   :  { %v4052_v22 = vpop.eup %3360  ;;  %v298_v50 = vmul.f32 0.0, %v4048_v20 }
 0x130   :  { %v4058_v31 = vpop.eup %3362  ;;  %v299_v51 = vmul.f32 0.0, %v4052_v22 }
 0x131   :  { %v255_v57 = vmul.f32 0.0, %v4058_v31 }
 0x181   :  { %v261_v3 = vpop.permute.xlu1 %260 }
 0x182   :  { %v272_v4 = vmul.f32 %v4030_v2, %v261_v3  ;;  %v305_v5 = vpop.permute.xlu0 %304  ;;  %v183_v3 = vld [vmem:[%s5082_s3 + $0x18] sm:$0xff] }
 0x183   :  { %v316_v9 = vmul.f32 %v4034_v7, %v305_v5  ;;  %v4108_v5 = vpack.c.bf16 %v183_v3, %v181_v1 }
 0x184   :  { %280 = vrot.lane.b32.xlu1 %v272_v4, %s3908_s11  ;;  %v180_v4 = vld [vmem:[%s5082_s3] sm:$0xff] }
 0x185   :  { %3175 = vmatprep.subr.bf16.mxu1 %v4108_v5  ;;  %3191 = vmatprep.subr.bf16.mxu0 %v4108_v5 }
 0x186   :  { %v263_v10 = vpop.permute.xlu0 %262  ;;  %v307_v11 = vpop.permute.xlu1 %306 }
 0x187   :  { %v273_v12 = vmul.f32 %v4036_v8, %v263_v10  ;;  %v317_v17 = vmul.f32 %v4041_v13, %v307_v11  ;;  %v187_v10 = vld [vmem:[%s5082_s3 + $0x38] sm:$0xff]  ;;  %v4119_v11 = vpack.c.bf16 %v182_v6, %v180_v4 }
 0x188   :  { %324 = vrot.lane.b32.xlu1 %v316_v9, %s3908_s11  ;;  %v185_v9 = vld [vmem:[%s5082_s3 + $0x28] sm:$0xff] }
 0x189   :  { %282 = vrot.lane.b32.xlu0 %v273_v12, %s3908_s11  ;;  %v4121_v12 = vpack.c.bf16 %v187_v10, %v185_v9  ;;  %3177 = vmatpush1.bf16.msra.mxu1 %v4119_v11 }
 0x18a   :  { %v309_v15 = vpop.permute.xlu0 %308  ;;  %v265_v16 = vpop.permute.xlu1 %264  ;;  %3193 = vmatpush1.bf16.msra.mxu0 %v4119_v11 }
 0x18b   :  { %v274_v18 = vmul.f32 %v4044_v14, %v265_v16  ;;  %v318_v26 = vmul.f32 %v4048_v20, %v309_v15  ;;  %v184_v15 = vld [vmem:[%s5082_s3 + $0x20] sm:$0xff]  ;;  %v186_v16 = vld [vmem:[%s5082_s3 + $0x30] sm:$0xff]  ;;  %3179 = vmatprep.subr.bf16.mxu1 %v4121_v12  ;;  %3195 = vmatprep.subr.bf16.mxu0 %v4121_v12 }
 0x18d   :  { %326 = vrot.lane.b32.xlu0 %v317_v17, %s3908_s11  ;;  %284 = vrot.lane.b32.xlu1 %v274_v18, %s3908_s11  ;;  %v189_v17 = vld [vmem:[%s5082_s3 + $0x48] sm:$0xff] }
 0x18e   :  { %v311_v24 = vpop.permute.xlu1 %310  ;;  %v267_v30 = vpop.permute.xlu0 %266 }
 0x18f   :  { %v319_v28 = vmul.f32 %v4052_v22, %v311_v24  ;;  %v275_v33 = vmul.f32 %v4058_v31, %v267_v30  ;;  %v191_v24 = vld [vmem:[%s5082_s3 + $0x58] sm:$0xff] }
 0x190   :  { %v4143_v30 = vpack.c.bf16 %v191_v24, %v189_v17 }
 0x191   :  { %328 = vrot.lane.b32.xlu0 %v318_v26, %s3908_s11  ;;  %330 = vrot.lane.b32.xlu1 %v319_v28, %s3908_s11  ;;  %v4139_v28 = vpack.c.bf16 %v186_v16, %v184_v15 }
 0x193   :  { %3181 = vmatpush1.bf16.msra.mxu1 %v4139_v28  ;;  %3197 = vmatpush1.bf16.msra.mxu0 %v4139_v28 }
 0x194   :  { %3183 = vmatprep.subr.bf16.mxu1 %v4143_v30  ;;  %3199 = vmatprep.subr.bf16.mxu0 %v4143_v30 }
 0x195   :  { %286 = vrot.lane.b32.xlu0 %v275_v33, %s3908_s11  ;;  %v188_v33 = vld [vmem:[%s5082_s3 + $0x40] sm:$0xff] }
 0x1f6   :  { %v281_v36 = vpop.permute.xlu1 %280 }
 0x1f7   :  { %v4063_v37 = vadd.f32 %v281_v36, %v252_v34  ;;  %v190_v34 = vld [vmem:[%s5082_s3 + $0x50] sm:$0xff] }
 0x1f9   :  { %3364 = vtanh.f32 %v4063_v37 }
 0x1fa   :  { %v325_v39 = vpop.permute.xlu1 %324 }
 0x1fb   :  { %v4068_v41 = vadd.f32 %v325_v39, %v296_v38  ;;  %v283_v42 = vpop.permute.xlu0 %282  ;;  %v4155_v38 = vpack.c.bf16 %v190_v34, %v188_v33 }
 0x1fc   :  { %v4070_v43 = vadd.f32 %v283_v42, %v253_v40 }
 0x1fd   :  { %3366 = vtanh.f32 %v4068_v41  ;;  %3185 = vmatpush1.bf16.msra.mxu1 %v4155_v38  ;;  %3201 = vmatpush1.bf16.msra.mxu0 %v4155_v38 }
 0x1fe   :  { %3368 = vtanh.f32 %v4070_v43 }
 0x1ff   :  { %v327_v46 = vpop.permute.xlu0 %326  ;;  %v285_v47 = vpop.permute.xlu1 %284 }
 0x200   :  { %v4076_v48 = vadd.f32 %v327_v46, %v297_v44  ;;  %v4078_v49 = vadd.f32 %v285_v47, %v254_v45  ;;  %v193_v44 = vld [vmem:[%s5082_s3 + $0x68] sm:$0xff]  ;;  %v195_v45 = vld [vmem:[%s5082_s3 + $0x78] sm:$0xff]  ;;  %v192_v47 = vld [vmem:[%s5082_s3 + $0x60] sm:$0xff] }
 0x201   :  { %v4168_v46 = vpack.c.bf16 %v195_v45, %v193_v44 }
 0x202   :  { %3370 = vtanh.f32 %v4076_v48 }
 0x203   :  { %v3365_v52 = vpop.eup %3364  ;;  %3372 = vtanh.f32 %v4078_v49  ;;  %v329_v53 = vpop.permute.xlu0 %328  ;;  %3187 = vmatprep.subr.bf16.mxu1 %v4168_v46  ;;  %3203 = vmatprep.subr.bf16.mxu0 %v4168_v46 }
 0x204   :  { %v331_v54 = vpop.permute.xlu1 %330  ;;  %v4084_v55 = vadd.f32 %v329_v53, %v298_v50  ;;  %348 = vrot.lane.b32.xlu1 %v3365_v52, %s3907_s2  ;;  %v194_v50 = vld [vmem:[%s5082_s3 + $0x70] sm:$0xff] }
 0x205   :  { %v4086_v56 = vadd.f32 %v331_v54, %v299_v51  ;;  %v4176_v51 = vpack.c.bf16 %v194_v50, %v192_v47 }
 0x206   :  { %3374 = vtanh.f32 %v4084_v55 }
 0x207   :  { %v3367_v58 = vpop.eup %3366  ;;  %3376 = vtanh.f32 %v4086_v56  ;;  %v287_v59 = vpop.permute.xlu0 %286  ;;  %3189 = vmatpush1.bf16.msra.mxu1 %v4176_v51  ;;  %3205 = vmatpush1.bf16.msra.mxu0 %v4176_v51 }
 0x208   :  { %v3369_v60 = vpop.eup %3368  ;;  %v4092_v61 = vadd.f32 %v287_v59, %v255_v57  ;;  %372 = vrot.lane.b32.xlu1 %v3367_v58, %s3907_s2  ;;  %3207 = vmatprep.subr.bf16.mxu1 %v4108_v5 }
 0x209   :  { %350 = vrot.lane.b32.xlu0 %v3369_v60, %s3907_s2  ;;  %3223 = vmatprep.subr.bf16.mxu0 %v4108_v5 }
 0x20a   :  { %3378 = vtanh.f32 %v4092_v61 }
 0x20c   :  { %v3371_v62 = vpop.eup %3370 }
 0x20d   :  { %v3373_v63 = vpop.eup %3372  ;;  %374 = vrot.lane.b32.xlu0 %v3371_v62, %s3907_s2 }
 0x20e   :  { %352 = vrot.lane.b32.xlu1 %v3373_v63, %s3907_s2 }
 0x210   :  { %v3375_v18 = vpop.eup %3374 }
 0x211   :  { %v3377_v26 = vpop.eup %3376  ;;  %376 = vrot.lane.b32.xlu0 %v3375_v18, %s3907_s2 }
 0x212   :  { %378 = vrot.lane.b32.xlu1 %v3377_v26, %s3907_s2 }
 0x214   :  { %v3379_v36 = vpop.eup %3378 }
 0x215   :  { %354 = vrot.lane.b32.xlu0 %v3379_v36, %s3907_s2 }
 0x276   :  { %v349_v39 = vpop.permute.xlu1 %348 }
 0x27a   :  { %v373_v40 = vpop.permute.xlu1 %372 }
 0x27b   :  { %v351_v42 = vpop.permute.xlu0 %350  ;;  %v384_v57 = vmul.f32 %v4034_v7, %v373_v40 }
 0x27c   :  { %v361_v58 = vmul.f32 %v4036_v8, %v351_v42  ;;  %v360_v8 = vmul.f32 %v4030_v2, %v349_v39 }
 0x27d   :  { %v408_v3 = vrot.slane %v384_v57, 7 }
 0x27f   :  { %v375_v52 = vpop.permute.xlu0 %374 }
 0x280   :  { %v385_v53 = vmul.f32 %v4041_v13, %v375_v52  ;;  %v353_v54 = vpop.permute.xlu1 %352  ;;  %v392_v13 = vrot.slane %v361_v58, 7 }
 0x281   :  { %v362_v60 = vmul.f32 %v4044_v14, %v353_v54 }
 0x282   :  { %v409_v59 = vrot.slane %v385_v53, 6 }
 0x283   :  { %v377_v62 = vpop.permute.xlu0 %376  ;;  %v395_v9 = vrot.slane %v362_v60, 6 }
 0x284   :  { %v386_v63 = vmul.f32 %v4048_v20, %v377_v62  ;;  %v379_v1 = vpop.permute.xlu1 %378  ;;  %v410_v7 = vsel %vm393_vm1, %v409_v59, %v408_v3 }
 0x285   :  { %v387_v4 = vmul.f32 %v4052_v22, %v379_v1  ;;  %v394_v22 = vsel %vm393_vm1, %v392_v13, %v360_v8 }
 0x286   :  { %v411_v6 = vrot.slane %v386_v63, 5  ;;  %v397_v18 = vsel %vm396_vm3, %v395_v9, %v394_v22 }
 0x287   :  { %v413_v10 = vrot.slane %v387_v4, 4  ;;  %v355_v15 = vpop.permute.xlu0 %354 }
 0x288   :  { %v363_v14 = vmul.f32 %v4058_v31, %v355_v15  ;;  %v412_v20 = vsel %vm396_vm3, %v411_v6, %v410_v7 }
 0x289   :  { %v414_v16 = vsel %vm399_vm2, %v413_v10, %v412_v20 }
 0x28a   :  { %v398_v17 = vrot.slane %v363_v14, 5  ;;  %415 = vrot.lane.b32.xlu1 %v414_v16, %s3907_s2 }
 0x28c   :  { %v400_v24 = vsel %vm399_vm2, %v398_v17, %v397_v18 }
 0x28d   :  { %401 = vrot.lane.b32.xlu0 %v400_v24, %s3908_s11 }
 0x2fc   :  { %v416_v2 = vpop.permute.xlu1 %415 }
 0x2ff   :  { %v402_v26 = vpop.permute.xlu0 %401 }
 0x300   :  { %v419_v31 = vsel %vm418_vm4, %v402_v26, %v416_v2 }
 0x301   :  { %3059 = vmatmul.mubr.msk.f32.vlgmr.msra.gmra.mrb[0].mxu1 %vm420_vm5, %v419_v31 }
 0x302   :  { %3209 = vmatpush1.bf16.msra.mxu1 %v4119_v11  ;;  %1177 = vmatprep.mubr.f32.mxu1 %v3906_v0 }
 0x303   :  { %3211 = vmatprep.subr.bf16.mxu1 %v4121_v12 }
 0x306   :  { %3213 = vmatpush1.bf16.msra.mxu1 %v4139_v28 }
 0x307   :  { %3215 = vmatprep.subr.bf16.mxu1 %v4143_v30 }
 0x30a   :  { %3217 = vmatpush1.bf16.msra.mxu1 %v4155_v38 }
 0x30b   :  { %3219 = vmatprep.subr.bf16.mxu1 %v4168_v46 }
 0x30e   :  { %3221 = vmatpush1.bf16.msra.mxu1 %v4176_v51 }
 0x30f   :  { %3239 = vmatprep.subr.bf16.mxu1 %v4108_v5 }
 0x3d4   :  { %v490_v33 = vpop.f32.mrb[0].mxu1 }
 0x3d5   :  { %v504_v34 = vadd.f32 %v490_v33, %v3996_v23  ;;  %v492_v36 = vpop.f32.mrb[1].mxu1  ;;  %v497_v39 = vrot.slane %v490_v33, 1  ;;  %v496_v40 = vrot.slane %v490_v33, 7  ;;  %v498_v58 = vrot.slane %v490_v33, 2 }
 0x3d6   :  { %v509_v44 = vrot.slane %v492_v36, 3  ;;  %v508_v47 = vrot.slane %v492_v36, 2  ;;  %v510_v50 = vrot.slane %v492_v36, 4  ;;  %v511_v57 = vrot.slane %v492_v36, 5 }
 0x3d7   :  { %3380 = vtanh.f32 %v504_v34  ;;  %v505_v42 = vadd.f32 %v497_v39, %v4002_v27  ;;  %v503_v45 = vadd.f32 %v496_v40, %v3990_v19  ;;  %v506_v63 = vadd.f32 %v498_v58, %v4008_v32 }
 0x3d8   :  { %v517_v52 = vadd.f32 %v509_v44, %v3998_v25  ;;  %v516_v54 = vadd.f32 %v508_v47, %v3992_v21  ;;  %v518_v59 = vadd.f32 %v510_v50, %v4004_v29  ;;  %v519_v60 = vadd.f32 %v511_v57, %v4010_v35 }
 0x3d9   :  { %3382 = vtanh.f32 %v505_v42  ;;  %v3061_v10 = vmul.f32 -1.442695, %v504_v34  ;;  %v3062_v15 = vmul.f32 -1.442695, %v505_v42  ;;  %v3060_v7 = vmul.f32 -1.442695, %v503_v45 }
 0x3da   :  { %3384 = vtanh.f32 %v503_v45  ;;  %v3065_v8 = vmul.f32 -1.442695, %v517_v52  ;;  %v3064_v20 = vmul.f32 -1.442695, %v516_v54  ;;  %v3066_v16 = vmul.f32 -1.442695, %v518_v59 }
 0x3db   :  { %3386 = vtanh.f32 %v517_v52  ;;  %v3067_v22 = vmul.f32 -1.442695, %v519_v60  ;;  %v3063_v24 = vmul.f32 -1.442695, %v506_v63 }
 0x3dc   :  { %3388 = vtanh.f32 %v516_v54 }
 0x3dd   :  { %3390 = vtanh.f32 %v518_v59 }
 0x3de   :  { %3392 = vtanh.f32 %v519_v60 }
 0x3df   :  { %3394 = vtanh.f32 %v506_v63 }
 0x3e0   :  { %3396 = vpow2.f32 %v3061_v10 }
 0x3e1   :  { %v3381_v53 = vpop.eup %3380  ;;  %3398 = vpow2.f32 %v3062_v15 }
 0x3e2   :  { %598 = vrot.lane.b32.xlu0 %v3381_v53, %s3907_s2  ;;  %3400 = vpow2.f32 %v3060_v7 }
 0x3e3   :  { %v3383_v62 = vpop.eup %3382  ;;  %3402 = vpow2.f32 %v3065_v8 }
 0x3e4   :  { %600 = vrot.lane.b32.xlu1 %v3383_v62, %s3907_s2  ;;  %v3385_v1 = vpop.eup %3384  ;;  %3404 = vpow2.f32 %v3064_v20 }
 0x3e5   :  { %v3387_v3 = vpop.eup %3386  ;;  %3406 = vpow2.f32 %v3066_v16 }
 0x3e6   :  { %v3389_v4 = vpop.eup %3388  ;;  %654 = vrot.lane.b32.xlu0 %v3387_v3, %s3907_s2 }
 0x3e7   :  { %v3391_v13 = vpop.eup %3390 }
 0x3e8   :  { %596 = vrot.lane.b32.xlu1 %v3385_v1, %s3907_s2  ;;  %v3393_v6 = vpop.eup %3392 }
 0x3e9   :  { %v3395_v9 = vpop.eup %3394 }
 0x3ea   :  { %656 = vrot.lane.b32.xlu0 %v3391_v13, %s3907_s2  ;;  %v3397_v14 = vpop.eup %3396 }
 0x3eb   :  { %v533_v17 = vadd.f32 1.0, %v3397_v14  ;;  %v3399_v18 = vpop.eup %3398 }
 0x3ec   :  { %652 = vrot.lane.b32.xlu1 %v3389_v4, %s3907_s2  ;;  %v534_v2 = vadd.f32 1.0, %v3399_v18  ;;  %v3401_v26 = vpop.eup %3400  ;;  %v581_v18 = vrot.slane %v4070_v43, 7 }
 0x3ed   :  { %3408 = vrcp.f32 %v533_v17  ;;  %v3403_v31 = vpop.eup %3402  ;;  %v532_v33 = vadd.f32 1.0, %v3401_v26 }
 0x3ee   :  { %602 = vrot.lane.b32.xlu0 %v3395_v9, %s3907_s2  ;;  %3410 = vpow2.f32 %v3067_v22  ;;  %v3405_v34 = vpop.eup %3404  ;;  %v561_v39 = vadd.f32 1.0, %v3403_v31  ;;  %v582_v31 = vrot.slane %v4078_v49, 7 }
 0x3ef   :  { %3412 = vpow2.f32 %v3063_v24  ;;  %v3407_v36 = vpop.eup %3406  ;;  %v560_v42 = vadd.f32 1.0, %v3405_v34 }
 0x3f0   :  { %658 = vrot.lane.b32.xlu1 %v3393_v6, %s3907_s2  ;;  %3414 = vrcp.f32 %v534_v2  ;;  %v562_v50 = vadd.f32 1.0, %v3407_v36  ;;  %v580_v36 = vrot.slane %v4063_v37, 7 }
 0x3f1   :  { %3416 = vrcp.f32 %v532_v33 }
 0x3f2   :  { %3418 = vrcp.f32 %v561_v39 }
 0x3f3   :  { %3420 = vrcp.f32 %v560_v42  ;;  %v637_v42 = vrot.slane %v4076_v48, 1 }
 0x3f4   :  { %3422 = vrcp.f32 %v562_v50 }
 0x3f7   :  { %v4227_v40 = vpop.eup %3408 }
 0x3f8   :  { %v3411_v47 = vpop.eup %3410  ;;  %v589_v24 = vmul.f32 %v4227_v40, %v581_v18 }
 0x3f9   :  { %v3413_v52 = vpop.eup %3412  ;;  %v563_v53 = vadd.f32 1.0, %v3411_v47 }
 0x3fa   :  { %v4231_v54 = vpop.eup %3414  ;;  %v535_v58 = vadd.f32 1.0, %v3413_v52 }
 0x3fb   :  { %3424 = vrcp.f32 %v563_v53  ;;  %v4235_v60 = vpop.eup %3416  ;;  %v590_v33 = vmul.f32 %v4231_v54, %v582_v31  ;;  %v638_v53 = vrot.slane %v4084_v55, 1 }
 0x3fc   :  { %3426 = vrcp.f32 %v535_v58  ;;  %v4238_v1 = vpop.eup %3418  ;;  %v588_v43 = vmul.f32 %v4235_v60, %v580_v36 }
 0x3fd   :  { %v4241_v4 = vpop.eup %3420  ;;  %v645_v49 = vmul.f32 %v4238_v1, %v637_v42 }
 0x3fe   :  { %v4246_v10 = vpop.eup %3422 }
 0x405   :  { %v4250_v8 = vpop.eup %3424 }
 0x406   :  { %v4254_v16 = vpop.eup %3426 }
 0x454   :  { %v599_v44 = vpop.permute.xlu0 %598 }
 0x455   :  { %v609_v45 = vmul.f32 %v4227_v40, %v599_v44 }
 0x456   :  { %v601_v57 = vpop.permute.xlu1 %600 }
 0x457   :  { %618 = vrot.lane.b32.xlu0 %v609_v45, %s3908_s11  ;;  %v610_v59 = vmul.f32 %v4231_v54, %v601_v57  ;;  %v636_v45 = vrot.slane %v4068_v41, 1  ;;  %v639_v41 = vrot.slane %v4086_v56, 1 }
 0x458   :  { %v655_v3 = vpop.permute.xlu0 %654 }
 0x459   :  { %620 = vrot.lane.b32.xlu1 %v610_v59, %s3908_s11  ;;  %v665_v13 = vmul.f32 %v4238_v1, %v655_v3  ;;  %v644_v37 = vmul.f32 %v4241_v4, %v636_v45  ;;  %v646_v59 = vmul.f32 %v4246_v10, %v638_v53  ;;  %v647_v55 = vmul.f32 %v4250_v8, %v639_v41 }
 0x45a   :  { %v597_v62 = vpop.permute.xlu1 %596 }
 0x45b   :  { %v608_v63 = vmul.f32 %v4235_v60, %v597_v62  ;;  %674 = vrot.lane.b32.xlu0 %v665_v13, %s3908_s11 }
 0x45c   :  { %v657_v15 = vpop.permute.xlu0 %656 }
 0x45d   :  { %616 = vrot.lane.b32.xlu1 %v608_v63, %s3908_s11  ;;  %v666_v7 = vmul.f32 %v4246_v10, %v657_v15  ;;  %v583_v63 = vrot.slane %v4092_v61, 7 }
 0x45e   :  { %v653_v6 = vpop.permute.xlu1 %652 }
 0x45f   :  { %v664_v9 = vmul.f32 %v4241_v4, %v653_v6  ;;  %676 = vrot.lane.b32.xlu0 %v666_v7, %s3908_s11 }
 0x460   :  { %v603_v17 = vpop.permute.xlu0 %602 }
 0x461   :  { %672 = vrot.lane.b32.xlu1 %v664_v9, %s3908_s11  ;;  %v611_v22 = vmul.f32 %v4254_v16, %v603_v17  ;;  %v591_v9 = vmul.f32 %v4254_v16, %v583_v63 }
 0x462   :  { %v659_v14 = vpop.permute.xlu1 %658 }
 0x463   :  { %v667_v20 = vmul.f32 %v4250_v8, %v659_v14  ;;  %622 = vrot.lane.b32.xlu0 %v611_v22, %s3908_s11 }
 0x465   :  { %678 = vrot.lane.b32.xlu1 %v667_v20, %s3908_s11 }
 0x4c9   :  { %v619_v2 = vpop.permute.xlu0 %618 }
 0x4ca   :  { %v4261_v26 = vadd.f32 %v619_v2, %v589_v24 }
 0x4cb   :  { %v621_v34 = vpop.permute.xlu1 %620 }
 0x4cc   :  { %3428 = vtanh.f32 %v4261_v26  ;;  %v4267_v39 = vadd.f32 %v621_v34, %v590_v33 }
 0x4cd   :  { %v675_v52 = vpop.permute.xlu0 %674 }
 0x4ce   :  { %3430 = vtanh.f32 %v4267_v39  ;;  %v4279_v57 = vadd.f32 %v675_v52, %v645_v49 }
 0x4cf   :  { %v617_v44 = vpop.permute.xlu1 %616 }
 0x4d0   :  { %v4273_v47 = vadd.f32 %v617_v44, %v588_v43 }
 0x4d1   :  { %v677_v62 = vpop.permute.xlu0 %676 }
 0x4d2   :  { %3432 = vtanh.f32 %v4273_v47  ;;  %v4289_v3 = vadd.f32 %v677_v62, %v646_v59 }
 0x4d3   :  { %v673_v58 = vpop.permute.xlu1 %672  ;;  %3434 = vtanh.f32 %v4279_v57 }
 0x4d4   :  { %v4282_v48 = vadd.f32 %v673_v58, %v644_v37 }
 0x4d5   :  { %v623_v15 = vpop.permute.xlu0 %622 }
 0x4d6   :  { %v3429_v50 = vpop.eup %3428  ;;  %3436 = vtanh.f32 %v4282_v48  ;;  %v4297_v7 = vadd.f32 %v623_v15, %v591_v9 }
 0x4d7   :  { %698 = vrot.lane.b32.xlu0 %v3429_v50, %s3907_s2  ;;  %v679_v6 = vpop.permute.xlu1 %678  ;;  %3438 = vtanh.f32 %v4289_v3 }
 0x4d8   :  { %v3431_v13 = vpop.eup %3430  ;;  %v4294_v56 = vadd.f32 %v679_v6, %v647_v55 }
 0x4d9   :  { %700 = vrot.lane.b32.xlu1 %v3431_v13, %s3907_s2 }
 0x4da   :  { %3440 = vtanh.f32 %v4294_v56 }
 0x4db   :  { %3442 = vtanh.f32 %v4297_v7 }
 0x4dc   :  { %v3433_v61 = vpop.eup %3432 }
 0x4dd   :  { %696 = vrot.lane.b32.xlu1 %v3433_v61, %s3907_s2  ;;  %v3435_v14 = vpop.eup %3434 }
 0x4de   :  { %722 = vrot.lane.b32.xlu0 %v3435_v14, %s3907_s2 }
 0x4e0   :  { %v3437_v20 = vpop.eup %3436 }
 0x4e1   :  { %720 = vrot.lane.b32.xlu1 %v3437_v20, %s3907_s2  ;;  %v3439_v17 = vpop.eup %3438 }
 0x4e2   :  { %724 = vrot.lane.b32.xlu0 %v3439_v17, %s3907_s2 }
 0x4e4   :  { %v3441_v22 = vpop.eup %3440 }
 0x4e5   :  { %726 = vrot.lane.b32.xlu1 %v3441_v22, %s3907_s2  ;;  %v3443_v18 = vpop.eup %3442 }
 0x4e6   :  { %702 = vrot.lane.b32.xlu0 %v3443_v18, %s3907_s2 }
 0x549   :  { %v699_v2 = vpop.permute.xlu0 %698 }
 0x54a   :  { %v709_v42 = vmul.f32 %v4227_v40, %v699_v2 }
 0x54b   :  { %v701_v24 = vpop.permute.xlu1 %700 }
 0x54c   :  { %v710_v37 = vmul.f32 %v4231_v54, %v701_v24  ;;  %v740_v58 = vrot.slane %v709_v42, 7 }
 0x54e   :  { %v742_v55 = vrot.slane %v710_v37, 6 }
 0x54f   :  { %v697_v31 = vpop.permute.xlu1 %696 }
 0x550   :  { %v723_v33 = vpop.permute.xlu0 %722  ;;  %v708_v50 = vmul.f32 %v4235_v60, %v697_v31 }
 0x551   :  { %v733_v34 = vmul.f32 %v4238_v1, %v723_v33 }
 0x552   :  { %v741_v63 = vsel %vm396_vm3, %v740_v58, %v708_v50 }
 0x553   :  { %v721_v36 = vpop.permute.xlu1 %720  ;;  %v755_v49 = vrot.slane %v733_v34, 4  ;;  %v743_v13 = vsel %vm399_vm2, %v742_v55, %v741_v63 }
 0x554   :  { %v732_v43 = vmul.f32 %v4241_v4, %v721_v36  ;;  %v725_v44 = vpop.permute.xlu0 %724 }
 0x555   :  { %v734_v52 = vmul.f32 %v4246_v10, %v725_v44 }
 0x556   :  { %v754_v45 = vrot.slane %v732_v43, 5 }
 0x557   :  { %v727_v53 = vpop.permute.xlu1 %726  ;;  %v757_v59 = vrot.slane %v734_v52, 3 }
 0x558   :  { %v735_v41 = vmul.f32 %v4250_v8, %v727_v53  ;;  %v756_v1 = vsel %vm396_vm3, %v755_v49, %v754_v45  ;;  %v703_v62 = vpop.permute.xlu0 %702 }
 0x559   :  { %v711_v4 = vmul.f32 %v4254_v16, %v703_v62  ;;  %v758_v60 = vsel %vm399_vm2, %v757_v59, %v756_v1 }
 0x55a   :  { %v759_v40 = vrot.slane %v735_v41, 2 }
 0x55b   :  { %v744_v10 = vrot.slane %v711_v4, 5 }
 0x55c   :  { %v760_v54 = vsel %vm745_vm6, %v759_v40, %v758_v60 }
 0x55d   :  { %761 = vrot.lane.b32.xlu1 %v760_v54, %s3907_s2  ;;  %v746_v8 = vsel %vm745_vm6, %v744_v10, %v743_v13 }
 0x55e   :  { %747 = vrot.lane.b32.xlu0 %v746_v8, %s3908_s11 }
 0x5cf   :  { %v762_v6 = vpop.permute.xlu1 %761 }
 0x5d0   :  { %v748_v16 = vpop.permute.xlu0 %747 }
 0x5d1   :  { %v764_v9 = vsel %vm418_vm4, %v748_v16, %v762_v6 }
 0x5d2   :  { %v766_v15 = vrot.slane %v764_v9, 1 }
 0x5d4   :  { %3068 = vmatmul.mubr.msk.f32.vlgmr.msra.gmra.mrb[8].mxu0 %vm420_vm5, %v766_v15 }
 0x5d5   :  { %3225 = vmatpush1.bf16.msra.mxu0 %v4119_v11  ;;  %1521 = vmatprep.mubr.f32.mxu0 %v3906_v0 }
 0x5d6   :  { %3227 = vmatprep.subr.bf16.mxu0 %v4121_v12 }
 0x5d9   :  { %3229 = vmatpush1.bf16.msra.mxu0 %v4139_v28 }
 0x5da   :  { %3231 = vmatprep.subr.bf16.mxu0 %v4143_v30 }
 0x5dd   :  { %3233 = vmatpush1.bf16.msra.mxu0 %v4155_v38 }
 0x5de   :  { %3235 = vmatprep.subr.bf16.mxu0 %v4168_v46 }
 0x5e1   :  { %3237 = vmatpush1.bf16.msra.mxu0 %v4176_v51 }
 0x5e2   :  { %3255 = vmatprep.subr.bf16.mxu0 %v4108_v5 }
 0x6a7   :  { %v835_v61 = vpop.f32.mrb[8].mxu0 }
 0x6a8   :  { %v841_v14 = vrot.slane %v835_v61, 6  ;;  %v850_v20 = vadd.f32 %v835_v61, %v4002_v27  ;;  %v837_v17 = vpop.f32.mrb[9].mxu0  ;;  %v842_v22 = vrot.slane %v835_v61, 7  ;;  %v843_v44 = vrot.slane %v835_v61, 1 }
 0x6a9   :  { %v853_v2 = vrot.slane %v837_v17, 3  ;;  %v854_v31 = vrot.slane %v837_v17, 4  ;;  %v855_v34 = vrot.slane %v837_v17, 5  ;;  %v856_v42 = vrot.slane %v837_v17, 6 }
 0x6aa   :  { %v848_v18 = vadd.f32 %v841_v14, %v3990_v19  ;;  %3444 = vtanh.f32 %v850_v20  ;;  %v849_v24 = vadd.f32 %v842_v22, %v3996_v23  ;;  %v851_v37 = vadd.f32 %v843_v44, %v4008_v32 }
 0x6ab   :  { %v861_v33 = vadd.f32 %v853_v2, %v3992_v21  ;;  %v862_v36 = vadd.f32 %v854_v31, %v3998_v25  ;;  %v863_v45 = vadd.f32 %v855_v34, %v4004_v29  ;;  %v864_v50 = vadd.f32 %v856_v42, %v4010_v35 }
 0x6ac   :  { %3446 = vtanh.f32 %v848_v18  ;;  %v3071_v62 = vmul.f32 -1.442695, %v850_v20  ;;  %v3069_v4 = vmul.f32 -1.442695, %v848_v18  ;;  %v3070_v40 = vmul.f32 -1.442695, %v849_v24 }
 0x6ad   :  { %3448 = vtanh.f32 %v849_v24  ;;  %v3073_v63 = vmul.f32 -1.442695, %v861_v33  ;;  %v3074_v55 = vmul.f32 -1.442695, %v862_v36  ;;  %v3075_v10 = vmul.f32 -1.442695, %v863_v45 }
 0x6ae   :  { %3450 = vtanh.f32 %v861_v33  ;;  %v3076_v8 = vmul.f32 -1.442695, %v864_v50  ;;  %v3072_v16 = vmul.f32 -1.442695, %v851_v37 }
 0x6af   :  { %3452 = vtanh.f32 %v862_v36 }
 0x6b0   :  { %3454 = vtanh.f32 %v863_v45 }
 0x6b1   :  { %3456 = vtanh.f32 %v864_v50 }
 0x6b2   :  { %3458 = vtanh.f32 %v851_v37 }
 0x6b3   :  { %3460 = vpow2.f32 %v3071_v62 }
 0x6b4   :  { %v3445_v43 = vpop.eup %3444  ;;  %3462 = vpow2.f32 %v3069_v4 }
 0x6b5   :  { %945 = vrot.lane.b32.xlu1 %v3445_v43, %s3907_s2  ;;  %3464 = vpow2.f32 %v3070_v40 }
 0x6b6   :  { %v3447_v49 = vpop.eup %3446  ;;  %3466 = vpow2.f32 %v3073_v63 }
 0x6b7   :  { %v3449_v52 = vpop.eup %3448  ;;  %3468 = vpow2.f32 %v3074_v55 }
 0x6b8   :  { %943 = vrot.lane.b32.xlu0 %v3449_v52, %s3907_s2  ;;  %v3451_v53 = vpop.eup %3450  ;;  %3470 = vpow2.f32 %v3075_v10 }
 0x6b9   :  { %941 = vrot.lane.b32.xlu1 %v3447_v49, %s3907_s2  ;;  %v3453_v58 = vpop.eup %3452 }
 0x6ba   :  { %v3455_v41 = vpop.eup %3454 }
 0x6bb   :  { %v3457_v1 = vpop.eup %3456 }
 0x6bc   :  { %999 = vrot.lane.b32.xlu0 %v3453_v58, %s3907_s2  ;;  %v3459_v59 = vpop.eup %3458 }
 0x6bd   :  { %997 = vrot.lane.b32.xlu1 %v3451_v53, %s3907_s2  ;;  %v3461_v60 = vpop.eup %3460 }
 0x6be   :  { %v879_v54 = vadd.f32 1.0, %v3461_v60  ;;  %v3463_v13 = vpop.eup %3462 }
 0x6bf   :  { %v3465_v6 = vpop.eup %3464  ;;  %v877_v9 = vadd.f32 1.0, %v3463_v13 }
 0x6c0   :  { %1001 = vrot.lane.b32.xlu0 %v3455_v41, %s3907_s2  ;;  %3472 = vrcp.f32 %v879_v54  ;;  %v878_v15 = vadd.f32 1.0, %v3465_v6  ;;  %v3467_v61 = vpop.eup %3466 }
 0x6c1   :  { %1003 = vrot.lane.b32.xlu1 %v3457_v1, %s3907_s2  ;;  %3474 = vpow2.f32 %v3076_v8  ;;  %v3469_v14 = vpop.eup %3468  ;;  %v905_v20 = vadd.f32 1.0, %v3467_v61  ;;  %v927_v8 = vrot.slane %v4267_v39, 7  ;;  %v926_v61 = vrot.slane %v4261_v26, 7 }
 0x6c2   :  { %3476 = vpow2.f32 %v3072_v16  ;;  %v3471_v17 = vpop.eup %3470  ;;  %v906_v22 = vadd.f32 1.0, %v3469_v14  ;;  %v982_v26 = vrot.slane %v4279_v57, 1 }
 0x6c3   :  { %3478 = vrcp.f32 %v877_v9  ;;  %v907_v34 = vadd.f32 1.0, %v3471_v17  ;;  %v925_v9 = vrot.slane %v4273_v47, 7  ;;  %v981_v47 = vrot.slane %v4282_v48, 1 }
 0x6c4   :  { %947 = vrot.lane.b32.xlu0 %v3459_v59, %s3907_s2  ;;  %3480 = vrcp.f32 %v878_v15  ;;  %v984_v48 = vrot.slane %v4294_v56, 1 }
 0x6c5   :  { %3482 = vrcp.f32 %v905_v20 }
 0x6c6   :  { %3484 = vrcp.f32 %v906_v22 }
 0x6c7   :  { %3486 = vrcp.f32 %v907_v34 }
 0x6ca   :  { %v4350_v18 = vpop.eup %3472 }
 0x6cb   :  { %v3475_v31 = vpop.eup %3474  ;;  %v935_v6 = vmul.f32 %v4350_v18, %v927_v8 }
 0x6cc   :  { %v3477_v33 = vpop.eup %3476  ;;  %v908_v42 = vadd.f32 1.0, %v3475_v31 }
 0x6cd   :  { %v4354_v36 = vpop.eup %3478  ;;  %v880_v50 = vadd.f32 1.0, %v3477_v33 }
 0x6ce   :  { %v4357_v45 = vpop.eup %3480  ;;  %3488 = vrcp.f32 %v908_v42  ;;  %v933_v14 = vmul.f32 %v4354_v36, %v925_v9 }
 0x6cf   :  { %3490 = vrcp.f32 %v880_v50  ;;  %v4362_v37 = vpop.eup %3482  ;;  %v934_v17 = vmul.f32 %v4357_v45, %v926_v61 }
 0x6d0   :  { %v4364_v58 = vpop.eup %3484 }
 0x6d1   :  { %v4370_v62 = vpop.eup %3486  ;;  %v990_v31 = vmul.f32 %v4364_v58, %v982_v26 }
 0x6d8   :  { %v4373_v63 = vpop.eup %3488 }
 0x6d9   :  { %v4377_v10 = vpop.eup %3490 }
 0x727   :  { %v946_v24 = vpop.permute.xlu1 %945 }
 0x728   :  { %v955_v2 = vmul.f32 %v4350_v18, %v946_v24 }
 0x72a   :  { %965 = vrot.lane.b32.xlu1 %v955_v2, %s3908_s11  ;;  %v944_v49 = vpop.permute.xlu0 %943  ;;  %v989_v2 = vmul.f32 %v4362_v37, %v981_v47 }
 0x72b   :  { %v942_v43 = vpop.permute.xlu1 %941  ;;  %v954_v52 = vmul.f32 %v4357_v45, %v944_v49 }
 0x72c   :  { %v953_v44 = vmul.f32 %v4354_v36, %v942_v43 }
 0x72d   :  { %963 = vrot.lane.b32.xlu0 %v954_v52, %s3908_s11 }
 0x72e   :  { %961 = vrot.lane.b32.xlu1 %v953_v44, %s3908_s11  ;;  %v1000_v41 = vpop.permute.xlu0 %999  ;;  %v983_v44 = vrot.slane %v4289_v3, 1  ;;  %v992_v3 = vmul.f32 %v4373_v63, %v984_v48 }
 0x72f   :  { %v998_v53 = vpop.permute.xlu1 %997  ;;  %v1010_v59 = vmul.f32 %v4364_v58, %v1000_v41 }
 0x730   :  { %v1009_v1 = vmul.f32 %v4362_v37, %v998_v53  ;;  %v991_v57 = vmul.f32 %v4370_v62, %v983_v44  ;;  %v928_v53 = vrot.slane %v4297_v7, 7 }
 0x731   :  { %1019 = vrot.lane.b32.xlu0 %v1010_v59, %s3908_s11 }
 0x732   :  { %1017 = vrot.lane.b32.xlu1 %v1009_v1, %s3908_s11  ;;  %v1002_v4 = vpop.permute.xlu0 %1001  ;;  %v936_v56 = vmul.f32 %v4377_v10, %v928_v53 }
 0x733   :  { %v1011_v40 = vmul.f32 %v4370_v62, %v1002_v4  ;;  %v1004_v55 = vpop.permute.xlu1 %1003 }
 0x734   :  { %v1012_v60 = vmul.f32 %v4373_v63, %v1004_v55 }
 0x735   :  { %1021 = vrot.lane.b32.xlu0 %v1011_v40, %s3908_s11 }
 0x736   :  { %v948_v54 = vpop.permute.xlu0 %947  ;;  %1023 = vrot.lane.b32.xlu1 %v1012_v60, %s3908_s11 }
 0x737   :  { %v956_v13 = vmul.f32 %v4377_v10, %v948_v54 }
 0x739   :  { %967 = vrot.lane.b32.xlu0 %v956_v13, %s3908_s11 }
 0x79c   :  { %v966_v16 = vpop.permute.xlu1 %965 }
 0x79d   :  { %v4385_v15 = vadd.f32 %v966_v16, %v935_v6 }
 0x79f   :  { %3492 = vtanh.f32 %v4385_v15  ;;  %v964_v24 = vpop.permute.xlu0 %963 }
 0x7a0   :  { %v962_v20 = vpop.permute.xlu1 %961  ;;  %v4393_v39 = vadd.f32 %v964_v24, %v934_v17 }
 0x7a1   :  { %v4391_v22 = vadd.f32 %v962_v20, %v933_v14 }
 0x7a3   :  { %3494 = vtanh.f32 %v4391_v22  ;;  %v1020_v43 = vpop.permute.xlu0 %1019 }
 0x7a4   :  { %3496 = vtanh.f32 %v4393_v39  ;;  %v1018_v33 = vpop.permute.xlu1 %1017  ;;  %v4404_v49 = vadd.f32 %v1020_v43, %v990_v31 }
 0x7a5   :  { %v4401_v42 = vadd.f32 %v1018_v33, %v989_v2 }
 0x7a7   :  { %3498 = vtanh.f32 %v4401_v42  ;;  %v1022_v52 = vpop.permute.xlu0 %1021 }
 0x7a8   :  { %3500 = vtanh.f32 %v4404_v49  ;;  %v4412_v41 = vadd.f32 %v1022_v52, %v991_v57  ;;  %v1024_v59 = vpop.permute.xlu1 %1023 }
 0x7a9   :  { %v3493_v34 = vpop.eup %3492  ;;  %v4417_v4 = vadd.f32 %v1024_v59, %v992_v3 }
 0x7aa   :  { %1045 = vrot.lane.b32.xlu1 %v3493_v34, %s3907_s2  ;;  %3502 = vtanh.f32 %v4412_v41 }
 0x7ab   :  { %v968_v40 = vpop.permute.xlu0 %967  ;;  %3504 = vtanh.f32 %v4417_v4 }
 0x7ac   :  { %v4422_v7 = vadd.f32 %v968_v40, %v936_v56 }
 0x7ad   :  { %v3495_v50 = vpop.eup %3494 }
 0x7ae   :  { %1041 = vrot.lane.b32.xlu1 %v3495_v50, %s3907_s2  ;;  %v3497_v1 = vpop.eup %3496  ;;  %3506 = vtanh.f32 %v4422_v7 }
 0x7af   :  { %1043 = vrot.lane.b32.xlu0 %v3497_v1, %s3907_s2 }
 0x7b1   :  { %v3499_v55 = vpop.eup %3498 }
 0x7b2   :  { %v3501_v60 = vpop.eup %3500  ;;  %1065 = vrot.lane.b32.xlu1 %v3499_v55, %s3907_s2 }
 0x7b3   :  { %1067 = vrot.lane.b32.xlu0 %v3501_v60, %s3907_s2 }
 0x7b4   :  { %v3503_v54 = vpop.eup %3502 }
 0x7b5   :  { %v3505_v13 = vpop.eup %3504 }
 0x7b6   :  { %1071 = vrot.lane.b32.xlu1 %v3505_v13, %s3907_s2 }
 0x7b7   :  { %1069 = vrot.lane.b32.xlu0 %v3503_v54, %s3907_s2 }
 0x7b8   :  { %v3507_v8 = vpop.eup %3506 }
 0x7bb   :  { %1047 = vrot.lane.b32.xlu0 %v3507_v8, %s3907_s2 }
 0x81c   :  { %v1046_v6 = vpop.permute.xlu1 %1045 }
 0x81d   :  { %v1055_v43 = vmul.f32 %v4350_v18, %v1046_v6 }
 0x81f   :  { %v1087_v53 = vrot.slane %v1055_v43, 6 }
 0x820   :  { %v1042_v16 = vpop.permute.xlu1 %1041 }
 0x821   :  { %v1044_v9 = vpop.permute.xlu0 %1043  ;;  %v1053_v33 = vmul.f32 %v4354_v36, %v1042_v16 }
 0x822   :  { %v1054_v17 = vmul.f32 %v4357_v45, %v1044_v9 }
 0x824   :  { %v1066_v61 = vpop.permute.xlu1 %1065  ;;  %v1085_v31 = vrot.slane %v1054_v17, 7 }
 0x825   :  { %v1068_v14 = vpop.permute.xlu0 %1067  ;;  %v1077_v20 = vmul.f32 %v4362_v37, %v1066_v61 }
 0x826   :  { %v1078_v24 = vmul.f32 %v4364_v58, %v1068_v14  ;;  %v1086_v52 = vsel %vm399_vm2, %v1085_v31, %v1053_v33 }
 0x827   :  { %v1099_v47 = vrot.slane %v1077_v20, 3  ;;  %v1088_v18 = vsel %vm745_vm6, %v1087_v53, %v1086_v52 }
 0x828   :  { %v1100_v26 = vrot.slane %v1078_v24, 2  ;;  %v1072_v44 = vpop.permute.xlu1 %1071 }
 0x829   :  { %v1070_v2 = vpop.permute.xlu0 %1069  ;;  %v1080_v37 = vmul.f32 %v4373_v63, %v1072_v44 }
 0x82a   :  { %v1079_v34 = vmul.f32 %v4370_v62, %v1070_v2  ;;  %v1101_v48 = vsel %vm399_vm2, %v1100_v26, %v1099_v47 }
 0x82c   :  { %v1102_v57 = vrot.slane %v1079_v34, 1 }
 0x82d   :  { %v1048_v45 = vpop.permute.xlu0 %1047 }
 0x82e   :  { %v1056_v58 = vmul.f32 %v4377_v10, %v1048_v45  ;;  %v1103_v50 = vsel %vm745_vm6, %v1102_v57, %v1101_v48 }
 0x82f   :  { %v1104_v36 = vsel %vm1090_vm7, %v1080_v37, %v1103_v50 }
 0x830   :  { %v1089_v62 = vrot.slane %v1056_v58, 5  ;;  %1105 = vrot.lane.b32.xlu1 %v1104_v36, %s3907_s2 }
 0x832   :  { %v1091_v3 = vsel %vm1090_vm7, %v1089_v62, %v1088_v18 }
 0x833   :  { %1092 = vrot.lane.b32.xlu0 %v1091_v3, %s3908_s11 }
 0x8a2   :  { %v1106_v63 = vpop.permute.xlu1 %1105 }
 0x8a5   :  { %v1093_v1 = vpop.permute.xlu0 %1092 }
 0x8a6   :  { %v1108_v10 = vsel %vm418_vm4, %v1093_v1, %v1106_v63 }
 0x8a7   :  { %v1110_v59 = vrot.slane %v1108_v10, 2 }
 0x8a9   :  { %3077 = vmatmul.mubr.msk.f32.vlgmr.msra.gmra.mrb[2].mxu1 %vm420_vm5, %v1110_v59 }
 0x8aa   :  { %3241 = vmatpush1.bf16.msra.mxu1 %v4119_v11  ;;  %1866 = vmatprep.mubr.f32.mxu1 %v3906_v0 }
 0x8ab   :  { %3243 = vmatprep.subr.bf16.mxu1 %v4121_v12 }
 0x8ae   :  { %3245 = vmatpush1.bf16.msra.mxu1 %v4139_v28 }
 0x8af   :  { %3247 = vmatprep.subr.bf16.mxu1 %v4143_v30 }
 0x8b2   :  { %3249 = vmatpush1.bf16.msra.mxu1 %v4155_v38 }
 0x8b3   :  { %3251 = vmatprep.subr.bf16.mxu1 %v4168_v46 }
 0x8b6   :  { %3253 = vmatpush1.bf16.msra.mxu1 %v4176_v51 }
 0x8b7   :  { %3271 = vmatprep.subr.bf16.mxu1 %v4108_v5 }
 0x97c   :  { %v1179_v56 = vpop.f32.mrb[2].mxu1 }
 0x97d   :  { %v1195_v40 = vadd.f32 %v1179_v56, %v4008_v32  ;;  %v1181_v55 = vpop.f32.mrb[3].mxu1  ;;  %v1186_v60 = vrot.slane %v1179_v56, 6  ;;  %v1187_v54 = vrot.slane %v1179_v56, 7  ;;  %v1185_v6 = vrot.slane %v1179_v56, 5 }
 0x97e   :  { %v1197_v8 = vrot.slane %v1181_v55, 4  ;;  %v1199_v9 = vrot.slane %v1181_v55, 6  ;;  %v1198_v20 = vrot.slane %v1181_v55, 5  ;;  %v1200_v17 = vrot.slane %v1181_v55, 7 }
 0x97f   :  { %3508 = vtanh.f32 %v1195_v40  ;;  %v1193_v13 = vadd.f32 %v1186_v60, %v3996_v23  ;;  %v1194_v16 = vadd.f32 %v1187_v54, %v4002_v27  ;;  %v1192_v5 = vadd.f32 %v1185_v6, %v3990_v19 }
 0x980   :  { %v1205_v61 = vadd.f32 %v1197_v8, %v3992_v21  ;;  %v1207_v24 = vadd.f32 %v1199_v9, %v4004_v29  ;;  %v1206_v47 = vadd.f32 %v1198_v20, %v3998_v25  ;;  %v1208_v2 = vadd.f32 %v1200_v17, %v4010_v35 }
 0x981   :  { %3510 = vtanh.f32 %v1193_v13  ;;  %v3081_v57 = vmul.f32 -1.442695, %v1195_v40  ;;  %v3079_v37 = vmul.f32 -1.442695, %v1193_v13  ;;  %v3080_v45 = vmul.f32 -1.442695, %v1194_v16 }
 0x982   :  { %3512 = vtanh.f32 %v1194_v16  ;;  %v3082_v58 = vmul.f32 -1.442695, %v1205_v61  ;;  %v3078_v52 = vmul.f32 -1.442695, %v1192_v5  ;;  %v3084_v53 = vmul.f32 -1.442695, %v1207_v24 }
 0x983   :  { %3514 = vtanh.f32 %v1205_v61  ;;  %v3083_v62 = vmul.f32 -1.442695, %v1206_v47  ;;  %v3085_v3 = vmul.f32 -1.442695, %v1208_v2 }
 0x984   :  { %3516 = vtanh.f32 %v1192_v5 }
 0x985   :  { %3518 = vtanh.f32 %v1207_v24 }
 0x986   :  { %3520 = vtanh.f32 %v1206_v47 }
 0x987   :  { %3522 = vtanh.f32 %v1208_v2 }
 0x988   :  { %3524 = vpow2.f32 %v3081_v57 }
 0x989   :  { %v3509_v14 = vpop.eup %3508  ;;  %3526 = vpow2.f32 %v3079_v37 }
 0x98a   :  { %1291 = vrot.lane.b32.xlu1 %v3509_v14, %s3907_s2  ;;  %3528 = vpow2.f32 %v3080_v45 }
 0x98b   :  { %v3511_v26 = vpop.eup %3510  ;;  %3530 = vpow2.f32 %v3082_v58 }
 0x98c   :  { %1287 = vrot.lane.b32.xlu0 %v3511_v26, %s3907_s2  ;;  %v3513_v31 = vpop.eup %3512  ;;  %3532 = vpow2.f32 %v3078_v52 }
 0x98d   :  { %v3515_v33 = vpop.eup %3514  ;;  %3534 = vpow2.f32 %v3084_v53 }
 0x98e   :  { %1341 = vrot.lane.b32.xlu1 %v3515_v33, %s3907_s2  ;;  %v3517_v34 = vpop.eup %3516 }
 0x98f   :  { %v3519_v43 = vpop.eup %3518 }
 0x990   :  { %1289 = vrot.lane.b32.xlu0 %v3513_v31, %s3907_s2  ;;  %v3521_v44 = vpop.eup %3520 }
 0x991   :  { %v3523_v48 = vpop.eup %3522 }
 0x992   :  { %1345 = vrot.lane.b32.xlu1 %v3519_v43, %s3907_s2  ;;  %v3525_v50 = vpop.eup %3524 }
 0x993   :  { %v1224_v36 = vadd.f32 1.0, %v3525_v50  ;;  %v3527_v18 = vpop.eup %3526 }
 0x994   :  { %1285 = vrot.lane.b32.xlu0 %v3517_v34, %s3907_s2  ;;  %v1222_v63 = vadd.f32 1.0, %v3527_v18  ;;  %v3529_v1 = vpop.eup %3528 }
 0x995   :  { %3536 = vrcp.f32 %v1224_v36  ;;  %v3531_v10 = vpop.eup %3530  ;;  %v1223_v59 = vadd.f32 1.0, %v3529_v1  ;;  %v1270_v1 = vrot.slane %v4393_v39, 7 }
 0x996   :  { %1347 = vrot.lane.b32.xlu1 %v3523_v48, %s3907_s2  ;;  %3538 = vpow2.f32 %v3083_v62  ;;  %v3533_v56 = vpop.eup %3532  ;;  %v1249_v40 = vadd.f32 1.0, %v3531_v10  ;;  %v1272_v62 = vrot.slane %v4422_v7, 7 }
 0x997   :  { %3540 = vpow2.f32 %v3085_v3  ;;  %v3535_v55 = vpop.eup %3534  ;;  %v1221_v54 = vadd.f32 1.0, %v3533_v56  ;;  %v1271_v56 = vrot.slane %v4385_v15, 7 }
 0x998   :  { %1343 = vrot.lane.b32.xlu0 %v3521_v44, %s3907_s2  ;;  %3542 = vrcp.f32 %v1222_v63  ;;  %v1251_v16 = vadd.f32 1.0, %v3535_v55  ;;  %v1325_v55 = vrot.slane %v4401_v42, 1 }
 0x999   :  { %3544 = vrcp.f32 %v1223_v59 }
 0x99a   :  { %3546 = vrcp.f32 %v1249_v40 }
 0x99b   :  { %3548 = vrcp.f32 %v1221_v54 }
 0x99c   :  { %3550 = vrcp.f32 %v1251_v16 }
 0x99f   :  { %v4473_v60 = vpop.eup %3536 }
 0x9a0   :  { %v3539_v8 = vpop.eup %3538  ;;  %v1280_v18 = vmul.f32 %v4473_v60, %v1272_v62 }
 0x9a1   :  { %v3541_v9 = vpop.eup %3540  ;;  %v1250_v61 = vadd.f32 1.0, %v3539_v8 }
 0x9a2   :  { %v4477_v14 = vpop.eup %3542  ;;  %v1252_v5 = vadd.f32 1.0, %v3541_v9  ;;  %v1327_v9 = vrot.slane %v4412_v41, 1  ;;  %v1328_v41 = vrot.slane %v4417_v4, 1 }
 0x9a3   :  { %3552 = vrcp.f32 %v1250_v61  ;;  %v4481_v24 = vpop.eup %3544  ;;  %v1278_v10 = vmul.f32 %v4477_v14, %v1270_v1 }
 0x9a4   :  { %3554 = vrcp.f32 %v1252_v5  ;;  %v4484_v2 = vpop.eup %3546  ;;  %v1279_v7 = vmul.f32 %v4481_v24, %v1271_v56  ;;  %v1326_v5 = vrot.slane %v4404_v49, 1 }
 0x9a5   :  { %v4488_v34 = vpop.eup %3548  ;;  %v1333_v39 = vmul.f32 %v4484_v2, %v1325_v55 }
 0x9a6   :  { %v4492_v48 = vpop.eup %3550 }
 0x9ad   :  { %v4496_v45 = vpop.eup %3552 }
 0x9ae   :  { %v4500_v52 = vpop.eup %3554 }
 0x9af   :  { %v1336_v49 = vmul.f32 %v4500_v52, %v1328_v41 }
 0x9fc   :  { %v1292_v13 = vpop.permute.xlu1 %1291 }
 0x9fd   :  { %v1300_v6 = vmul.f32 %v4473_v60, %v1292_v13  ;;  %v1269_v13 = vrot.slane %v4391_v22, 7  ;;  %v1335_v22 = vmul.f32 %v4492_v48, %v1327_v9 }
 0x9fe   :  { %v1288_v20 = vpop.permute.xlu0 %1287 }
 0x9ff   :  { %1311 = vrot.lane.b32.xlu1 %v1300_v6, %s3908_s11  ;;  %v1298_v17 = vmul.f32 %v4477_v14, %v1288_v20  ;;  %v1277_v42 = vmul.f32 %v4488_v34, %v1269_v13 }
 0xa00   :  { %v1342_v31 = vpop.permute.xlu1 %1341 }
 0xa01   :  { %1307 = vrot.lane.b32.xlu0 %v1298_v17, %s3908_s11  ;;  %v1353_v33 = vmul.f32 %v4484_v2, %v1342_v31 }
 0xa02   :  { %v1290_v47 = vpop.permute.xlu0 %1289 }
 0xa03   :  { %v1299_v26 = vmul.f32 %v4481_v24, %v1290_v47  ;;  %1361 = vrot.lane.b32.xlu1 %v1353_v33, %s3908_s11 }
 0xa04   :  { %v1346_v57 = vpop.permute.xlu1 %1345 }
 0xa05   :  { %1309 = vrot.lane.b32.xlu0 %v1299_v26, %s3908_s11  ;;  %v1355_v37 = vmul.f32 %v4492_v48, %v1346_v57  ;;  %v1334_v26 = vmul.f32 %v4496_v45, %v1326_v5 }
 0xa06   :  { %v1286_v43 = vpop.permute.xlu0 %1285 }
 0xa07   :  { %v1297_v44 = vmul.f32 %v4488_v34, %v1286_v43  ;;  %1365 = vrot.lane.b32.xlu1 %v1355_v37, %s3908_s11 }
 0xa08   :  { %v1348_v53 = vpop.permute.xlu1 %1347 }
 0xa09   :  { %1305 = vrot.lane.b32.xlu0 %v1297_v44, %s3908_s11  ;;  %v1356_v36 = vmul.f32 %v4500_v52, %v1348_v53 }
 0xa0a   :  { %v1344_v58 = vpop.permute.xlu0 %1343 }
 0xa0b   :  { %v1354_v50 = vmul.f32 %v4496_v45, %v1344_v58  ;;  %1367 = vrot.lane.b32.xlu1 %v1356_v36, %s3908_s11 }
 0xa0d   :  { %1363 = vrot.lane.b32.xlu0 %v1354_v50, %s3908_s11 }
 0xa71   :  { %v1312_v3 = vpop.permute.xlu1 %1311 }
 0xa72   :  { %v4507_v63 = vadd.f32 %v1312_v3, %v1280_v18 }
 0xa73   :  { %v1308_v59 = vpop.permute.xlu0 %1307 }
 0xa74   :  { %3556 = vtanh.f32 %v4507_v63  ;;  %v4513_v40 = vadd.f32 %v1308_v59, %v1278_v10 }
 0xa75   :  { %v1362_v6 = vpop.permute.xlu1 %1361 }
 0xa76   :  { %3558 = vtanh.f32 %v4513_v40  ;;  %v4523_v15 = vadd.f32 %v1362_v6, %v1333_v39 }
 0xa77   :  { %v1310_v54 = vpop.permute.xlu0 %1309 }
 0xa78   :  { %v4520_v8 = vadd.f32 %v1310_v54, %v1279_v7 }
 0xa79   :  { %v1366_v17 = vpop.permute.xlu1 %1365 }
 0xa7a   :  { %3560 = vtanh.f32 %v4520_v8  ;;  %v4534_v47 = vadd.f32 %v1366_v17, %v1335_v22 }
 0xa7b   :  { %v1306_v61 = vpop.permute.xlu0 %1305  ;;  %3562 = vtanh.f32 %v4523_v15 }
 0xa7c   :  { %v4531_v20 = vadd.f32 %v1306_v61, %v1277_v42 }
 0xa7d   :  { %v1368_v44 = vpop.permute.xlu1 %1367 }
 0xa7e   :  { %v3557_v16 = vpop.eup %3556  ;;  %3564 = vtanh.f32 %v4531_v20  ;;  %v4543_v57 = vadd.f32 %v1368_v44, %v1336_v49 }
 0xa7f   :  { %1391 = vrot.lane.b32.xlu1 %v3557_v16, %s3907_s2  ;;  %v1364_v31 = vpop.permute.xlu0 %1363  ;;  %3566 = vtanh.f32 %v4534_v47 }
 0xa80   :  { %v3559_v33 = vpop.eup %3558  ;;  %v4540_v43 = vadd.f32 %v1364_v31, %v1334_v26 }
 0xa81   :  { %1387 = vrot.lane.b32.xlu0 %v3559_v33, %s3907_s2 }
 0xa82   :  { %3568 = vtanh.f32 %v4540_v43 }
 0xa83   :  { %3570 = vtanh.f32 %v4543_v57 }
 0xa84   :  { %v3561_v4 = vpop.eup %3560 }
 0xa85   :  { %1389 = vrot.lane.b32.xlu0 %v3561_v4, %s3907_s2  ;;  %v3563_v37 = vpop.eup %3562 }
 0xa86   :  { %1409 = vrot.lane.b32.xlu1 %v3563_v37, %s3907_s2 }
 0xa88   :  { %v3565_v58 = vpop.eup %3564 }
 0xa89   :  { %1385 = vrot.lane.b32.xlu0 %v3565_v58, %s3907_s2  ;;  %v3567_v50 = vpop.eup %3566 }
 0xa8a   :  { %1413 = vrot.lane.b32.xlu1 %v3567_v50, %s3907_s2 }
 0xa8c   :  { %v3569_v53 = vpop.eup %3568 }
 0xa8d   :  { %1411 = vrot.lane.b32.xlu0 %v3569_v53, %s3907_s2  ;;  %v3571_v36 = vpop.eup %3570 }
 0xa8e   :  { %1415 = vrot.lane.b32.xlu1 %v3571_v36, %s3907_s2 }
 0xaf1   :  { %v1392_v62 = vpop.permute.xlu1 %1391 }
 0xaf2   :  { %v1400_v56 = vmul.f32 %v4473_v60, %v1392_v62 }
 0xaf3   :  { %v1388_v18 = vpop.permute.xlu0 %1387 }
 0xaf4   :  { %v1398_v1 = vmul.f32 %v4477_v14, %v1388_v18  ;;  %v1433_v16 = vrot.slane %v1400_v56, 5 }
 0xaf6   :  { %v1429_v7 = vrot.slane %v1398_v1, 7 }
 0xaf7   :  { %v1390_v3 = vpop.permute.xlu0 %1389 }
 0xaf8   :  { %v1410_v10 = vpop.permute.xlu1 %1409  ;;  %v1399_v59 = vmul.f32 %v4481_v24, %v1390_v3 }
 0xaf9   :  { %v1421_v54 = vmul.f32 %v4484_v2, %v1410_v10 }
 0xafa   :  { %v1431_v39 = vrot.slane %v1399_v59, 6 }
 0xafb   :  { %v1386_v55 = vpop.permute.xlu0 %1385  ;;  %v1443_v24 = vrot.slane %v1421_v54, 1 }
 0xafc   :  { %v1397_v13 = vmul.f32 %v4488_v34, %v1386_v55  ;;  %v1414_v6 = vpop.permute.xlu1 %1413 }
 0xafd   :  { %v1423_v9 = vmul.f32 %v4492_v48, %v1414_v6 }
 0xafe   :  { %v1430_v42 = vsel %vm745_vm6, %v1429_v7, %v1397_v13 }
 0xaff   :  { %v1412_v14 = vpop.permute.xlu0 %1411  ;;  %v1432_v61 = vsel %vm1090_vm7, %v1431_v39, %v1430_v42  ;;  %v1445_v22 = vrot.slane %v1423_v9, 7 }
 0xb00   :  { %v1422_v60 = vmul.f32 %v4496_v45, %v1412_v14  ;;  %v1435_v5 = vsel %vm1434_vm8, %v1433_v16, %v1432_v61  ;;  %v1416_v2 = vpop.permute.xlu1 %1415 }
 0xb01   :  { %1436 = vrot.lane.b32.xlu0 %v1435_v5, %s3908_s11  ;;  %v1424_v34 = vmul.f32 %v4500_v52, %v1416_v2 }
 0xb02   :  { %v1444_v17 = vsel %vm745_vm6, %v1422_v60, %v1443_v24 }
 0xb03   :  { %v1446_v48 = vsel %vm1090_vm7, %v1445_v22, %v1444_v17  ;;  %v1447_v41 = vrot.slane %v1424_v34, 6 }
 0xb05   :  { %v1448_v26 = vsel %vm1434_vm8, %v1447_v41, %v1446_v48 }
 0xb06   :  { %1449 = vrot.lane.b32.xlu1 %v1448_v26, %s3907_s2 }
 0xb73   :  { %v1437_v31 = vpop.permute.xlu0 %1436 }
 0xb78   :  { %v1450_v33 = vpop.permute.xlu1 %1449 }
 0xb79   :  { %v1452_v45 = vsel %vm418_vm4, %v1437_v31, %v1450_v33 }
 0xb7a   :  { %v1454_v49 = vrot.slane %v1452_v45, 3 }
 0xb7c   :  { %3086 = vmatmul.mubr.msk.f32.vlgmr.msra.gmra.mrb[10].mxu0 %vm420_vm5, %v1454_v49 }
 0xb7d   :  { %3257 = vmatpush1.bf16.msra.mxu0 %v4119_v11  ;;  %2219 = vmatprep.mubr.f32.mxu0 %v3906_v0 }
 0xb7e   :  { %3259 = vmatprep.subr.bf16.mxu0 %v4121_v12 }
 0xb81   :  { %3261 = vmatpush1.bf16.msra.mxu0 %v4139_v28 }
 0xb82   :  { %3263 = vmatprep.subr.bf16.mxu0 %v4143_v30 }
 0xb85   :  { %3265 = vmatpush1.bf16.msra.mxu0 %v4155_v38 }
 0xb86   :  { %3267 = vmatprep.subr.bf16.mxu0 %v4168_v46 }
 0xb89   :  { %3269 = vmatpush1.bf16.msra.mxu0 %v4176_v51 }
 0xc4f   :  { %v1523_v52 = vpop.f32.mrb[10].mxu0 }
 0xc50   :  { %v1530_v44 = vrot.slane %v1523_v52, 5  ;;  %v1525_v4 = vpop.f32.mrb[11].mxu0  ;;  %v1531_v37 = vrot.slane %v1523_v52, 6  ;;  %v1529_v50 = vrot.slane %v1523_v52, 4  ;;  %v1532_v56 = vrot.slane %v1523_v52, 7 }
 0xc51   :  { %v1543_v36 = vrot.slane %v1525_v4, 6  ;;  %v1542_v18 = vrot.slane %v1525_v4, 5  ;;  %v1544_v3 = vrot.slane %v1525_v4, 7  ;;  %v1552_v7 = vadd.f32 %v1525_v4, %v4010_v35 }
 0xc52   :  { %v1538_v58 = vadd.f32 %v1530_v44, %v3996_v23  ;;  %v1539_v53 = vadd.f32 %v1531_v37, %v4002_v27  ;;  %v1537_v62 = vadd.f32 %v1529_v50, %v3990_v19  ;;  %v1540_v13 = vadd.f32 %v1532_v56, %v4008_v32 }
 0xc53   :  { %v1550_v1 = vadd.f32 %v1543_v36, %v3998_v25  ;;  %v1549_v10 = vadd.f32 %v1542_v18, %v3992_v21  ;;  %v1551_v55 = vadd.f32 %v1544_v3, %v4004_v29  ;;  %v3094_v48 = vmul.f32 -1.442695, %v1552_v7 }
 0xc54   :  { %3572 = vtanh.f32 %v1538_v58  ;;  %v3088_v61 = vmul.f32 -1.442695, %v1538_v58  ;;  %v3089_v24 = vmul.f32 -1.442695, %v1539_v53  ;;  %v3087_v60 = vmul.f32 -1.442695, %v1537_v62 }
 0xc55   :  { %3574 = vtanh.f32 %v1539_v53  ;;  %v3092_v5 = vmul.f32 -1.442695, %v1550_v1  ;;  %v3091_v22 = vmul.f32 -1.442695, %v1549_v10  ;;  %v3093_v34 = vmul.f32 -1.442695, %v1551_v55 }
 0xc56   :  { %3576 = vtanh.f32 %v1537_v62  ;;  %v3090_v26 = vmul.f32 -1.442695, %v1540_v13 }
 0xc57   :  { %3578 = vtanh.f32 %v1550_v1 }
 0xc58   :  { %3580 = vtanh.f32 %v1549_v10 }
 0xc59   :  { %3582 = vtanh.f32 %v1551_v55 }
 0xc5a   :  { %3584 = vtanh.f32 %v1552_v7 }
 0xc5b   :  { %3586 = vtanh.f32 %v1540_v13 }
 0xc5c   :  { %3588 = vpow2.f32 %v3088_v61 }
 0xc5d   :  { %3590 = vpow2.f32 %v3089_v24 }
 0xc5e   :  { %v3573_v59 = vpop.eup %3572  ;;  %3592 = vpow2.f32 %v3087_v60 }
 0xc5f   :  { %1631 = vrot.lane.b32.xlu0 %v3573_v59, %s3907_s2  ;;  %v3575_v54 = vpop.eup %3574  ;;  %3594 = vpow2.f32 %v3092_v5 }
 0xc60   :  { %1633 = vrot.lane.b32.xlu1 %v3575_v54, %s3907_s2  ;;  %v3577_v39 = vpop.eup %3576  ;;  %3596 = vpow2.f32 %v3091_v22 }
 0xc61   :  { %v3579_v6 = vpop.eup %3578  ;;  %3598 = vpow2.f32 %v3093_v34 }
 0xc62   :  { %v3581_v16 = vpop.eup %3580 }
 0xc63   :  { %1687 = vrot.lane.b32.xlu0 %v3579_v6, %s3907_s2  ;;  %v3583_v9 = vpop.eup %3582 }
 0xc64   :  { %1629 = vrot.lane.b32.xlu1 %v3577_v39, %s3907_s2  ;;  %v3585_v42 = vpop.eup %3584 }
 0xc65   :  { %v3587_v14 = vpop.eup %3586 }
 0xc66   :  { %v3589_v2 = vpop.eup %3588 }
 0xc67   :  { %1689 = vrot.lane.b32.xlu0 %v3583_v9, %s3907_s2  ;;  %v1566_v17 = vadd.f32 1.0, %v3589_v2  ;;  %v3591_v41 = vpop.eup %3590 }
 0xc68   :  { %1685 = vrot.lane.b32.xlu1 %v3581_v16, %s3907_s2  ;;  %v1567_v31 = vadd.f32 1.0, %v3591_v41  ;;  %v3593_v33 = vpop.eup %3592 }
 0xc69   :  { %3600 = vrcp.f32 %v1566_v17  ;;  %v3595_v45 = vpop.eup %3594  ;;  %v1565_v49 = vadd.f32 1.0, %v3593_v33  ;;  %v1615_v33 = vrot.slane %v4520_v8, 7 }
 0xc6a   :  { %3602 = vpow2.f32 %v3094_v48  ;;  %v3597_v52 = vpop.eup %3596  ;;  %v1594_v44 = vadd.f32 1.0, %v3595_v45  ;;  %v1614_v48 = vrot.slane %v4513_v40, 7 }
 0xc6b   :  { %1635 = vrot.lane.b32.xlu0 %v3587_v14, %s3907_s2  ;;  %3604 = vpow2.f32 %v3090_v26  ;;  %v3599_v4 = vpop.eup %3598  ;;  %v1593_v37 = vadd.f32 1.0, %v3597_v52  ;;  %v1613_v52 = vrot.slane %v4531_v20, 7 }
 0xc6c   :  { %1691 = vrot.lane.b32.xlu1 %v3585_v42, %s3907_s2  ;;  %3606 = vrcp.f32 %v1567_v31  ;;  %v1595_v62 = vadd.f32 1.0, %v3599_v4  ;;  %v1670_v4 = vrot.slane %v4540_v43, 1 }
 0xc6d   :  { %3608 = vrcp.f32 %v1565_v49 }
 0xc6e   :  { %3610 = vrcp.f32 %v1594_v44 }
 0xc6f   :  { %3612 = vrcp.f32 %v1593_v37 }
 0xc70   :  { %3614 = vrcp.f32 %v1595_v62 }
 0xc73   :  { %v4595_v58 = vpop.eup %3600 }
 0xc74   :  { %v3603_v53 = vpop.eup %3602  ;;  %v1622_v41 = vmul.f32 %v4595_v58, %v1614_v48 }
 0xc75   :  { %v3605_v18 = vpop.eup %3604  ;;  %v1596_v3 = vadd.f32 1.0, %v3603_v53 }
 0xc76   :  { %v4599_v1 = vpop.eup %3606  ;;  %v1568_v59 = vadd.f32 1.0, %v3605_v18  ;;  %v1671_v18 = vrot.slane %v4534_v47, 1 }
 0xc77   :  { %3616 = vrcp.f32 %v1596_v3  ;;  %v4603_v55 = vpop.eup %3608  ;;  %v1623_v45 = vmul.f32 %v4599_v1, %v1615_v33 }
 0xc78   :  { %3618 = vrcp.f32 %v1568_v59  ;;  %v4606_v13 = vpop.eup %3610  ;;  %v1621_v40 = vmul.f32 %v4603_v55, %v1613_v52 }
 0xc79   :  { %v4609_v6 = vpop.eup %3612  ;;  %v1678_v8 = vmul.f32 %v4606_v13, %v1670_v4 }
 0xc7a   :  { %v4614_v14 = vpop.eup %3614 }
 0xc7b   :  { %v1679_v43 = vmul.f32 %v4614_v14, %v1671_v18 }
 0xc81   :  { %v4618_v60 = vpop.eup %3616 }
 0xc82   :  { %v4622_v2 = vpop.eup %3618 }
 0xcd1   :  { %v1632_v50 = vpop.permute.xlu0 %1631 }
 0xcd2   :  { %v1642_v36 = vmul.f32 %v4595_v58, %v1632_v50  ;;  %v1634_v10 = vpop.permute.xlu1 %1633  ;;  %v1669_v50 = vrot.slane %v4523_v15, 1  ;;  %v1672_v15 = vrot.slane %v4543_v57, 1 }
 0xcd3   :  { %v1643_v56 = vmul.f32 %v4599_v1, %v1634_v10 }
 0xcd4   :  { %1651 = vrot.lane.b32.xlu0 %v1642_v36, %s3908_s11  ;;  %v1677_v20 = vmul.f32 %v4609_v6, %v1669_v50  ;;  %v1680_v47 = vmul.f32 %v4618_v60, %v1672_v15 }
 0xcd5   :  { %1653 = vrot.lane.b32.xlu1 %v1643_v56, %s3908_s11  ;;  %v1688_v39 = vpop.permute.xlu0 %1687 }
 0xcd6   :  { %v1630_v7 = vpop.permute.xlu1 %1629  ;;  %v1698_v16 = vmul.f32 %v4606_v13, %v1688_v39 }
 0xcd7   :  { %v1641_v54 = vmul.f32 %v4603_v55, %v1630_v7  ;;  %v1616_v7 = vrot.slane %v4507_v63, 7 }
 0xcd8   :  { %1707 = vrot.lane.b32.xlu0 %v1698_v16, %s3908_s11 }
 0xcd9   :  { %1649 = vrot.lane.b32.xlu1 %v1641_v54, %s3908_s11  ;;  %v1690_v61 = vpop.permute.xlu0 %1689 }
 0xcda   :  { %v1686_v9 = vpop.permute.xlu1 %1685  ;;  %v1699_v24 = vmul.f32 %v4614_v14, %v1690_v61 }
 0xcdb   :  { %v1697_v42 = vmul.f32 %v4609_v6, %v1686_v9  ;;  %v1624_v9 = vmul.f32 %v4622_v2, %v1616_v7 }
 0xcdc   :  { %1709 = vrot.lane.b32.xlu0 %v1699_v24, %s3908_s11 }
 0xcdd   :  { %1705 = vrot.lane.b32.xlu1 %v1697_v42, %s3908_s11  ;;  %v1636_v34 = vpop.permute.xlu0 %1635 }
 0xcde   :  { %v1692_v5 = vpop.permute.xlu1 %1691  ;;  %v1644_v17 = vmul.f32 %v4622_v2, %v1636_v34 }
 0xcdf   :  { %v1700_v22 = vmul.f32 %v4618_v60, %v1692_v5 }
 0xce0   :  { %1655 = vrot.lane.b32.xlu0 %v1644_v17, %s3908_s11 }
 0xce1   :  { %1711 = vrot.lane.b32.xlu1 %v1700_v22, %s3908_s11 }
 0xd46   :  { %v1652_v26 = vpop.permute.xlu0 %1651 }
 0xd47   :  { %v4629_v31 = vadd.f32 %v1652_v26, %v1622_v41  ;;  %v1654_v49 = vpop.permute.xlu1 %1653 }
 0xd48   :  { %v4635_v44 = vadd.f32 %v1654_v49, %v1623_v45 }
 0xd49   :  { %3620 = vtanh.f32 %v4629_v31 }
 0xd4a   :  { %3622 = vtanh.f32 %v4635_v44  ;;  %v1708_v36 = vpop.permute.xlu0 %1707 }
 0xd4b   :  { %v1650_v37 = vpop.permute.xlu1 %1649  ;;  %v4647_v3 = vadd.f32 %v1708_v36, %v1678_v8 }
 0xd4c   :  { %v4641_v53 = vadd.f32 %v1650_v37, %v1621_v40 }
 0xd4e   :  { %3624 = vtanh.f32 %v4641_v53  ;;  %v1710_v56 = vpop.permute.xlu0 %1709 }
 0xd4f   :  { %v1706_v10 = vpop.permute.xlu1 %1705  ;;  %3626 = vtanh.f32 %v4647_v3  ;;  %v4657_v54 = vadd.f32 %v1710_v56, %v1679_v43 }
 0xd50   :  { %v4649_v59 = vadd.f32 %v1706_v10, %v1677_v20 }
 0xd52   :  { %3628 = vtanh.f32 %v4649_v59  ;;  %v1656_v42 = vpop.permute.xlu0 %1655 }
 0xd53   :  { %v3621_v62 = vpop.eup %3620  ;;  %v1712_v16 = vpop.permute.xlu1 %1711  ;;  %3630 = vtanh.f32 %v4657_v54  ;;  %v4665_v61 = vadd.f32 %v1656_v42, %v1624_v9 }
 0xd54   :  { %1731 = vrot.lane.b32.xlu0 %v3621_v62, %s3907_s2  ;;  %v3623_v39 = vpop.eup %3622  ;;  %v4662_v57 = vadd.f32 %v1712_v16, %v1680_v47 }
 0xd55   :  { %1733 = vrot.lane.b32.xlu1 %v3623_v39, %s3907_s2 }
 0xd56   :  { %3632 = vtanh.f32 %v4662_v57 }
 0xd57   :  { %3634 = vtanh.f32 %v4665_v61 }
 0xd58   :  { %v3625_v63 = vpop.eup %3624 }
 0xd59   :  { %1729 = vrot.lane.b32.xlu1 %v3625_v63, %s3907_s2  ;;  %v3627_v24 = vpop.eup %3626 }
 0xd5a   :  { %1755 = vrot.lane.b32.xlu0 %v3627_v24, %s3907_s2 }
 0xd5c   :  { %v3629_v5 = vpop.eup %3628 }
 0xd5d   :  { %1753 = vrot.lane.b32.xlu1 %v3629_v5, %s3907_s2  ;;  %v3631_v22 = vpop.eup %3630 }
 0xd5e   :  { %1757 = vrot.lane.b32.xlu0 %v3631_v22, %s3907_s2 }
 0xd60   :  { %v3633_v34 = vpop.eup %3632 }
 0xd61   :  { %1759 = vrot.lane.b32.xlu1 %v3633_v34, %s3907_s2  ;;  %v3635_v17 = vpop.eup %3634 }
 0xd62   :  { %1735 = vrot.lane.b32.xlu0 %v3635_v17, %s3907_s2 }
 0xdc6   :  { %v1732_v41 = vpop.permute.xlu0 %1731 }
 0xdc7   :  { %v1734_v48 = vpop.permute.xlu1 %1733  ;;  %v1742_v40 = vmul.f32 %v4595_v58, %v1732_v41 }
 0xdc8   :  { %v1743_v20 = vmul.f32 %v4599_v1, %v1734_v48 }
 0xdc9   :  { %v1773_v18 = vrot.slane %v1742_v40, 7 }
 0xdca   :  { %v1775_v7 = vrot.slane %v1743_v20, 6 }
 0xdcb   :  { %v1730_v26 = vpop.permute.xlu1 %1729 }
 0xdcc   :  { %v1756_v33 = vpop.permute.xlu0 %1755  ;;  %v1741_v8 = vmul.f32 %v4603_v55, %v1730_v26 }
 0xdcd   :  { %v1766_v45 = vmul.f32 %v4606_v13, %v1756_v33 }
 0xdce   :  { %v1774_v58 = vsel %vm1090_vm7, %v1773_v18, %v1741_v8 }
 0xdcf   :  { %v1754_v49 = vpop.permute.xlu1 %1753  ;;  %v1788_v50 = vrot.slane %v1766_v45, 6  ;;  %v1776_v47 = vsel %vm1434_vm8, %v1775_v7, %v1774_v58 }
 0xdd0   :  { %v1765_v52 = vmul.f32 %v4609_v6, %v1754_v49  ;;  %v1758_v4 = vpop.permute.xlu0 %1757 }
 0xdd1   :  { %v1767_v36 = vmul.f32 %v4614_v14, %v1758_v4 }
 0xdd2   :  { %v1787_v37 = vrot.slane %v1765_v52, 7 }
 0xdd3   :  { %v1760_v62 = vpop.permute.xlu1 %1759  ;;  %v1790_v10 = vrot.slane %v1767_v36, 5 }
 0xdd4   :  { %v1789_v15 = vsel %vm1090_vm7, %v1788_v50, %v1787_v37  ;;  %v1768_v13 = vmul.f32 %v4618_v60, %v1760_v62  ;;  %v1736_v43 = vpop.permute.xlu0 %1735 }
 0xdd5   :  { %v1744_v6 = vmul.f32 %v4622_v2, %v1736_v43  ;;  %v1791_v55 = vsel %vm1434_vm8, %v1790_v10, %v1789_v15 }
 0xdd6   :  { %v1792_v56 = vrot.slane %v1768_v13, 4 }
 0xdd7   :  { %v1777_v14 = vrot.slane %v1744_v6, 5 }
 0xdd8   :  { %v1793_v1 = vsel %vm1778_vm9, %v1792_v56, %v1791_v55 }
 0xdd9   :  { %1794 = vrot.lane.b32.xlu1 %v1793_v1, %s3907_s2  ;;  %v1779_v39 = vsel %vm1778_vm9, %v1777_v14, %v1776_v47 }
 0xdda   :  { %1780 = vrot.lane.b32.xlu0 %v1779_v39, %s3908_s11 }
 0xe4b   :  { %v1795_v60 = vpop.permute.xlu1 %1794 }
 0xe4c   :  { %v1781_v16 = vpop.permute.xlu0 %1780 }
 0xe4d   :  { %v1797_v9 = vsel %vm418_vm4, %v1781_v16, %v1795_v60 }
 0xe4e   :  { %v1799_v2 = vrot.slane %v1797_v9, 4 }
 0xe50   :  { %3095 = vmatmul.mubr.msk.f32.vlgmr.msra.gmra.mrb[4].mxu1 %vm420_vm5, %v1799_v2 }
 0xe51   :  { %3273 = vmatpush1.bf16.msra.mxu1 %v4119_v11  ;;  %2571 = vmatprep.mubr.f32.mxu1 %v3906_v0 }
 0xe52   :  { %3275 = vmatprep.subr.bf16.mxu1 %v4121_v12 }
 0xe55   :  { %3277 = vmatpush1.bf16.msra.mxu1 %v4139_v28 }
 0xe56   :  { %3279 = vmatprep.subr.bf16.mxu1 %v4143_v30 }
 0xe59   :  { %3281 = vmatpush1.bf16.msra.mxu1 %v4155_v38 }
 0xe5a   :  { %3283 = vmatprep.subr.bf16.mxu1 %v4168_v46 }
 0xe5d   :  { %3285 = vmatpush1.bf16.msra.mxu1 %v4176_v51 }
 0xf23   :  { %v1868_v42 = vpop.f32.mrb[4].mxu1 }
 0xf24   :  { %v1870_v63 = vpop.f32.mrb[5].mxu1  ;;  %v1876_v24 = vrot.slane %v1868_v42, 5  ;;  %v1874_v5 = vrot.slane %v1868_v42, 3  ;;  %v1875_v28 = vrot.slane %v1868_v42, 4  ;;  %v1877_v41 = vrot.slane %v1868_v42, 6 }
 0xf25   :  { %v1887_v22 = vrot.slane %v1870_v63, 6  ;;  %v1896_v30 = vadd.f32 %v1870_v63, %v4004_v29  ;;  %v1889_v38 = vrot.slane %v1870_v63, 1  ;;  %v1888_v51 = vrot.slane %v1870_v63, 7 }
 0xf26   :  { %v1884_v11 = vadd.f32 %v1876_v24, %v4002_v27  ;;  %v1882_v34 = vadd.f32 %v1874_v5, %v3990_v19  ;;  %v1883_v46 = vadd.f32 %v1875_v28, %v3996_v23  ;;  %v1885_v45 = vadd.f32 %v1877_v41, %v4008_v32 }
 0xf27   :  { %v1894_v12 = vadd.f32 %v1887_v22, %v3992_v21  ;;  %v1897_v17 = vadd.f32 %v1889_v38, %v4010_v35  ;;  %v1895_v26 = vadd.f32 %v1888_v51, %v3998_v25  ;;  %v3102_v62 = vmul.f32 -1.442695, %v1896_v30 }
 0xf28   :  { %3636 = vtanh.f32 %v1884_v11  ;;  %v3098_v8 = vmul.f32 -1.442695, %v1884_v11  ;;  %v3096_v36 = vmul.f32 -1.442695, %v1882_v34  ;;  %v3097_v18 = vmul.f32 -1.442695, %v1883_v46 }
 0xf29   :  { %3638 = vtanh.f32 %v1882_v34  ;;  %v3100_v20 = vmul.f32 -1.442695, %v1894_v12  ;;  %v3103_v10 = vmul.f32 -1.442695, %v1897_v17  ;;  %v3101_v13 = vmul.f32 -1.442695, %v1895_v26 }
 0xf2a   :  { %3640 = vtanh.f32 %v1894_v12  ;;  %v3099_v6 = vmul.f32 -1.442695, %v1885_v45 }
 0xf2b   :  { %3642 = vtanh.f32 %v1896_v30 }
 0xf2c   :  { %3644 = vtanh.f32 %v1883_v46 }
 0xf2d   :  { %3646 = vtanh.f32 %v1897_v17 }
 0xf2e   :  { %3648 = vtanh.f32 %v1895_v26 }
 0xf2f   :  { %3650 = vtanh.f32 %v1885_v45 }
 0xf30   :  { %3652 = vpow2.f32 %v3098_v8 }
 0xf31   :  { %3654 = vpow2.f32 %v3096_v36  ;;  %v1960_v36 = vrot.slane %v4635_v44, 7 }
 0xf32   :  { %v3637_v48 = vpop.eup %3636  ;;  %3656 = vpow2.f32 %v3100_v20 }
 0xf33   :  { %1978 = vrot.lane.b32.xlu1 %v3637_v48, %s3907_s2  ;;  %v3639_v33 = vpop.eup %3638  ;;  %3658 = vpow2.f32 %v3102_v62 }
 0xf34   :  { %v3641_v49 = vpop.eup %3640  ;;  %3660 = vpow2.f32 %v3097_v18  ;;  %v1958_v18 = vrot.slane %v4641_v53, 7 }
 0xf35   :  { %v3643_v52 = vpop.eup %3642  ;;  %3662 = vpow2.f32 %v3103_v10 }
 0xf36   :  { %2034 = vrot.lane.b32.xlu0 %v3643_v52, %s3907_s2  ;;  %v3645_v40 = vpop.eup %3644  ;;  %3664 = vpow2.f32 %v3101_v13 }
 0xf37   :  { %1974 = vrot.lane.b32.xlu1 %v3639_v33, %s3907_s2  ;;  %v3647_v4 = vpop.eup %3646 }
 0xf38   :  { %v3649_v37 = vpop.eup %3648 }
 0xf39   :  { %v3651_v50 = vpop.eup %3650 }
 0xf3a   :  { %1976 = vrot.lane.b32.xlu0 %v3645_v40, %s3907_s2  ;;  %v3653_v15 = vpop.eup %3652 }
 0xf3b   :  { %2030 = vrot.lane.b32.xlu1 %v3641_v49, %s3907_s2  ;;  %v1912_v43 = vadd.f32 1.0, %v3653_v15  ;;  %v3655_v58 = vpop.eup %3654 }
 0xf3c   :  { %v3657_v56 = vpop.eup %3656  ;;  %v1910_v7 = vadd.f32 1.0, %v3655_v58  ;;  %v2014_v58 = vrot.slane %v4649_v59, 1 }
 0xf3d   :  { %3666 = vrcp.f32 %v1912_v43  ;;  %v3659_v55 = vpop.eup %3658  ;;  %v1938_v14 = vadd.f32 1.0, %v3657_v56  ;;  %v2016_v43 = vrot.slane %v4657_v54, 1  ;;  %v2017_v54 = vrot.slane %v4662_v57, 1 }
 0xf3e   :  { %2032 = vrot.lane.b32.xlu0 %v3649_v37, %s3907_s2  ;;  %3668 = vpow2.f32 %v3099_v6  ;;  %v1940_v1 = vadd.f32 1.0, %v3659_v55  ;;  %v3661_v47 = vpop.eup %3660  ;;  %v1959_v55 = vrot.slane %v4629_v31, 7 }
 0xf3f   :  { %2036 = vrot.lane.b32.xlu1 %v3647_v4, %s3907_s2  ;;  %3670 = vrcp.f32 %v1910_v7  ;;  %v3663_v39 = vpop.eup %3662  ;;  %v1911_v60 = vadd.f32 1.0, %v3661_v47 }
 0xf40   :  { %3672 = vrcp.f32 %v1938_v14  ;;  %v3665_v16 = vpop.eup %3664  ;;  %v1941_v9 = vadd.f32 1.0, %v3663_v39 }
 0xf41   :  { %3674 = vrcp.f32 %v1940_v1  ;;  %v1939_v24 = vadd.f32 1.0, %v3665_v16  ;;  %v2015_v16 = vrot.slane %v4647_v3, 1 }
 0xf42   :  { %1980 = vrot.lane.b32.xlu0 %v3651_v50, %s3907_s2  ;;  %3676 = vrcp.f32 %v1911_v60 }
 0xf43   :  { %3678 = vrcp.f32 %v1941_v9 }
 0xf44   :  { %3680 = vrcp.f32 %v1939_v24 }
 0xf47   :  { %v4717_v2 = vpop.eup %3666 }
 0xf48   :  { %v3669_v5 = vpop.eup %3668  ;;  %v1968_v20 = vmul.f32 %v4717_v2, %v1960_v36 }
 0xf49   :  { %v4721_v11 = vpop.eup %3670  ;;  %v1913_v12 = vadd.f32 1.0, %v3669_v5  ;;  %v1961_v5 = vrot.slane %v4665_v61, 7 }
 0xf4a   :  { %v4724_v28 = vpop.eup %3672  ;;  %v1966_v15 = vmul.f32 %v4721_v11, %v1958_v18 }
 0xf4b   :  { %v4727_v30 = vpop.eup %3674  ;;  %3682 = vrcp.f32 %v1913_v12  ;;  %v2022_v56 = vmul.f32 %v4724_v28, %v2014_v58 }
 0xf4c   :  { %v4733_v48 = vpop.eup %3676  ;;  %v2024_v44 = vmul.f32 %v4727_v30, %v2016_v43 }
 0xf4d   :  { %v4735_v26 = vpop.eup %3678  ;;  %v1967_v59 = vmul.f32 %v4733_v48, %v1959_v55 }
 0xf4e   :  { %v4740_v52 = vpop.eup %3680  ;;  %v2025_v39 = vmul.f32 %v4735_v26, %v2017_v54 }
 0xf4f   :  { %v2023_v57 = vmul.f32 %v4740_v52, %v2015_v16 }
 0xf55   :  { %v4745_v37 = vpop.eup %3682 }
 0xf56   :  { %v1969_v3 = vmul.f32 %v4745_v37, %v1961_v5 }
 0xfa5   :  { %v1979_v42 = vpop.permute.xlu1 %1978 }
 0xfa6   :  { %v1988_v63 = vmul.f32 %v4717_v2, %v1979_v42 }
 0xfa8   :  { %1998 = vrot.lane.b32.xlu1 %v1988_v63, %s3908_s11  ;;  %v2035_v38 = vpop.permute.xlu0 %2034 }
 0xfa9   :  { %v1975_v22 = vpop.permute.xlu1 %1974  ;;  %v2044_v51 = vmul.f32 %v4727_v30, %v2035_v38 }
 0xfaa   :  { %v1986_v34 = vmul.f32 %v4721_v11, %v1975_v22 }
 0xfab   :  { %2054 = vrot.lane.b32.xlu0 %v2044_v51, %s3908_s11 }
 0xfac   :  { %1994 = vrot.lane.b32.xlu1 %v1986_v34, %s3908_s11  ;;  %v1977_v41 = vpop.permute.xlu0 %1976 }
 0xfad   :  { %v2031_v46 = vpop.permute.xlu1 %2030  ;;  %v1987_v33 = vmul.f32 %v4733_v48, %v1977_v41 }
 0xfae   :  { %v2042_v17 = vmul.f32 %v4724_v28, %v2031_v46 }
 0xfaf   :  { %1996 = vrot.lane.b32.xlu0 %v1987_v33, %s3908_s11 }
 0xfb0   :  { %2050 = vrot.lane.b32.xlu1 %v2042_v17, %s3908_s11  ;;  %v2033_v40 = vpop.permute.xlu0 %2032 }
 0xfb1   :  { %v2037_v45 = vpop.permute.xlu1 %2036  ;;  %v2043_v4 = vmul.f32 %v4740_v52, %v2033_v40 }
 0xfb2   :  { %v2045_v49 = vmul.f32 %v4735_v26, %v2037_v45 }
 0xfb3   :  { %2052 = vrot.lane.b32.xlu0 %v2043_v4, %s3908_s11 }
 0xfb4   :  { %2056 = vrot.lane.b32.xlu1 %v2045_v49, %s3908_s11  ;;  %v1981_v50 = vpop.permute.xlu0 %1980 }
 0xfb5   :  { %v1989_v8 = vmul.f32 %v4745_v37, %v1981_v50 }
 0xfb7   :  { %2000 = vrot.lane.b32.xlu0 %v1989_v8, %s3908_s11 }
0x101a   :  { %v1999_v62 = vpop.permute.xlu1 %1998 }
0x101b   :  { %v4752_v10 = vadd.f32 %v1999_v62, %v1968_v20 }
0x101d   :  { %3684 = vtanh.f32 %v4752_v10  ;;  %v2055_v53 = vpop.permute.xlu0 %2054 }
0x101e   :  { %v1995_v13 = vpop.permute.xlu1 %1994  ;;  %v4764_v14 = vadd.f32 %v2055_v53, %v2024_v44 }
0x101f   :  { %v4758_v6 = vadd.f32 %v1995_v13, %v1966_v15 }
0x1021   :  { %3686 = vtanh.f32 %v4758_v6  ;;  %v1997_v47 = vpop.permute.xlu0 %1996 }
0x1022   :  { %v2051_v7 = vpop.permute.xlu1 %2050  ;;  %3688 = vtanh.f32 %v4764_v14  ;;  %v4774_v9 = vadd.f32 %v1997_v47, %v1967_v59 }
0x1023   :  { %v4766_v1 = vadd.f32 %v2051_v7, %v2022_v56 }
0x1025   :  { %3690 = vtanh.f32 %v4766_v1  ;;  %v2053_v63 = vpop.permute.xlu0 %2052 }
0x1026   :  { %v2057_v31 = vpop.permute.xlu1 %2056  ;;  %3692 = vtanh.f32 %v4774_v9  ;;  %v4783_v22 = vadd.f32 %v2053_v63, %v2023_v57 }
0x1027   :  { %v3685_v60 = vpop.eup %3684  ;;  %v4776_v42 = vadd.f32 %v2057_v31, %v2025_v39 }
0x1028   :  { %2078 = vrot.lane.b32.xlu1 %v3685_v60, %s3907_s2 }
0x1029   :  { %3694 = vtanh.f32 %v4776_v42  ;;  %v2001_v34 = vpop.permute.xlu0 %2000 }
0x102a   :  { %3696 = vtanh.f32 %v4783_v22  ;;  %v4788_v38 = vadd.f32 %v2001_v34, %v1969_v3 }
0x102b   :  { %v3687_v24 = vpop.eup %3686 }
0x102c   :  { %2074 = vrot.lane.b32.xlu1 %v3687_v24, %s3907_s2  ;;  %v3689_v12 = vpop.eup %3688  ;;  %3698 = vtanh.f32 %v4788_v38 }
0x102d   :  { %2102 = vrot.lane.b32.xlu0 %v3689_v12, %s3907_s2 }
0x102f   :  { %v3691_v46 = vpop.eup %3690 }
0x1030   :  { %2098 = vrot.lane.b32.xlu1 %v3691_v46, %s3907_s2  ;;  %v3693_v61 = vpop.eup %3692 }
0x1031   :  { %2076 = vrot.lane.b32.xlu0 %v3693_v61, %s3907_s2 }
0x1033   :  { %v3695_v51 = vpop.eup %3694 }
0x1034   :  { %2104 = vrot.lane.b32.xlu1 %v3695_v51, %s3907_s2  ;;  %v3697_v17 = vpop.eup %3696 }
0x1035   :  { %2100 = vrot.lane.b32.xlu0 %v3697_v17, %s3907_s2 }
0x1036   :  { %v3699_v41 = vpop.eup %3698 }
0x1039   :  { %2080 = vrot.lane.b32.xlu0 %v3699_v41, %s3907_s2 }
0x109a   :  { %v2079_v33 = vpop.permute.xlu1 %2078 }
0x109b   :  { %v2088_v4 = vmul.f32 %v4717_v2, %v2079_v33 }
0x109d   :  { %v2120_v15 = vrot.slane %v2088_v4, 6 }
0x109e   :  { %v2075_v45 = vpop.permute.xlu1 %2074 }
0x109f   :  { %v2103_v49 = vpop.permute.xlu0 %2102  ;;  %v2086_v36 = vmul.f32 %v4721_v11, %v2075_v45 }
0x10a0   :  { %v2112_v18 = vmul.f32 %v4727_v30, %v2103_v49 }
0x10a2   :  { %v2099_v40 = vpop.permute.xlu1 %2098 }
0x10a3   :  { %v2077_v50 = vpop.permute.xlu0 %2076  ;;  %v2110_v20 = vmul.f32 %v4724_v28, %v2099_v40 }
0x10a4   :  { %v2087_v8 = vmul.f32 %v4733_v48, %v2077_v50  ;;  %v2136_v48 = vrot.slane %v2112_v18, 3 }
0x10a5   :  { %v2133_v44 = vrot.slane %v2110_v20, 5 }
0x10a6   :  { %v2118_v62 = vrot.slane %v2087_v8, 7  ;;  %v2105_v11 = vpop.permute.xlu1 %2104 }
0x10a7   :  { %v2101_v13 = vpop.permute.xlu0 %2100  ;;  %v2113_v54 = vmul.f32 %v4735_v26, %v2105_v11 }
0x10a8   :  { %v2119_v43 = vsel %vm1434_vm8, %v2118_v62, %v2086_v36  ;;  %v2111_v58 = vmul.f32 %v4740_v52, %v2101_v13 }
0x10a9   :  { %v2121_v56 = vsel %vm1778_vm9, %v2120_v15, %v2119_v43  ;;  %v2138_v52 = vrot.slane %v2113_v54, 2 }
0x10aa   :  { %v2134_v2 = vrot.slane %v2111_v58, 4  ;;  %2123 = vrot.lane.b32.xlu0 %v2121_v56, %s3908_s11 }
0x10ab   :  { %v2081_v53 = vpop.permute.xlu0 %2080 }
0x10ac   :  { %v2135_v28 = vsel %vm1434_vm8, %v2134_v2, %v2133_v44  ;;  %v2089_v7 = vmul.f32 %v4745_v37, %v2081_v53 }
0x10ad   :  { %v2137_v30 = vsel %vm1778_vm9, %v2136_v48, %v2135_v28 }
0x10ae   :  { %v2122_v55 = vrot.slane %v2089_v7, 5  ;;  %2139 = vrot.lane.b32.xlu0 %v2137_v30, %s3907_s2 }
0x10b0   :  { %2125 = vrot.lane.b32.xlu1 %v2122_v55, %s3908_s11 }
0x10b4   :  { %2141 = vrot.lane.b32.xlu1 %v2138_v52, %s3907_s2 }
0x111c   :  { %v2124_v59 = vpop.permute.xlu0 %2123 }
0x1120   :  { %v2140_v47 = vpop.permute.xlu0 %2139 }
0x1121   :  { %v2145_v60 = vsel %vm418_vm4, %v2124_v59, %v2140_v47 }
0x1122   :  { %v2126_v39 = vpop.permute.xlu1 %2125  ;;  %v2150_v31 = vrot.slane %v2145_v60, 5 }
0x1126   :  { %v2142_v16 = vpop.permute.xlu1 %2141 }
0x1127   :  { %v2146_v37 = vsel %vm418_vm4, %v2126_v39, %v2142_v16 }
0x1128   :  { %v2151_v57 = vrot.slane %v2146_v37, 5 }
0x112a   :  { %v2152_v63 = vsel %vm2149_vm10, %v2150_v31, %v2151_v57 }
0x112b   :  { %3104 = vmatmul.mubr.msk.f32.vlgmr.msra.gmra.mrb[12].mxu0 %vm420_vm5, %v2152_v63 }
0x112c   :  { %3156 = vmatprep.mubr.msk.f32.mxu0 %vm3910_vm12, %v3906_v0 }
0x11fe   :  { %v2221_v26 = vpop.f32.mrb[12].mxu0 }
0x11ff   :  { %v2223_v24 = vpop.f32.mrb[13].mxu0  ;;  %v2229_v5 = vrot.slane %v2221_v26, 4  ;;  %v2228_v61 = vrot.slane %v2221_v26, 3  ;;  %v2230_v33 = vrot.slane %v2221_v26, 5  ;;  %v2227_v4 = vrot.slane %v2221_v26, 2 }
0x1200   :  { %v2240_v34 = vrot.slane %v2223_v24, 7  ;;  %v2241_v12 = vrot.slane %v2223_v24, 1  ;;  %v2248_v51 = vadd.f32 %v2223_v24, %v3998_v25  ;;  %v2242_v17 = vrot.slane %v2223_v24, 2 }
0x1201   :  { %v2237_v3 = vadd.f32 %v2229_v5, %v4002_v27  ;;  %v2236_v45 = vadd.f32 %v2228_v61, %v3996_v23  ;;  %v2238_v50 = vadd.f32 %v2230_v33, %v4008_v32  ;;  %v2235_v8 = vadd.f32 %v2227_v4, %v3990_v19 }
0x1202   :  { %v2247_v46 = vadd.f32 %v2240_v34, %v3992_v21  ;;  %v2249_v41 = vadd.f32 %v2241_v12, %v4004_v29  ;;  %v2250_v40 = vadd.f32 %v2242_v17, %v4010_v35  ;;  %v3110_v56 = vmul.f32 -1.442695, %v2248_v51 }
0x1203   :  { %3700 = vtanh.f32 %v2237_v3  ;;  %v3107_v58 = vmul.f32 -1.442695, %v2237_v3  ;;  %v3106_v48 = vmul.f32 -1.442695, %v2236_v45  ;;  %v3108_v28 = vmul.f32 -1.442695, %v2238_v50 }
0x1204   :  { %3702 = vtanh.f32 %v2247_v46  ;;  %v3109_v44 = vmul.f32 -1.442695, %v2247_v46  ;;  %v3111_v2 = vmul.f32 -1.442695, %v2249_v41  ;;  %v3112_v11 = vmul.f32 -1.442695, %v2250_v40 }
0x1205   :  { %3704 = vtanh.f32 %v2248_v51  ;;  %v3105_v30 = vmul.f32 -1.442695, %v2235_v8 }
0x1206   :  { %3706 = vtanh.f32 %v2249_v41 }
0x1207   :  { %3708 = vtanh.f32 %v2236_v45 }
0x1208   :  { %3710 = vtanh.f32 %v2250_v40 }
0x1209   :  { %3712 = vtanh.f32 %v2238_v50 }
0x120a   :  { %3714 = vtanh.f32 %v2235_v8 }
0x120b   :  { %3716 = vpow2.f32 %v3107_v58 }
0x120c   :  { %3718 = vpow2.f32 %v3109_v44  ;;  %v2313_v44 = vrot.slane %v4752_v10, 7 }
0x120d   :  { %v3701_v49 = vpop.eup %3700  ;;  %3720 = vpow2.f32 %v3110_v56 }
0x120e   :  { %2331 = vrot.lane.b32.xlu1 %v3701_v49, %s3907_s2  ;;  %v3703_v36 = vpop.eup %3702  ;;  %3722 = vpow2.f32 %v3111_v2 }
0x120f   :  { %v3705_v20 = vpop.eup %3704  ;;  %3724 = vpow2.f32 %v3106_v48 }
0x1210   :  { %2385 = vrot.lane.b32.xlu0 %v3705_v20, %s3907_s2  ;;  %v3707_v62 = vpop.eup %3706  ;;  %3726 = vpow2.f32 %v3112_v11  ;;  %v2368_v11 = vrot.slane %v4783_v22, 1 }
0x1211   :  { %v3709_v18 = vpop.eup %3708  ;;  %3728 = vpow2.f32 %v3108_v28 }
0x1212   :  { %2383 = vrot.lane.b32.xlu1 %v3703_v36, %s3907_s2  ;;  %v3711_v15 = vpop.eup %3710 }
0x1213   :  { %v3713_v13 = vpop.eup %3712 }
0x1214   :  { %2329 = vrot.lane.b32.xlu0 %v3709_v18, %s3907_s2  ;;  %v3715_v43 = vpop.eup %3714 }
0x1215   :  { %v3717_v53 = vpop.eup %3716 }
0x1216   :  { %2387 = vrot.lane.b32.xlu1 %v3707_v62, %s3907_s2  ;;  %v2265_v7 = vadd.f32 1.0, %v3717_v53  ;;  %v3719_v55 = vpop.eup %3718  ;;  %v2367_v53 = vrot.slane %v4766_v1, 1 }
0x1217   :  { %v3721_v54 = vpop.eup %3720  ;;  %v2291_v52 = vadd.f32 1.0, %v3719_v55  ;;  %v2369_v55 = vrot.slane %v4764_v14, 1 }
0x1218   :  { %2333 = vrot.lane.b32.xlu0 %v3713_v13, %s3907_s2  ;;  %3730 = vrcp.f32 %v2265_v7  ;;  %v3723_v59 = vpop.eup %3722  ;;  %v2292_v47 = vadd.f32 1.0, %v3721_v54 }
0x1219   :  { %3732 = vpow2.f32 %v3105_v30  ;;  %v3725_v39 = vpop.eup %3724  ;;  %v2293_v60 = vadd.f32 1.0, %v3723_v59 }
0x121a   :  { %2389 = vrot.lane.b32.xlu1 %v3711_v15, %s3907_s2  ;;  %3734 = vrcp.f32 %v2291_v52  ;;  %v3727_v16 = vpop.eup %3726  ;;  %v2264_v37 = vadd.f32 1.0, %v3725_v39  ;;  %v2312_v52 = vrot.slane %v4774_v9, 7  ;;  %v2370_v39 = vrot.slane %v4776_v42, 1 }
0x121b   :  { %3736 = vrcp.f32 %v2292_v47  ;;  %v3729_v31 = vpop.eup %3728  ;;  %v2294_v63 = vadd.f32 1.0, %v3727_v16  ;;  %v2314_v16 = vrot.slane %v4788_v38, 7 }
0x121c   :  { %2327 = vrot.lane.b32.xlu0 %v3715_v43, %s3907_s2  ;;  %3738 = vrcp.f32 %v2293_v60  ;;  %v2266_v24 = vadd.f32 1.0, %v3729_v31 }
0x121d   :  { %3740 = vrcp.f32 %v2264_v37 }
0x121e   :  { %3742 = vrcp.f32 %v2294_v63 }
0x121f   :  { %3744 = vrcp.f32 %v2266_v24 }
0x1222   :  { %v4832_v57 = vpop.eup %3730 }
0x1223   :  { %v3733_v3 = vpop.eup %3732  ;;  %v2321_v56 = vmul.f32 %v4832_v57, %v2313_v44 }
0x1224   :  { %v2263_v34 = vadd.f32 1.0, %v3733_v3  ;;  %v4836_v12 = vpop.eup %3734 }
0x1225   :  { %v4838_v61 = vpop.eup %3736  ;;  %v2375_v28 = vmul.f32 %v4836_v12, %v2367_v53 }
0x1226   :  { %3746 = vrcp.f32 %v2263_v34  ;;  %v4843_v33 = vpop.eup %3738  ;;  %v2376_v7 = vmul.f32 %v4838_v61, %v2368_v11 }
0x1227   :  { %v4846_v49 = vpop.eup %3740  ;;  %v2377_v1 = vmul.f32 %v4843_v33, %v2369_v55 }
0x1228   :  { %v4851_v8 = vpop.eup %3742  ;;  %v2320_v22 = vmul.f32 %v4846_v49, %v2312_v52 }
0x1229   :  { %v4854_v20 = vpop.eup %3744  ;;  %v2378_v31 = vmul.f32 %v4851_v8, %v2370_v39 }
0x122a   :  { %v2322_v63 = vmul.f32 %v4854_v20, %v2314_v16 }
0x1230   :  { %v4860_v13 = vpop.eup %3746 }
0x1280   :  { %v2332_v26 = vpop.permute.xlu1 %2331 }
0x1281   :  { %v2341_v5 = vmul.f32 %v4832_v57, %v2332_v26 }
0x1282   :  { %v2386_v51 = vpop.permute.xlu0 %2385 }
0x1283   :  { %2351 = vrot.lane.b32.xlu1 %v2341_v5, %s3908_s11  ;;  %v2396_v41 = vmul.f32 %v4838_v61, %v2386_v51  ;;  %v2311_v5 = vrot.slane %v4758_v6, 7 }
0x1284   :  { %v2384_v46 = vpop.permute.xlu1 %2383 }
0x1285   :  { %v2395_v17 = vmul.f32 %v4836_v12, %v2384_v46  ;;  %2405 = vrot.lane.b32.xlu0 %v2396_v41, %s3908_s11  ;;  %v2319_v3 = vmul.f32 %v4860_v13, %v2311_v5 }
0x1286   :  { %v2330_v40 = vpop.permute.xlu0 %2329 }
0x1287   :  { %2403 = vrot.lane.b32.xlu1 %v2395_v17, %s3908_s11  ;;  %v2340_v50 = vmul.f32 %v4846_v49, %v2330_v40 }
0x1288   :  { %v2388_v45 = vpop.permute.xlu1 %2387 }
0x1289   :  { %v2397_v4 = vmul.f32 %v4843_v33, %v2388_v45  ;;  %2349 = vrot.lane.b32.xlu0 %v2340_v50, %s3908_s11 }
0x128a   :  { %v2334_v62 = vpop.permute.xlu0 %2333 }
0x128b   :  { %2407 = vrot.lane.b32.xlu1 %v2397_v4, %s3908_s11  ;;  %v2342_v15 = vmul.f32 %v4854_v20, %v2334_v62 }
0x128c   :  { %v2390_v36 = vpop.permute.xlu1 %2389 }
0x128d   :  { %v2398_v18 = vmul.f32 %v4851_v8, %v2390_v36  ;;  %2353 = vrot.lane.b32.xlu0 %v2342_v15, %s3908_s11 }
0x128e   :  { %v2328_v43 = vpop.permute.xlu0 %2327 }
0x128f   :  { %2409 = vrot.lane.b32.xlu1 %v2398_v18, %s3908_s11  ;;  %v2339_v58 = vmul.f32 %v4860_v13, %v2328_v43 }
0x1291   :  { %2347 = vrot.lane.b32.xlu0 %v2339_v58, %s3908_s11 }
0x12f5   :  { %v2352_v2 = vpop.permute.xlu1 %2351 }
0x12f6   :  { %v4866_v48 = vadd.f32 %v2352_v2, %v2321_v56 }
0x12f7   :  { %v2406_v54 = vpop.permute.xlu0 %2405 }
0x12f8   :  { %3748 = vtanh.f32 %v4866_v48  ;;  %v4877_v59 = vadd.f32 %v2406_v54, %v2376_v7 }
0x12f9   :  { %v2404_v30 = vpop.permute.xlu1 %2403 }
0x12fa   :  { %v4874_v10 = vadd.f32 %v2404_v30, %v2375_v28 }
0x12fb   :  { %v2350_v60 = vpop.permute.xlu0 %2349 }
0x12fc   :  { %3750 = vtanh.f32 %v4874_v10  ;;  %v4887_v37 = vadd.f32 %v2350_v60, %v2320_v22 }
0x12fd   :  { %3752 = vtanh.f32 %v4877_v59  ;;  %v2408_v47 = vpop.permute.xlu1 %2407 }
0x12fe   :  { %v4884_v14 = vadd.f32 %v2408_v47, %v2377_v1 }
0x12ff   :  { %v2354_v42 = vpop.permute.xlu0 %2353 }
0x1300   :  { %3754 = vtanh.f32 %v4884_v14  ;;  %v4897_v38 = vadd.f32 %v2354_v42, %v2322_v63 }
0x1301   :  { %3756 = vtanh.f32 %v4887_v37  ;;  %v2410_v26 = vpop.permute.xlu1 %2409 }
0x1302   :  { %v3749_v9 = vpop.eup %3748  ;;  %v4894_v24 = vadd.f32 %v2410_v26, %v2378_v31 }
0x1303   :  { %2431 = vrot.lane.b32.xlu1 %v3749_v9, %s3907_s2  ;;  %v2348_v46 = vpop.permute.xlu0 %2347 }
0x1304   :  { %3758 = vtanh.f32 %v4894_v24  ;;  %v4902_v17 = vadd.f32 %v2348_v46, %v2319_v3 }
0x1305   :  { %3760 = vtanh.f32 %v4897_v38 }
0x1306   :  { %v3751_v34 = vpop.eup %3750  ;;  %3762 = vtanh.f32 %v4902_v17 }
0x1307   :  { %v3753_v51 = vpop.eup %3752  ;;  %2451 = vrot.lane.b32.xlu1 %v3751_v34, %s3907_s2 }
0x1308   :  { %2453 = vrot.lane.b32.xlu0 %v3753_v51, %s3907_s2 }
0x130a   :  { %v3755_v6 = vpop.eup %3754 }
0x130b   :  { %v3757_v41 = vpop.eup %3756  ;;  %2455 = vrot.lane.b32.xlu1 %v3755_v6, %s3907_s2 }
0x130c   :  { %2429 = vrot.lane.b32.xlu0 %v3757_v41, %s3907_s2 }
0x130e   :  { %v3759_v45 = vpop.eup %3758 }
0x130f   :  { %v3761_v40 = vpop.eup %3760  ;;  %2457 = vrot.lane.b32.xlu1 %v3759_v45, %s3907_s2 }
0x1310   :  { %2433 = vrot.lane.b32.xlu0 %v3761_v40, %s3907_s2  ;;  %v3763_v4 = vpop.eup %3762 }
0x1314   :  { %2427 = vrot.lane.b32.xlu0 %v3763_v4, %s3907_s2 }
0x1375   :  { %v2432_v50 = vpop.permute.xlu1 %2431 }
0x1376   :  { %v2441_v43 = vmul.f32 %v4832_v57, %v2432_v50 }
0x1378   :  { %v2473_v11 = vrot.slane %v2441_v43, 6 }
0x1379   :  { %v2452_v36 = vpop.permute.xlu1 %2451 }
0x137a   :  { %v2454_v62 = vpop.permute.xlu0 %2453  ;;  %v2463_v28 = vmul.f32 %v4836_v12, %v2452_v36 }
0x137b   :  { %v2464_v55 = vmul.f32 %v4838_v61, %v2454_v62 }
0x137d   :  { %v2456_v18 = vpop.permute.xlu1 %2455  ;;  %v2487_v12 = vrot.slane %v2464_v55, 2 }
0x137e   :  { %v2430_v15 = vpop.permute.xlu0 %2429  ;;  %v2465_v53 = vmul.f32 %v4843_v33, %v2456_v18 }
0x137f   :  { %v2440_v56 = vmul.f32 %v4846_v49, %v2430_v15  ;;  %v2486_v49 = vrot.slane %v2463_v28, 3 }
0x1380   :  { %v2489_v1 = vrot.slane %v2465_v53, 1 }
0x1381   :  { %v2458_v44 = vpop.permute.xlu1 %2457  ;;  %v2471_v52 = vrot.slane %v2440_v56, 7  ;;  %v2488_v61 = vsel %vm1778_vm9, %v2487_v12, %v2486_v49 }
0x1382   :  { %v2434_v58 = vpop.permute.xlu0 %2433  ;;  %v2466_v30 = vmul.f32 %v4851_v8, %v2458_v44 }
0x1383   :  { %v2442_v2 = vmul.f32 %v4854_v20, %v2434_v58 }
0x1384   :  { %v2490_v20 = vsel %vm393_vm1, %v2466_v30, %v2489_v1 }
0x1385   :  { %v2474_v7 = vrot.slane %v2442_v2, 5 }
0x1386   :  { %v2428_v54 = vpop.permute.xlu0 %2427 }
0x1387   :  { %v2439_v57 = vmul.f32 %v4860_v13, %v2428_v54  ;;  %v2475_v22 = vsel %vm393_vm1, %v2474_v7, %v2473_v11 }
0x1388   :  { %2478 = vrot.lane.b32.xlu1 %v2475_v22, %s3908_s11 }
0x1389   :  { %v2472_v33 = vsel %vm1778_vm9, %v2471_v52, %v2439_v57 }
0x138a   :  { %2476 = vrot.lane.b32.xlu0 %v2472_v33, %s3908_s11 }
0x138c   :  { %2493 = vrot.lane.b32.xlu1 %v2490_v20, %s3907_s2 }
0x138e   :  { %2491 = vrot.lane.b32.xlu0 %v2488_v61, %s3907_s2 }
0x13fa   :  { %v2479_v8 = vpop.permute.xlu1 %2478 }
0x13fc   :  { %v2477_v13 = vpop.permute.xlu0 %2476 }
0x13fe   :  { %v2494_v47 = vpop.permute.xlu1 %2493 }
0x13ff   :  { %v2498_v39 = vsel %vm418_vm4, %v2479_v8, %v2494_v47 }
0x1400   :  { %v2492_v60 = vpop.permute.xlu0 %2491  ;;  %v2503_v9 = vrot.slane %v2498_v39, 6 }
0x1401   :  { %v2497_v16 = vsel %vm418_vm4, %v2477_v13, %v2492_v60 }
0x1402   :  { %v2502_v31 = vrot.slane %v2497_v16, 6 }
0x1404   :  { %v2504_v63 = vsel %vm2501_vm11, %v2502_v31, %v2503_v9 }
0x1405   :  { %3113 = vmatmul.mubr.msk.f32.vlgmr.msra.gmra.mrb[6].mxu1 %vm420_vm5, %v2504_v63 }
0x1406   :  { %3167 = vmatprep.mubr.msk.f32.mxu1 %vm3910_vm12, %v3906_v0 }
0x14d8   :  { %v2573_v26 = vpop.f32.mrb[6].mxu1 }
0x14d9   :  { %v2580_v42 = vrot.slane %v2573_v26, 2  ;;  %v2575_v5 = vpop.f32.mrb[7].mxu1  ;;  %v2581_v46 = vrot.slane %v2573_v26, 3  ;;  %v2582_v40 = vrot.slane %v2573_v26, 4 }
0x14da   :  { %v2593_v34 = vrot.slane %v2575_v5, 2  ;;  %v2599_v51 = vadd.f32 %v2575_v5, %v3992_v21  ;;  %v2594_v45 = vrot.slane %v2575_v5, 3  ;;  %v2592_v50 = vrot.slane %v2575_v5, 1 }
0x14db   :  { %v2588_v3 = vadd.f32 %v2580_v42, %v3996_v23  ;;  %v2589_v4 = vadd.f32 %v2581_v46, %v4002_v27  ;;  %v2579_v23 = vrot.slane %v2573_v26, 1  ;;  %v2590_v62 = vadd.f32 %v2582_v40, %v4008_v32 }
0x14dc   :  { %v2601_v6 = vadd.f32 %v2593_v34, %v4004_v29  ;;  %v2602_v36 = vadd.f32 %v2594_v45, %v4010_v35  ;;  %v2600_v21 = vadd.f32 %v2592_v50, %v3998_v25  ;;  %v3118_v58 = vmul.f32 -1.442695, %v2599_v51 }
0x14dd   :  { %3764 = vtanh.f32 %v2588_v3  ;;  %v2587_v29 = vadd.f32 %v2579_v23, %v3990_v19  ;;  %v3115_v43 = vmul.f32 -1.442695, %v2588_v3  ;;  %v3116_v2 = vmul.f32 -1.442695, %v2589_v4 }
0x14de   :  { %3766 = vtanh.f32 %v2599_v51  ;;  %v3120_v44 = vmul.f32 -1.442695, %v2601_v6  ;;  %v3121_v11 = vmul.f32 -1.442695, %v2602_v36  ;;  %v3117_v28 = vmul.f32 -1.442695, %v2590_v62 }
0x14df   :  { %3768 = vtanh.f32 %v2601_v6  ;;  %v3119_v7 = vmul.f32 -1.442695, %v2600_v21  ;;  %v3114_v30 = vmul.f32 -1.442695, %v2587_v29 }
0x14e0   :  { %3770 = vtanh.f32 %v2589_v4 }
0x14e1   :  { %3772 = vtanh.f32 %v2602_v36 }
0x14e2   :  { %3774 = vtanh.f32 %v2590_v62 }
0x14e3   :  { %3776 = vtanh.f32 %v2600_v21 }
0x14e4   :  { %3778 = vtanh.f32 %v2587_v29 }
0x14e5   :  { %3780 = vpow2.f32 %v3115_v43 }
0x14e6   :  { %3782 = vpow2.f32 %v3118_v58  ;;  %v2665_v58 = vrot.slane %v4866_v48, 7 }
0x14e7   :  { %v3765_v41 = vpop.eup %3764  ;;  %3784 = vpow2.f32 %v3120_v44 }
0x14e8   :  { %2681 = vrot.lane.b32.xlu0 %v3765_v41, %s3907_s2  ;;  %v3767_v18 = vpop.eup %3766  ;;  %3786 = vpow2.f32 %v3116_v2 }
0x14e9   :  { %2735 = vrot.lane.b32.xlu1 %v3767_v18, %s3907_s2  ;;  %v3769_v27 = vpop.eup %3768  ;;  %v2664_v18 = vrot.slane %v4887_v37, 7 }
0x14ea   :  { %v3771_v15 = vpop.eup %3770 }
0x14eb   :  { %v3773_v35 = vpop.eup %3772 }
0x14ec   :  { %2739 = vrot.lane.b32.xlu0 %v3769_v27, %s3907_s2  ;;  %v3775_v32 = vpop.eup %3774 }
0x14ed   :  { %2683 = vrot.lane.b32.xlu1 %v3771_v15, %s3907_s2  ;;  %v3777_v25 = vpop.eup %3776 }
0x14ee   :  { %v3779_v19 = vpop.eup %3778 }
0x14ef   :  { %v3781_v56 = vpop.eup %3780 }
0x14f0   :  { %2741 = vrot.lane.b32.xlu0 %v3773_v35, %s3907_s2  ;;  %v2616_v53 = vadd.f32 1.0, %v3781_v56  ;;  %v3783_v55 = vpop.eup %3782 }
0x14f1   :  { %2685 = vrot.lane.b32.xlu1 %v3775_v32, %s3907_s2  ;;  %v3785_v54 = vpop.eup %3784  ;;  %v2643_v52 = vadd.f32 1.0, %v3783_v55  ;;  %v2719_v32 = vrot.slane %v4874_v10, 1  ;;  %v2722_v10 = vrot.slane %v4894_v24, 1 }
0x14f2   :  { %3788 = vrcp.f32 %v2616_v53  ;;  %v3787_v1 = vpop.eup %3786  ;;  %v2645_v57 = vadd.f32 1.0, %v3785_v54  ;;  %v2720_v54 = vrot.slane %v4877_v59, 1 }
0x14f3   :  { %3790 = vpow2.f32 %v3121_v11  ;;  %v2617_v20 = vadd.f32 1.0, %v3787_v1 }
0x14f4   :  { %2737 = vrot.lane.b32.xlu0 %v3777_v25, %s3907_s2  ;;  %3792 = vpow2.f32 %v3117_v28  ;;  %v2721_v25 = vrot.slane %v4884_v14, 1  ;;  %v2666_v14 = vrot.slane %v4897_v38, 7 }
0x14f5   :  { %2679 = vrot.lane.b32.xlu1 %v3779_v19, %s3907_s2  ;;  %3794 = vpow2.f32 %v3119_v7 }
0x14f6   :  { %3796 = vpow2.f32 %v3114_v30 }
0x14f7   :  { %3798 = vrcp.f32 %v2643_v52 }
0x14f8   :  { %3800 = vrcp.f32 %v2645_v57  ;;  %v2663_v57 = vrot.slane %v4902_v17, 7 }
0x14f9   :  { %3802 = vrcp.f32 %v2617_v20 }
0x14fc   :  { %v4947_v22 = vpop.eup %3788 }
0x14fd   :  { %v3791_v33 = vpop.eup %3790  ;;  %v2672_v27 = vmul.f32 %v4947_v22, %v2664_v18 }
0x14fe   :  { %v3793_v61 = vpop.eup %3792  ;;  %v2646_v8 = vadd.f32 1.0, %v3791_v33 }
0x14ff   :  { %v3795_v13 = vpop.eup %3794  ;;  %v2618_v47 = vadd.f32 1.0, %v3793_v61 }
0x1500   :  { %v3797_v39 = vpop.eup %3796  ;;  %v2644_v60 = vadd.f32 1.0, %v3795_v13  ;;  %3804 = vrcp.f32 %v2646_v8  ;;  %v2851_v13 = vld [vmem:[%s5083_s4] sm:$0xff] }
0x1501   :  { %v2615_v16 = vadd.f32 1.0, %v3797_v39  ;;  %3806 = vrcp.f32 %v2618_v47  ;;  %v4951_v9 = vpop.eup %3798  ;;  %v2852_v47 = vld [vmem:[%s5083_s4 + $0x8] sm:$0xff]  ;;  %v2853_v39 = vld [vmem:[%s5083_s4 + $0x10] sm:$0xff] }
0x1502   :  { %3808 = vrcp.f32 %v2644_v60  ;;  %v4954_v26 = vpop.eup %3800  ;;  %v2727_v19 = vmul.f32 %v4951_v9, %v2719_v32 }
0x1503   :  { %3810 = vrcp.f32 %v2615_v16  ;;  %v4958_v3 = vpop.eup %3802  ;;  %v2729_v56 = vmul.f32 %v4954_v26, %v2721_v25  ;;  %v3909_v16 = vmov 0.0|0.0  }
0x1504   :  { %v2673_v37 = vmul.f32 %v4958_v3, %v2665_v58  ;;  %3286 = vmatprep.subr.bf16.mxu0 %v3909_v16  ;;  %3298 = vmatprep.subr.bf16.mxu1 %v3909_v16 }
0x150a   :  { %v4962_v51 = vpop.eup %3804 }
0x150b   :  { %v4965_v41 = vpop.eup %3806  ;;  %v2730_v48 = vmul.f32 %v4962_v51, %v2722_v10 }
0x150c   :  { %v4970_v50 = vpop.eup %3808  ;;  %v2674_v30 = vmul.f32 %v4965_v41, %v2666_v14 }
0x150d   :  { %v4973_v23 = vpop.eup %3810  ;;  %v2728_v24 = vmul.f32 %v4970_v50, %v2720_v54 }
0x150e   :  { %v2671_v38 = vmul.f32 %v4973_v23, %v2663_v57 }
0x155a   :  { %v2682_v49 = vpop.permute.xlu0 %2681 }
0x155b   :  { %v2692_v12 = vmul.f32 %v4947_v22, %v2682_v49  ;;  %v2736_v31 = vpop.permute.xlu1 %2735 }
0x155c   :  { %v2747_v63 = vmul.f32 %v4951_v9, %v2736_v31  ;;  %v3287_v31 = vpack.c.bf16 %v2852_v47, %v2851_v13 }
0x155d   :  { %2701 = vrot.lane.b32.xlu0 %v2692_v12, %s3908_s11 }
0x155e   :  { %v2740_v42 = vpop.permute.xlu0 %2739  ;;  %2755 = vrot.lane.b32.xlu1 %v2747_v63, %s3908_s11  ;;  %v2854_v63 = vld [vmem:[%s5083_s4 + $0x18] sm:$0xff]  ;;  %3288 = vmatpush3.bf16.msra.mxu0 %v3287_v31 }
0x155f   :  { %v2749_v5 = vmul.f32 %v4954_v26, %v2740_v42  ;;  %v2684_v34 = vpop.permute.xlu1 %2683  ;;  %3289 = vmatprep.subr.bf16.mxu0 %v3909_v16 }
0x1560   :  { %v2693_v46 = vmul.f32 %v4958_v3, %v2684_v34 }
0x1561   :  { %2759 = vrot.lane.b32.xlu0 %v2749_v5, %s3908_s11  ;;  %v3290_v5 = vpack.c.bf16 %v2854_v63, %v2853_v39 }
0x1562   :  { %2703 = vrot.lane.b32.xlu1 %v2693_v46, %s3908_s11  ;;  %v2742_v6 = vpop.permute.xlu0 %2741 }
0x1563   :  { %v2686_v45 = vpop.permute.xlu1 %2685  ;;  %v2750_v40 = vmul.f32 %v4962_v51, %v2742_v6  ;;  %3291 = vmatpush3.bf16.msra.mxu0 %v3290_v5 }
0x1564   :  { %v2694_v4 = vmul.f32 %v4965_v41, %v2686_v45  ;;  %3292 = vmatprep.subr.bf16.mxu0 %v3909_v16 }
0x1565   :  { %2761 = vrot.lane.b32.xlu0 %v2750_v40, %s3908_s11  ;;  %v2855_v40 = vld [vmem:[%s5083_s4 + $0x20] sm:$0xff] }
0x1566   :  { %2705 = vrot.lane.b32.xlu1 %v2694_v4, %s3908_s11  ;;  %v2738_v36 = vpop.permute.xlu0 %2737  ;;  %v2856_v4 = vld [vmem:[%s5083_s4 + $0x28] sm:$0xff] }
0x1567   :  { %v2680_v62 = vpop.permute.xlu1 %2679  ;;  %v2748_v21 = vmul.f32 %v4970_v50, %v2738_v36 }
0x1568   :  { %v2691_v29 = vmul.f32 %v4973_v23, %v2680_v62  ;;  %v3293_v62 = vpack.c.bf16 %v2856_v4, %v2855_v40 }
0x1569   :  { %2757 = vrot.lane.b32.xlu0 %v2748_v21, %s3908_s11 }
0x156a   :  { %2699 = vrot.lane.b32.xlu1 %v2691_v29, %s3908_s11  ;;  %3294 = vmatpush3.bf16.msra.mxu0 %v3293_v62 }
0x156b   :  { %3295 = vmatprep.subr.bf16.mxu0 %v3909_v16 }
0x15cf   :  { %v2702_v15 = vpop.permute.xlu0 %2701 }
0x15d0   :  { %v2712_v35 = vadd.f32 %v2702_v15, %v2672_v27  ;;  %v2756_v43 = vpop.permute.xlu1 %2755  ;;  %v2857_v15 = vld [vmem:[%s5083_s4 + $0x30] sm:$0xff] }
0x15d1   :  { %v2767_v44 = vadd.f32 %v2756_v43, %v2727_v19 }
0x15d2   :  { %3812 = vtanh.f32 %v2712_v35  ;;  %v2858_v35 = vld [vmem:[%s5083_s4 + $0x38] sm:$0xff] }
0x15d3   :  { %v2760_v53 = vpop.permute.xlu0 %2759  ;;  %3814 = vtanh.f32 %v2767_v44  ;;  %v3296_v43 = vpack.c.bf16 %v2858_v35, %v2857_v15  ;;  %v2945_v44 = vld [vmem:[%s5085_s6] sm:$0xff] }
0x15d4   :  { %v2769_v11 = vadd.f32 %v2760_v53, %v2729_v56  ;;  %v2704_v28 = vpop.permute.xlu1 %2703 }
0x15d5   :  { %v2713_v7 = vadd.f32 %v2704_v28, %v2673_v37  ;;  %3297 = vmatpush3.bf16.msra.mxu0 %v3296_v43 }
0x15d6   :  { %3816 = vtanh.f32 %v2769_v11 }
0x15d7   :  { %3818 = vtanh.f32 %v2713_v7  ;;  %v2762_v55 = vpop.permute.xlu0 %2761 }
0x15d8   :  { %v2706_v52 = vpop.permute.xlu1 %2705  ;;  %v2770_v1 = vadd.f32 %v2762_v55, %v2730_v48 }
0x15d9   :  { %v2714_v49 = vadd.f32 %v2706_v52, %v2674_v30 }
0x15da   :  { %3820 = vtanh.f32 %v2770_v1 }
0x15db   :  { %3822 = vtanh.f32 %v2714_v49  ;;  %v2758_v33 = vpop.permute.xlu0 %2757 }
0x15dc   :  { %v3813_v2 = vpop.eup %3812  ;;  %v2700_v20 = vpop.permute.xlu1 %2699  ;;  %v2768_v12 = vadd.f32 %v2758_v33, %v2728_v24  ;;  %v2947_v24 = vld [vmem:[%s5085_s6 + $0x10] sm:$0xff] }
0x15dd   :  { %2781 = vrot.lane.b32.xlu0 %v3813_v2, %s3907_s2  ;;  %v3815_v61 = vpop.eup %3814  ;;  %v2711_v8 = vadd.f32 %v2700_v20, %v2671_v38  ;;  %v2948_v38 = vld [vmem:[%s5085_s6 + $0x18] sm:$0xff]  ;;  %v3122_v20 = vld [vmem:[%s5084_s5] ss:$0 sm:$0xff] }
0x15de   :  { %3824 = vtanh.f32 %v2768_v12  ;;  %2803 = vrot.lane.b32.xlu1 %v3815_v61, %s3907_s2  ;;  %v3302_v33 = vpack.c.bf16 %v2948_v38, %v2947_v24 }
0x15df   :  { %3826 = vtanh.f32 %v2711_v8 }
0x15e0   :  { %v3817_v59 = vpop.eup %3816 }
0x15e1   :  { %2807 = vrot.lane.b32.xlu0 %v3817_v59, %s3907_s2  ;;  %v3819_v17 = vpop.eup %3818 }
0x15e2   :  { %2783 = vrot.lane.b32.xlu1 %v3819_v17, %s3907_s2  ;;  %v3124_v17 = vld [vmem:[%s5086_s7] ss:$0 sm:$0xff] }
0x15e4   :  { %v3821_v60 = vpop.eup %3820 }
0x15e5   :  { %v3823_v42 = vpop.eup %3822  ;;  %2809 = vrot.lane.b32.xlu0 %v3821_v60, %s3907_s2 }
0x15e6   :  { %2785 = vrot.lane.b32.xlu1 %v3823_v42, %s3907_s2 }
0x15e8   :  { %v3825_v34 = vpop.eup %3824 }
0x15e9   :  { %v3827_v46 = vpop.eup %3826  ;;  %2805 = vrot.lane.b32.xlu0 %v3825_v34, %s3907_s2 }
0x15ea   :  { %2779 = vrot.lane.b32.xlu1 %v3827_v46, %s3907_s2 }
0x164f   :  { %v2782_v6 = vpop.permute.xlu0 %2781 }
0x1650   :  { %v2804_v45 = vpop.permute.xlu1 %2803  ;;  %v2792_v18 = vmul.f32 %v4947_v22, %v2782_v6 }
0x1652   :  { %v2823_v58 = vrot.slane %v2792_v18, 7 }
0x1653   :  { %v2808_v36 = vpop.permute.xlu0 %2807 }
0x1654   :  { %v2784_v21 = vpop.permute.xlu1 %2783  ;;  %v2817_v25 = vmul.f32 %v4954_v26, %v2808_v36  ;;  %v2946_v26 = vld [vmem:[%s5085_s6 + $0x8] sm:$0xff]  ;;  %s3872_s6 = scalar_lea.vmem %s3038_s22, 64 }
0x1655   :  { %v2793_v29 = vmul.f32 %v4958_v3, %v2784_v21  ;;  %v3299_v53 = vpack.c.bf16 %v2946_v26, %v2945_v44  ;;  %p3873_p2 = scmp.ne.s32.totalorder %s3038_s22, %s3872_s6  ;;  %p3878_p4 = scmp.lt.s32.totalorder %s3872_s6, %s3872_s6 }
0x1656   :  { %v2839_v0 = vrot.slane %v2817_v25, 7 }
0x1657   :  { %v2810_v27 = vpop.permute.xlu0 %2809  ;;  %v2824_v32 = vrot.slane %v2793_v29, 6  ;;  %3300 = vmatpush3.bf16.msra.mxu1 %v3299_v53  ;;  %p3879_p5 = por %p3878_p4, %p3877_p3 }
0x1658   :  { %v2786_v19 = vpop.permute.xlu1 %2785  ;;  %v2818_v3 = vmul.f32 %v4962_v51, %v2810_v27  ;;  %v2815_v51 = vmul.f32 %v4951_v9, %v2804_v45  ;;  %3301 = vmatprep.subr.bf16.mxu1 %v3909_v16 }
0x1659   :  { %v2794_v22 = vmul.f32 %v4965_v41, %v2786_v19  ;;  %v2825_v37 = vsel %vm393_vm1, %v2824_v32, %v2823_v58  ;;  %p3880_p6 = pnand %p3879_p5, %p3873_p2 }
0x165a   :  { %v2841_v10 = vrot.slane %v2818_v3, 6  ;;  %v2838_v30 = vrot.slane %v2815_v51, 1 }
0x165b   :  { %v2826_v56 = vrot.slane %v2794_v22, 5  ;;  %v2806_v2 = vpop.permute.xlu0 %2805  ;;  %3303 = vmatpush3.bf16.msra.mxu1 %v3302_v33 }
0x165c   :  { %v2780_v11 = vpop.permute.xlu1 %2779  ;;  %v2816_v41 = vmul.f32 %v4970_v50, %v2806_v2 }
0x165d   :  { %v2791_v28 = vmul.f32 %v4973_v23, %v2780_v11  ;;  %v2827_v14 = vsel %vm396_vm3, %v2826_v56, %v2825_v37 }
0x165e   :  { %v2840_v7 = vsel %vm393_vm1, %v2839_v0, %v2816_v41  ;;  %2830 = vrot.lane.b32.xlu1 %v2827_v14, %s3908_s11 }
0x165f   :  { %2828 = vrot.lane.b32.xlu0 %v2791_v28, %s3908_s11  ;;  %v2842_v48 = vsel %vm396_vm3, %v2841_v10, %v2840_v7 }
0x1662   :  { %2845 = vrot.lane.b32.xlu1 %v2842_v48, %s3907_s2 }
0x1663   :  { %2843 = vrot.lane.b32.xlu0 %v2838_v30, %s3907_s2 }
0x16d0   :  { %v2831_v9 = vpop.permute.xlu1 %2830 }
0x16d1   :  { %v2829_v50 = vpop.permute.xlu0 %2828 }
0x16d4   :  { %v2846_v23 = vpop.permute.xlu1 %2845 }
0x16d5   :  { %v2850_v55 = vsel %vm418_vm4, %v2831_v9, %v2846_v23  ;;  %v2844_v54 = vpop.permute.xlu0 %2843 }
0x16d6   :  { %v2870_v52 = vrot.slane %v2850_v55, 7  ;;  %v2849_v1 = vsel %vm418_vm4, %v2829_v50, %v2844_v54 }
0x16d7   :  { %v2869_v57 = vrot.slane %v2849_v1, 7 }
0x16d9   :  { %v2871_v49 = vsel %vm2868_vm13, %v2869_v57, %v2870_v52 }
0x16da   :  { %3157 = vmatmul.mubr.msk.f32.vlgmr.msra.gmra.mrb[14].mxu0 %vm420_vm5, %v2871_v49 }
0x17ad   :  { %v2940_v12 = vpop.f32.mrb[14].mxu0 }
0x17ae   :  { %v2941_v61 = vadd.f32 %v3122_v20, %v2940_v12  ;;  %v3158_v8 = vpop.f32.mrb[15].mxu0 }
0x17b0   :  { %v2944_v59 = vmax.f32 %v2941_v61, 0.0 }
0x17b2   :  { %3168 = vmatmul.mubr.msk.f32.vlgmr.msra.gmra.mrb[8].mxu1 %vm418_vm4, %v2944_v59 }
0x1885   :  { %v3025_v13 = vpop.f32.mrb[8].mxu1 }
0x1886   :  { %v3026_v47 = vadd.f32 %v3124_v17, %v3025_v13  ;;  %v3169_v39 = vpop.f32.mrb[9].mxu1 }
0x1888   :  { %3030 = vst.msk [vmem:[#allocation7] sm:$0xf] %vm3029_vm14, %v3026_v47 }
0x1889   :  { %3883 = shalt.err (!%p3880_p6)
}
0x188a   :  { %s3884_s24 = scalar_lea.hbm %s5087_s8, 64 }
0x188b   :  { %p3885_p7 = scmp.ne.s32.totalorder %s5087_s8, %s3884_s24  ;;  %p3888_p8 = scmp.lt.u32.totalorder %s3884_s24, %s5087_s8 }
0x188d   :  { %p3890_p9 = pnand %p3888_p8, %p3885_p7 }
0x188f   :  { %3893 = shalt.err (!%p3890_p9)
}
0x1890   :  { %3040 = dma.vmem_to_hbm [thread:$0]  %s3038_s22, 64, %s5087_s8, [#allocation4]  }
0x1891   :  { %3898 = dma.done.wait [#allocation4], 64  }
0x1892   :  { %3899 = vsyncadd [#allocation4], 4294967232 }
0x1893   :  { %3044 = vsyncpa [#allocation3], 1 }
0x1894   :  { %3045 = vsyncpa [#allocation6], 1 }
0x1895   :  { %3046 = vsyncpa [#allocation4], 1 }

</bundles_post_ra>
